<compile_context>
chip_gen: v7x
topology: tpu7x:2x2x1
jax: 0.10.0
libtpu: 0.0.40
codegen_flags: <defaults>
</compile_context>

<pallas_src>
from functools import partial

import jax
import jax.numpy as jnp
from jax import lax
from jax.experimental import pallas as pl
from jax.experimental.pallas import tpu as pltpu

EMBED_DIM = 128
LANE = 128
NEG_BIG = float(jnp.finfo(jnp.float32).min)


# ----------------------------------------------------------------------------
# Fused kernel: 3 x (SAGEConv -> ReLU -> TopKPooling -> readout) + MLP head
# ----------------------------------------------------------------------------
def geometric_net_kernel(x_ref, adj_ref, mem_ref, memt_ref, bat_ref,
                         acol_ref, arow_ref,
                         wsn_ref, bc_ref, p_ref,
                         w1_ref, b1_ref, w2_ref, b2_ref, w3_ref, b3_ref,
                         o_ref):
    N = x_ref.shape[0]            # padded node count (multiple of 128)
    D = x_ref.shape[1]            # 128
    G = mem_ref.shape[0]          # padded graph count (multiple of 8)

    adj = adj_ref[...]            # [N, N] bf16   A[dst, src]; padding rows/cols zero
    member = mem_ref[...]         # [G, N] f32    one-hot membership (real nodes only)
    member_t = memt_ref[...]      # [N, G] f32    exact transpose of member
    batch_col = bat_ref[...]      # [N, 1] int32  graph id per node (-1 for padding)

    # Constants hoisted out of the layer loop.
    row_i = lax.broadcasted_iota(jnp.int32, (N, N), 0)
    col_j = lax.broadcasted_iota(jnp.int32, (N, N), 1)
    g_iota = lax.broadcasted_iota(jnp.int32, (G, 1), 0)
    ones_col = jnp.ones((N, 1), jnp.float32)
    ones_row = jnp.ones((1, N), jnp.float32)

    def layer_body(layer, carry):
        x, alive_col, alive_row, max_acc, mean_acc = carry
        wsn = wsn_ref[layer]                  # [2D, D] bf16  (W_self stacked on W_nbr)
        bc = bc_ref[layer]                    # [1, D]  f32
        p_row = p_ref[layer]                  # [1, D]  f32  pre-normalized pooling vector

        # --- SAGEConv (mean aggregation over alive neighbors) + ReLU ------------
        x_bf = x.astype(jnp.bfloat16)
        deg = jnp.dot(adj, alive_col.astype(jnp.bfloat16),
                      preferred_element_type=jnp.float32)            # exact integer counts
        deg = jnp.maximum(deg, 1.0)
        agg = jnp.dot(adj, x_bf, preferred_element_type=jnp.float32) / deg
        xa = jnp.concatenate([x_bf, agg.astype(jnp.bfloat16)], axis=1)   # [N, 2D]
        h = jnp.dot(xa, wsn, preferred_element_type=jnp.float32) + bc    # fused K=256 dot
        h = jnp.maximum(h, 0.0) * alive_col    # keep dead/padding rows exactly zero

        # --- TopKPooling: gate = tanh(x . p_hat), keep top-ceil(0.8*n) per graph
        s_col = jnp.sum(h * p_row, axis=1, keepdims=True)            # [N, 1] f32 scores
        gate_col = jnp.tanh(s_col)

        m_alive = member * alive_row                                  # [G, N]
        m_alive_t = member_t * alive_col                              # [N, G]
        same = jnp.dot(m_alive_t, m_alive,
                       preferred_element_type=jnp.float32)            # [N, N] 0/1 (MXU)

        cnt_cur = jnp.dot(m_alive, ones_col, preferred_element_type=jnp.float32)   # [G,1]
        n_col = jnp.dot(m_alive_t, cnt_cur, preferred_element_type=jnp.float32)    # [N,1]
        cnt_row = jnp.dot(ones_row, m_alive_t, preferred_element_type=jnp.float32)  # [1,G]
        n_row = jnp.dot(cnt_row, m_alive, preferred_element_type=jnp.float32)      # [1,N]

        # Single pairwise "j beats i" matrix.  s_jmat is the transpose of the s_col
        # broadcast so both orientations use bitwise-identical score values.
        s_imat = jnp.broadcast_to(s_col, (N, N))                      # s[i] at (i, j)
        s_jmat = jnp.transpose(s_imat)                                # s[j] at (i, j)
        beat = (s_jmat > s_imat) | ((s_jmat == s_imat) & (col_j < row_i))
        B = jnp.where(beat, same, 0.0)        # 1 iff alive same-graph node j beats i

        rank_col = jnp.dot(B, ones_col, preferred_element_type=jnp.float32)        # [N,1]
        wins_row = jnp.dot(ones_row, B, preferred_element_type=jnp.float32)        # [1,N]
        rank_row = n_row - 1.0 - wins_row     # exact: rank(j) = n(j) - 1 - wins(j)

        # keep iff rank < ceil(0.8*n)  <=>  5*rank < 4*n   (exact integer arithmetic)
        keep_col = alive_col * jnp.where(5.0 * rank_col < 4.0 * n_col, 1.0, 0.0)
        keep_row = alive_row * jnp.where(5.0 * rank_row < 4.0 * n_row, 1.0, 0.0)

        x_new = h * gate_col * keep_col       # gate surviving nodes, zero the rest

        # --- readout: [global_max_pool || global_mean_pool] over surviving nodes
        m_keep = member * keep_row                                            # [G, N]
        cnt = jnp.dot(m_keep, ones_col, preferred_element_type=jnp.float32)   # [G, 1]
        mean_g = (jnp.dot(m_keep, x_new, preferred_element_type=jnp.float32)
                  / jnp.maximum(cnt, 1.0))                                    # [G, D]

        def gmax_body(g, acc):                # one [N, D] tile per graph (no [G,N,D])
            in_g = jnp.where(batch_col == g, keep_col, 0.0)                   # [N, 1]
            masked = jnp.where(in_g > 0.0, x_new, NEG_BIG)                    # [N, D]
            row_max = jnp.max(masked, axis=0, keepdims=True)                  # [1, D]
            has = jnp.max(in_g, axis=0, keepdims=True)                        # [1, 1]
            row_max = jnp.where(has > 0.0, row_max, 0.0)                      # guard empty
            onehot = jnp.where(g_iota == g, 1.0, 0.0)                         # [G, 1]
            return acc + onehot * row_max

        max_acc = lax.fori_loop(0, G, gmax_body, max_acc)
        mean_acc = mean_acc + mean_g
        return (x_new, keep_col, keep_row, max_acc, mean_acc)

    init = (x_ref[...], acol_ref[...], arow_ref[...],
            jnp.zeros((G, D), jnp.float32), jnp.zeros((G, D), jnp.float32))
    _, _, _, max_acc, mean_acc = lax.fori_loop(0, 3, layer_body, init)

    # --- MLP head: lin1 -> ReLU -> lin2 -> ReLU -> dropout(eval: id) -> lin3 -> sigmoid
    # lin1 is split into max/mean halves so no concatenate is materialized.
    w1a = w1_ref[0:D, :]
    w1b = w1_ref[D:2 * D, :]
    h1 = (jnp.dot(max_acc, w1a, preferred_element_type=jnp.float32)
          + jnp.dot(mean_acc, w1b, preferred_element_type=jnp.float32) + b1_ref[...])
    h1 = jnp.maximum(h1, 0.0)
    h2 = jnp.dot(h1, w2_ref[...], preferred_element_type=jnp.float32) + b2_ref[...]
    h2 = jnp.maximum(h2, 0.0)
    # TODO(synk): dropout(p=0.5) only active in training mode; eval => identity.
    logit = jnp.sum(h2 * w3_ref[...], axis=1, keepdims=True) + b3_ref[...]   # [G, 1]
    prob = jax.nn.sigmoid(logit)
    # Single lane-dense store; wrapper slices column 0 of the real graphs.
    o_ref[...] = jnp.broadcast_to(prob, o_ref.shape)


# ----------------------------------------------------------------------------
# Wrapper: glue (embedding gather, adjacency scatter, padding) + fused pallas_call
# ----------------------------------------------------------------------------
def _round_up(v, m):
    return ((v + m - 1) // m) * m


@partial(jax.jit, static_argnames=("num_graphs",))
def geometric_net_forward(params, node_ids, edge_index, batch, num_graphs):
    n = node_ids.shape[0]
    n_pad = max(LANE, _round_up(n, LANE))       # lane/MXU-friendly node count
    g_pad = max(8, _round_up(num_graphs, 8))    # sublane-aligned graph count

    # ---- glue: dynamic gather/scatter that BlockSpecs cannot express ----
    x_emb = jnp.take(params["embedding"], node_ids[:, 0], axis=0)              # [n, 128]
    x0 = jnp.zeros((n_pad, EMBED_DIM), jnp.float32).at[:n].set(x_emb)
    adj = jnp.zeros((n_pad, n_pad), jnp.float32).at[
        edge_index[1], edge_index[0]].add(1.0)                                 # A[dst, src]
    adj_bf = adj.astype(jnp.bfloat16)            # small integer counts: exact in bf16
    member = jnp.zeros((g_pad, n_pad), jnp.float32).at[
        batch, jnp.arange(n)].set(1.0)                                         # [G, N]
    member_t = member.T                                                        # [N, G]
    batch_col = jnp.full((n_pad, 1), -1, jnp.int32).at[:n, 0].set(batch)
    alive_col = jnp.zeros((n_pad, 1), jnp.float32).at[:n].set(1.0)
    alive_row = jnp.zeros((1, n_pad), jnp.float32).at[:, :n].set(1.0)

    # Per-layer params: fused [W_self; W_nbr] (single K=256 MXU dot), bias, normalized p.
    wsn_all = jnp.stack([
        jnp.concatenate([params[f"conv{i}"][0], params[f"conv{i}"][1]], axis=0)
        for i in (1, 2, 3)]).astype(jnp.bfloat16)                              # [3, 256, 128]
    b_all = jnp.stack([params[f"conv{i}"][2] for i in (1, 2, 3)])              # [3, 1, 128]
    p_rows = []
    for i in (1, 2, 3):
        p = params[f"pool{i}_p"]                                               # [128, 1]
        p_rows.append((p / jnp.sqrt(jnp.sum(p * p))).reshape(1, EMBED_DIM))
    p_all = jnp.stack(p_rows)                                                  # [3, 1, 128]
    lin3_w_row = params["lin3_w"].T                                            # [1, 64]

    # Advisory cost estimate (fused kernel).
    nn = n_pad * n_pad
    flops = 3 * (2 * nn * EMBED_DIM                 # adj @ x
                 + 4 * n_pad * EMBED_DIM * EMBED_DIM  # fused self+neighbor matmul
                 + 2 * nn * g_pad                   # same-graph matmul
                 + 8 * nn                           # rank / compare / mask VPU work
                 + 4 * g_pad * n_pad * EMBED_DIM)   # readouts
    flops += 2 * g_pad * (2 * EMBED_DIM * EMBED_DIM + EMBED_DIM * 64 + 64)
    bytes_accessed = (2 * nn
                      + 4 * (n_pad * EMBED_DIM + 2 * g_pad * n_pad + 3 * n_pad
                             + 3 * 2 * EMBED_DIM * EMBED_DIM
                             + 256 * 128 + 128 * 64 + 512 + g_pad * LANE))
    cost = pl.CostEstimate(flops=int(flops),
                           transcendentals=int(3 * n_pad + g_pad),
                           bytes_accessed=int(bytes_accessed))

    # Scoped-VMEM hint sized from the actual residency (with headroom); the 16/32 MiB
    # defaults are hit long before physical capacity once N grows.
    est = (2 * nn                            # adj (bf16)
           + 6 * 4 * nn                      # same / beat / B / score broadcasts (f32)
           + 16 * 4 * n_pad * EMBED_DIM      # x / agg / h / masked tiles
           + 8 * 4 * g_pad * n_pad           # member / member_t / m_alive / m_keep
           + 4 * (3 * 2 * EMBED_DIM * EMBED_DIM + 256 * 128 + 128 * 64 + 2048))
    vmem_limit = int(min(max(2 * est, 32 * 1024 * 1024), 64 * 1024 * 1024))

    out = pl.pallas_call(
        geometric_net_kernel,
        out_shape=jax.ShapeDtypeStruct((g_pad, LANE), jnp.float32),
        in_specs=[pl.BlockSpec(memory_space=pltpu.MemorySpace.VMEM)] * 16,
        out_specs=pl.BlockSpec(memory_space=pltpu.MemorySpace.VMEM),
        compiler_params=pltpu.CompilerParams(vmem_limit_bytes=vmem_limit),
        cost_estimate=cost,
    )(x0, adj_bf, member, member_t, batch_col, alive_col, alive_row,
      wsn_all, b_all, p_all,
      params["lin1_w"], params["lin1_b"],
      params["lin2_w"], params["lin2_b"],
      lin3_w_row, params["lin3_b"])

    return out[:num_graphs, 0]                                                 # [G]


# ----------------------------------------------------------------------------
# Deterministic parameter construction (synthetic; no checkpoint load)
# ----------------------------------------------------------------------------
def make_params(key, num_items):
    def nrm(k, shape, scale=0.05):
        return (scale * jax.random.normal(k, shape)).astype(jnp.float32)

    keys = jax.random.split(key, 16)
    params = {"embedding": nrm(keys[0], (num_items, EMBED_DIM), 0.1)}
    for i, kk in zip((1, 2, 3), (keys[1], keys[2], keys[3])):
        k1, k2, k3 = jax.random.split(kk, 3)
        params[f"conv{i}"] = (nrm(k1, (EMBED_DIM, 128)),        # W_self
                              nrm(k2, (EMBED_DIM, 128)),        # W_nbr
                              nrm(k3, (1, 128)))                # bias
    for i, kk in zip((1, 2, 3), (keys[4], keys[5], keys[6])):
        params[f"pool{i}_p"] = nrm(kk, (128, 1), 0.1)
    params["lin1_w"] = nrm(keys[7], (256, 128))
    params["lin1_b"] = nrm(keys[8], (1, 128))
    params["lin2_w"] = nrm(keys[9], (128, 64))
    params["lin2_b"] = nrm(keys[10], (1, 64))
    params["lin3_w"] = nrm(keys[11], (64, 1))
    params["lin3_b"] = nrm(keys[12], (1, 1))
    return params


if __name__ == "__main__":
    key = jax.random.PRNGKey(0)
    num_items = 50
    num_graphs = 2
    nodes_per_graph = 8
    n = num_graphs * nodes_per_graph                                   # 16 nodes total

    # Node item ids [N, 1] (as in data.x before embedding + squeeze(1))
    k_ids, k_par = jax.random.split(key)
    node_ids = jax.random.randint(k_ids, (n, 1), 0, num_items, dtype=jnp.int32)

    # Bidirectional ring edges within each graph
    src, dst = [], []
    for g in range(num_graphs):
        base = g * nodes_per_graph
        for i in range(nodes_per_graph):
            a, b = base + i, base + (i + 1) % nodes_per_graph
            src += [a, b]
            dst += [b, a]
    edge_index = jnp.array([src, dst], dtype=jnp.int32)                # [2, 32]
    batch = jnp.repeat(jnp.arange(num_graphs, dtype=jnp.int32), nodes_per_graph)

    params = make_params(k_par, num_items)

    out = geometric_net_forward(params, node_ids, edge_index, batch, num_graphs)
    out = jax.block_until_ready(out)

    assert out.shape == (num_graphs,)
    assert bool(jnp.all(jnp.isfinite(out)))
    assert bool(jnp.all((out >= 0.0) & (out <= 1.0)))
    print("KERNEL_OK")
</pallas_src>

<mosaic_0001>
module attributes {stable_mosaic.version = 11 : i64} {
  func.func private @main(%arg0: i32) attributes {dimension_semantics = [#tpu.dimension_semantics<core_parallel>], iteration_bounds = array<i64: 2>, tpu.core_type = #tpu.core_type<sc_scalar_subcore>, window_params = []} {
    return
  }
}

module attributes {stable_mosaic.version = 11 : i64} {
  func.func private @main(%arg0: i32) attributes {dimension_semantics = [#tpu.dimension_semantics<core_parallel>], iteration_bounds = array<i64: 2>, tpu.core_type = #tpu.core_type<sc_scalar_subcore>, window_params = []} {
    return
  }
}

module attributes {stable_mosaic.version = 11 : i64} {
  func.func @geometric_net_kernel(%arg0: memref<128x128xf32, #tpu.memory_space<vmem>>, %arg1: memref<128x128xbf16, #tpu.memory_space<vmem>>, %arg2: memref<8x128xf32, #tpu.memory_space<vmem>>, %arg3: memref<128x8xf32, #tpu.memory_space<vmem>>, %arg4: memref<128x1xi32, #tpu.memory_space<vmem>>, %arg5: memref<128x1xf32, #tpu.memory_space<vmem>>, %arg6: memref<1x128xf32, #tpu.memory_space<vmem>>, %arg7: memref<3x256x128xbf16, #tpu.memory_space<vmem>>, %arg8: memref<3x1x128xf32, #tpu.memory_space<vmem>>, %arg9: memref<3x1x128xf32, #tpu.memory_space<vmem>>, %arg10: memref<256x128xf32, #tpu.memory_space<vmem>>, %arg11: memref<1x128xf32, #tpu.memory_space<vmem>>, %arg12: memref<128x64xf32, #tpu.memory_space<vmem>>, %arg13: memref<1x64xf32, #tpu.memory_space<vmem>>, %arg14: memref<1x64xf32, #tpu.memory_space<vmem>>, %arg15: memref<1x1xf32, #tpu.memory_space<vmem>>, %arg16: memref<8x128xf32, #tpu.memory_space<vmem>>) attributes {dimension_semantics = [], scalar_prefetch = 0 : i64, scratch_operands = 0 : i64, tpu.core_type = #tpu.core_type<tc>} {
    %c0 = arith.constant 0 : index
    %c0_0 = arith.constant 0 : index
    %0 = vector.load %arg1[%c0, %c0_0] : memref<128x128xbf16, #tpu.memory_space<vmem>>, vector<128x128xbf16>
    %c0_1 = arith.constant 0 : index
    %c0_2 = arith.constant 0 : index
    %1 = vector.load %arg2[%c0_1, %c0_2] : memref<8x128xf32, #tpu.memory_space<vmem>>, vector<8x128xf32>
    %c0_3 = arith.constant 0 : index
    %c0_4 = arith.constant 0 : index
    %2 = vector.load %arg3[%c0_3, %c0_4] : memref<128x8xf32, #tpu.memory_space<vmem>>, vector<128x8xf32>
    %c0_5 = arith.constant 0 : index
    %c0_6 = arith.constant 0 : index
    %3 = vector.load %arg4[%c0_5, %c0_6] : memref<128x1xi32, #tpu.memory_space<vmem>>, vector<128x1xi32>
    %4 = tpu.iota {dimensions = array<i32: 0>} : vector<128x128xi32>
    %5 = tpu.iota {dimensions = array<i32: 1>} : vector<128x128xi32>
    %6 = tpu.iota {dimensions = array<i32: 0>} : vector<8x1xi32>
    %cst = arith.constant 1.000000e+00 : f32
    %7 = vector.broadcast %cst : f32 to vector<128x1xf32>
    %cst_7 = arith.constant 1.000000e+00 : f32
    %8 = vector.broadcast %cst_7 : f32 to vector<1x128xf32>
    %c0_8 = arith.constant 0 : index
    %c0_9 = arith.constant 0 : index
    %9 = vector.load %arg0[%c0_8, %c0_9] : memref<128x128xf32, #tpu.memory_space<vmem>>, vector<128x128xf32>
    %c0_10 = arith.constant 0 : index
    %c0_11 = arith.constant 0 : index
    %10 = vector.load %arg5[%c0_10, %c0_11] : memref<128x1xf32, #tpu.memory_space<vmem>>, vector<128x1xf32>
    %c0_12 = arith.constant 0 : index
    %c0_13 = arith.constant 0 : index
    %11 = vector.load %arg6[%c0_12, %c0_13] : memref<1x128xf32, #tpu.memory_space<vmem>>, vector<1x128xf32>
    %cst_14 = arith.constant 0.000000e+00 : f32
    %12 = vector.broadcast %cst_14 : f32 to vector<8x128xf32>
    %cst_15 = arith.constant 0.000000e+00 : f32
    %13 = vector.broadcast %cst_15 : f32 to vector<8x128xf32>
    %c0_i32 = arith.constant 0 : i32
    %c3_i32 = arith.constant 3 : i32
    %14 = arith.addi %c0_i32, %c3_i32 : i32
    %c1_i32 = arith.constant 1 : i32
    %15:5 = scf.for %arg17 = %c0_i32 to %14 step %c1_i32 iter_args(%arg18 = %9, %arg19 = %10, %arg20 = %11, %arg21 = %12, %arg22 = %13) -> (vector<128x128xf32>, vector<128x1xf32>, vector<1x128xf32>, vector<8x128xf32>, vector<8x128xf32>)  : i32 {
      %49 = arith.index_cast %arg17 : i32 to index
      %c0_39 = arith.constant 0 : index
      %c0_40 = arith.constant 0 : index
      %50 = vector.load %arg7[%49, %c0_39, %c0_40] : memref<3x256x128xbf16, #tpu.memory_space<vmem>>, vector<1x256x128xbf16>
      %51 = vector.shape_cast %50 : vector<1x256x128xbf16> to vector<256x128xbf16>
      %52 = arith.index_cast %arg17 : i32 to index
      %c0_41 = arith.constant 0 : index
      %c0_42 = arith.constant 0 : index
      %53 = vector.load %arg8[%52, %c0_41, %c0_42] : memref<3x1x128xf32, #tpu.memory_space<vmem>>, vector<1x1x128xf32>
      %54 = vector.shape_cast %53 : vector<1x1x128xf32> to vector<1x128xf32>
      %55 = arith.index_cast %arg17 : i32 to index
      %c0_43 = arith.constant 0 : index
      %c0_44 = arith.constant 0 : index
      %56 = vector.load %arg9[%55, %c0_43, %c0_44] : memref<3x1x128xf32, #tpu.memory_space<vmem>>, vector<1x1x128xf32>
      %57 = vector.shape_cast %56 : vector<1x1x128xf32> to vector<1x128xf32>
      %58 = arith.truncf %arg18 : vector<128x128xf32> to vector<128x128xbf16>
      %59 = arith.truncf %arg19 : vector<128x1xf32> to vector<128x1xbf16>
      %cst_45 = arith.constant dense<0.000000e+00> : vector<128x1xf32>
      %60 = tpu.matmul %0, %59, %cst_45 {dimension_numbers = #tpu.dot_dimension_numbers<[1], [0], [0], [1], [0, 0, 1, 1], [], []>} : vector<128x128xbf16>, vector<128x1xbf16>, vector<128x1xf32> -> vector<128x1xf32>
      %cst_46 = arith.constant 1.000000e+00 : f32
      %61 = vector.broadcast %cst_46 : f32 to vector<128x1xf32>
      %62 = arith.maximumf %60, %61 : vector<128x1xf32>
      %cst_47 = arith.constant dense<0.000000e+00> : vector<128x128xf32>
      %63 = tpu.matmul %0, %58, %cst_47 {dimension_numbers = #tpu.dot_dimension_numbers<[1], [0], [0], [1], [0, 0, 1, 1], [], []>} : vector<128x128xbf16>, vector<128x128xbf16>, vector<128x128xf32> -> vector<128x128xf32>
      %64 = vector.broadcast %62 : vector<128x1xf32> to vector<128x128xf32>
      %65 = arith.divf %63, %64 : vector<128x128xf32>
      %66 = arith.truncf %65 : vector<128x128xf32> to vector<128x128xbf16>
      %67 = tpu.concatenate %58, %66 in 1 : vector<128x128xbf16>, vector<128x128xbf16> -> vector<128x256xbf16>
      %cst_48 = arith.constant dense<0.000000e+00> : vector<128x128xf32>
      %68 = tpu.matmul %67, %51, %cst_48 {dimension_numbers = #tpu.dot_dimension_numbers<[1], [0], [0], [1], [0, 0, 1, 1], [], []>} : vector<128x256xbf16>, vector<256x128xbf16>, vector<128x128xf32> -> vector<128x128xf32>
      %69 = vector.broadcast %54 : vector<1x128xf32> to vector<128x128xf32>
      %70 = arith.addf %68, %69 : vector<128x128xf32>
      %cst_49 = arith.constant 0.000000e+00 : f32
      %71 = vector.broadcast %cst_49 : f32 to vector<128x128xf32>
      %72 = arith.maximumf %70, %71 : vector<128x128xf32>
      %73 = vector.broadcast %arg19 : vector<128x1xf32> to vector<128x128xf32>
      %74 = arith.mulf %72, %73 : vector<128x128xf32>
      %75 = vector.broadcast %57 : vector<1x128xf32> to vector<128x128xf32>
      %76 = arith.mulf %74, %75 : vector<128x128xf32>
      %cst_50 = arith.constant dense<0.000000e+00> : vector<128xf32>
      %77 = vector.multi_reduction <add>, %76, %cst_50 [1] : vector<128x128xf32> to vector<128xf32>
      %78 = vector.shape_cast %77 : vector<128xf32> to vector<128x1xf32>
      %79 = math.tanh %78 : vector<128x1xf32>
      %80 = vector.broadcast %arg20 : vector<1x128xf32> to vector<8x128xf32>
      %81 = arith.mulf %1, %80 : vector<8x128xf32>
      %82 = vector.broadcast %arg19 : vector<128x1xf32> to vector<128x8xf32>
      %83 = arith.mulf %2, %82 : vector<128x8xf32>
      %cst_51 = arith.constant dense<0.000000e+00> : vector<128x128xf32>
      %84 = tpu.matmul %83, %81, %cst_51 {dimension_numbers = #tpu.dot_dimension_numbers<[1], [0], [0], [1], [0, 0, 1, 1], [], []>} : vector<128x8xf32>, vector<8x128xf32>, vector<128x128xf32> -> vector<128x128xf32>
      %cst_52 = arith.constant dense<0.000000e+00> : vector<8x1xf32>
      %85 = tpu.matmul %81, %7, %cst_52 {dimension_numbers = #tpu.dot_dimension_numbers<[1], [0], [0], [1], [0, 0, 1, 1], [], []>} : vector<8x128xf32>, vector<128x1xf32>, vector<8x1xf32> -> vector<8x1xf32>
      %cst_53 = arith.constant dense<0.000000e+00> : vector<128x1xf32>
      %86 = tpu.matmul %83, %85, %cst_53 {dimension_numbers = #tpu.dot_dimension_numbers<[1], [0], [0], [1], [0, 0, 1, 1], [], []>} : vector<128x8xf32>, vector<8x1xf32>, vector<128x1xf32> -> vector<128x1xf32>
      %cst_54 = arith.constant dense<0.000000e+00> : vector<1x8xf32>
      %87 = tpu.matmul %8, %83, %cst_54 {dimension_numbers = #tpu.dot_dimension_numbers<[1], [0], [0], [1], [0, 0, 1, 1], [], []>} : vector<1x128xf32>, vector<128x8xf32>, vector<1x8xf32> -> vector<1x8xf32>
      %cst_55 = arith.constant dense<0.000000e+00> : vector<1x128xf32>
      %88 = tpu.matmul %87, %81, %cst_55 {dimension_numbers = #tpu.dot_dimension_numbers<[1], [0], [0], [1], [0, 0, 1, 1], [], []>} : vector<1x8xf32>, vector<8x128xf32>, vector<1x128xf32> -> vector<1x128xf32>
      %89 = vector.shape_cast %78 : vector<128x1xf32> to vector<128x1xf32>
      %90 = vector.broadcast %89 : vector<128x1xf32> to vector<128x128xf32>
      %91 = tpu.transpose %90, [1, 0] : vector<128x128xf32> -> vector<128x128xf32>
      %92 = arith.cmpf ogt, %91, %90 : vector<128x128xf32>
      %93 = arith.cmpf oeq, %91, %90 : vector<128x128xf32>
      %94 = arith.cmpi slt, %5, %4 : vector<128x128xi32>
      %95 = arith.andi %93, %94 : vector<128x128xi1>
      %96 = arith.ori %92, %95 : vector<128x128xi1>
      %cst_56 = arith.constant 0.000000e+00 : f32
      %97 = vector.broadcast %cst_56 : f32 to vector<128x128xf32>
      %98 = arith.select %96, %84, %97 : vector<128x128xi1>, vector<128x128xf32>
      %cst_57 = arith.constant dense<0.000000e+00> : vector<128x1xf32>
      %99 = tpu.matmul %98, %7, %cst_57 {dimension_numbers = #tpu.dot_dimension_numbers<[1], [0], [0], [1], [0, 0, 1, 1], [], []>} : vector<128x128xf32>, vector<128x1xf32>, vector<128x1xf32> -> vector<128x1xf32>
      %cst_58 = arith.constant dense<0.000000e+00> : vector<1x128xf32>
      %100 = tpu.matmul %8, %98, %cst_58 {dimension_numbers = #tpu.dot_dimension_numbers<[1], [0], [0], [1], [0, 0, 1, 1], [], []>} : vector<1x128xf32>, vector<128x128xf32>, vector<1x128xf32> -> vector<1x128xf32>
      %cst_59 = arith.constant 1.000000e+00 : f32
      %101 = vector.broadcast %cst_59 : f32 to vector<1x128xf32>
      %102 = arith.subf %88, %101 : vector<1x128xf32>
      %103 = arith.subf %102, %100 : vector<1x128xf32>
      %cst_60 = arith.constant 5.000000e+00 : f32
      %104 = vector.broadcast %cst_60 : f32 to vector<128x1xf32>
      %105 = arith.mulf %104, %99 : vector<128x1xf32>
      %cst_61 = arith.constant 4.000000e+00 : f32
      %106 = vector.broadcast %cst_61 : f32 to vector<128x1xf32>
      %107 = arith.mulf %106, %86 : vector<128x1xf32>
      %108 = arith.cmpf olt, %105, %107 : vector<128x1xf32>
      %cst_62 = arith.constant 1.000000e+00 : f32
      %cst_63 = arith.constant 0.000000e+00 : f32
      %109 = vector.broadcast %cst_62 : f32 to vector<128x1xf32>
      %110 = vector.broadcast %cst_63 : f32 to vector<128x1xf32>
      %111 = arith.select %108, %109, %110 : vector<128x1xi1>, vector<128x1xf32>
      %112 = arith.mulf %arg19, %111 : vector<128x1xf32>
      %cst_64 = arith.constant 5.000000e+00 : f32
      %113 = vector.broadcast %cst_64 : f32 to vector<1x128xf32>
      %114 = arith.mulf %113, %103 : vector<1x128xf32>
      %cst_65 = arith.constant 4.000000e+00 : f32
      %115 = vector.broadcast %cst_65 : f32 to vector<1x128xf32>
      %116 = arith.mulf %115, %88 : vector<1x128xf32>
      %117 = arith.cmpf olt, %114, %116 : vector<1x128xf32>
      %cst_66 = arith.constant 1.000000e+00 : f32
      %cst_67 = arith.constant 0.000000e+00 : f32
      %118 = vector.broadcast %cst_66 : f32 to vector<1x128xf32>
      %119 = vector.broadcast %cst_67 : f32 to vector<1x128xf32>
      %120 = arith.select %117, %118, %119 : vector<1x128xi1>, vector<1x128xf32>
      %121 = arith.mulf %arg20, %120 : vector<1x128xf32>
      %122 = vector.broadcast %79 : vector<128x1xf32> to vector<128x128xf32>
      %123 = arith.mulf %74, %122 : vector<128x128xf32>
      %124 = vector.broadcast %112 : vector<128x1xf32> to vector<128x128xf32>
      %125 = arith.mulf %123, %124 : vector<128x128xf32>
      %126 = vector.broadcast %121 : vector<1x128xf32> to vector<8x128xf32>
      %127 = arith.mulf %1, %126 : vector<8x128xf32>
      %cst_68 = arith.constant dense<0.000000e+00> : vector<8x1xf32>
      %128 = tpu.matmul %127, %7, %cst_68 {dimension_numbers = #tpu.dot_dimension_numbers<[1], [0], [0], [1], [0, 0, 1, 1], [], []>} : vector<8x128xf32>, vector<128x1xf32>, vector<8x1xf32> -> vector<8x1xf32>
      %cst_69 = arith.constant dense<0.000000e+00> : vector<8x128xf32>
      %129 = tpu.matmul %127, %125, %cst_69 {dimension_numbers = #tpu.dot_dimension_numbers<[1], [0], [0], [1], [0, 0, 1, 1], [], []>} : vector<8x128xf32>, vector<128x128xf32>, vector<8x128xf32> -> vector<8x128xf32>
      %cst_70 = arith.constant 1.000000e+00 : f32
      %130 = vector.broadcast %cst_70 : f32 to vector<8x1xf32>
      %131 = arith.maximumf %128, %130 : vector<8x1xf32>
      %132 = vector.broadcast %131 : vector<8x1xf32> to vector<8x128xf32>
      %133 = arith.divf %129, %132 : vector<8x128xf32>
      %c0_i32_71 = arith.constant 0 : i32
      %c8_i32 = arith.constant 8 : i32
      %134 = arith.addi %c0_i32_71, %c8_i32 : i32
      %c1_i32_72 = arith.constant 1 : i32
      %135 = scf.for %arg23 = %c0_i32_71 to %134 step %c1_i32_72 iter_args(%arg24 = %arg21) -> (vector<8x128xf32>)  : i32 {
        %137 = vector.broadcast %arg23 : i32 to vector<128x1xi32>
        %138 = arith.cmpi eq, %3, %137 : vector<128x1xi32>
        %cst_74 = arith.constant 0.000000e+00 : f32
        %139 = vector.broadcast %cst_74 : f32 to vector<128x1xf32>
        %140 = arith.select %138, %112, %139 : vector<128x1xi1>, vector<128x1xf32>
        %cst_75 = arith.constant 0.000000e+00 : f32
        %141 = vector.broadcast %cst_75 : f32 to vector<128x1xf32>
        %142 = arith.cmpf ogt, %140, %141 : vector<128x1xf32>
        %cst_76 = arith.constant -3.40282347E+38 : f32
        %143 = vector.shape_cast %142 : vector<128x1xi1> to vector<128x1xi1>
        %144 = vector.broadcast %143 : vector<128x1xi1> to vector<128x128xi1>
        %145 = vector.broadcast %cst_76 : f32 to vector<128x128xf32>
        %146 = arith.select %144, %125, %145 : vector<128x128xi1>, vector<128x128xf32>
        %cst_77 = arith.constant dense<0xFF800000> : vector<128xf32>
        %147 = vector.multi_reduction <maximumf>, %146, %cst_77 [0] : vector<128x128xf32> to vector<128xf32>
        %148 = vector.shape_cast %147 : vector<128xf32> to vector<1x128xf32>
        %cst_78 = arith.constant dense<0xFF800000> : vector<1xf32>
        %149 = vector.multi_reduction <maximumf>, %140, %cst_78 [0] : vector<128x1xf32> to vector<1xf32>
        %150 = vector.shape_cast %149 : vector<1xf32> to vector<1x1xf32>
        %cst_79 = arith.constant 0.000000e+00 : f32
        %151 = vector.broadcast %cst_79 : f32 to vector<1x1xf32>
        %152 = arith.cmpf ogt, %150, %151 : vector<1x1xf32>
        %cst_80 = arith.constant 0.000000e+00 : f32
        %153 = vector.shape_cast %152 : vector<1x1xi1> to vector<1x1xi1>
        %154 = vector.broadcast %153 : vector<1x1xi1> to vector<1x128xi1>
        %155 = vector.broadcast %cst_80 : f32 to vector<1x128xf32>
        %156 = arith.select %154, %148, %155 : vector<1x128xi1>, vector<1x128xf32>
        %157 = vector.broadcast %arg23 : i32 to vector<8x1xi32>
        %158 = arith.cmpi eq, %6, %157 : vector<8x1xi32>
        %cst_81 = arith.constant 1.000000e+00 : f32
        %cst_82 = arith.constant 0.000000e+00 : f32
        %159 = vector.broadcast %cst_81 : f32 to vector<8x1xf32>
        %160 = vector.broadcast %cst_82 : f32 to vector<8x1xf32>
        %161 = arith.select %158, %159, %160 : vector<8x1xi1>, vector<8x1xf32>
        %162 = vector.broadcast %161 : vector<8x1xf32> to vector<8x128xf32>
        %163 = vector.broadcast %156 : vector<1x128xf32> to vector<8x128xf32>
        %164 = arith.mulf %162, %163 : vector<8x128xf32>
        %165 = arith.addf %arg24, %164 : vector<8x128xf32>
        scf.yield %165 : vector<8x128xf32>
      }
      %c8_i32_73 = arith.constant 8 : i32
      %136 = arith.addf %arg22, %133 : vector<8x128xf32>
      scf.yield %125, %112, %121, %135, %136 : vector<128x128xf32>, vector<128x1xf32>, vector<1x128xf32>, vector<8x128xf32>, vector<8x128xf32>
    }
    %c3_i32_16 = arith.constant 3 : i32
    %c0_17 = arith.constant 0 : index
    %c0_18 = arith.constant 0 : index
    %16 = vector.load %arg10[%c0_17, %c0_18] : memref<256x128xf32, #tpu.memory_space<vmem>>, vector<128x128xf32>
    %c128 = arith.constant 128 : index
    %c0_19 = arith.constant 0 : index
    %17 = vector.load %arg10[%c128, %c0_19] : memref<256x128xf32, #tpu.memory_space<vmem>>, vector<128x128xf32>
    %cst_20 = arith.constant dense<0.000000e+00> : vector<8x128xf32>
    %18 = tpu.matmul %15#3, %16, %cst_20 {dimension_numbers = #tpu.dot_dimension_numbers<[1], [0], [0], [1], [0, 0, 1, 1], [], []>} : vector<8x128xf32>, vector<128x128xf32>, vector<8x128xf32> -> vector<8x128xf32>
    %cst_21 = arith.constant dense<0.000000e+00> : vector<8x128xf32>
    %19 = tpu.matmul %15#4, %17, %cst_21 {dimension_numbers = #tpu.dot_dimension_numbers<[1], [0], [0], [1], [0, 0, 1, 1], [], []>} : vector<8x128xf32>, vector<128x128xf32>, vector<8x128xf32> -> vector<8x128xf32>
    %20 = arith.addf %18, %19 : vector<8x128xf32>
    %c0_22 = arith.constant 0 : index
    %c0_23 = arith.constant 0 : index
    %21 = vector.load %arg11[%c0_22, %c0_23] : memref<1x128xf32, #tpu.memory_space<vmem>>, vector<1x128xf32>
    %22 = vector.broadcast %21 : vector<1x128xf32> to vector<8x128xf32>
    %23 = arith.addf %20, %22 : vector<8x128xf32>
    %cst_24 = arith.constant 0.000000e+00 : f32
    %24 = vector.broadcast %cst_24 : f32 to vector<8x128xf32>
    %25 = arith.maximumf %23, %24 : vector<8x128xf32>
    %c0_25 = arith.constant 0 : index
    %c0_26 = arith.constant 0 : index
    %26 = vector.load %arg12[%c0_25, %c0_26] : memref<128x64xf32, #tpu.memory_space<vmem>>, vector<128x64xf32>
    %cst_27 = arith.constant dense<0.000000e+00> : vector<8x64xf32>
    %27 = tpu.matmul %25, %26, %cst_27 {dimension_numbers = #tpu.dot_dimension_numbers<[1], [0], [0], [1], [0, 0, 1, 1], [], []>} : vector<8x128xf32>, vector<128x64xf32>, vector<8x64xf32> -> vector<8x64xf32>
    %c0_28 = arith.constant 0 : index
    %c0_29 = arith.constant 0 : index
    %28 = vector.load %arg13[%c0_28, %c0_29] : memref<1x64xf32, #tpu.memory_space<vmem>>, vector<1x64xf32>
    %29 = vector.broadcast %28 : vector<1x64xf32> to vector<8x64xf32>
    %30 = arith.addf %27, %29 : vector<8x64xf32>
    %cst_30 = arith.constant 0.000000e+00 : f32
    %31 = vector.broadcast %cst_30 : f32 to vector<8x64xf32>
    %32 = arith.maximumf %30, %31 : vector<8x64xf32>
    %c0_31 = arith.constant 0 : index
    %c0_32 = arith.constant 0 : index
    %33 = vector.load %arg14[%c0_31, %c0_32] : memref<1x64xf32, #tpu.memory_space<vmem>>, vector<1x64xf32>
    %34 = vector.broadcast %33 : vector<1x64xf32> to vector<8x64xf32>
    %35 = arith.mulf %32, %34 : vector<8x64xf32>
    %cst_33 = arith.constant dense<0.000000e+00> : vector<8xf32>
    %36 = vector.multi_reduction <add>, %35, %cst_33 [1] : vector<8x64xf32> to vector<8xf32>
    %37 = vector.shape_cast %36 : vector<8xf32> to vector<8x1xf32>
    %c0_34 = arith.constant 0 : index
    %c0_35 = arith.constant 0 : index
    %38 = vector.load %arg15[%c0_34, %c0_35] : memref<1x1xf32, #tpu.memory_space<vmem>>, vector<1x1xf32>
    %39 = vector.broadcast %38 : vector<1x1xf32> to vector<8x1xf32>
    %40 = arith.addf %37, %39 : vector<8x1xf32>
    %41 = arith.negf %40 : vector<8x1xf32>
    %42 = math.exp %41 : vector<8x1xf32>
    %cst_36 = arith.constant 1.000000e+00 : f32
    %43 = vector.broadcast %cst_36 : f32 to vector<8x1xf32>
    %44 = arith.addf %43, %42 : vector<8x1xf32>
    %45 = arith.divf %43, %44 : vector<8x1xf32>
    %46 = vector.shape_cast %45 : vector<8x1xf32> to vector<8x1xf32>
    %47 = vector.broadcast %46 : vector<8x1xf32> to vector<8x128xf32>
    %c0_37 = arith.constant 0 : index
    %c0_38 = arith.constant 0 : index
    %48 = vector.load %arg16[%c0_37, %c0_38] : memref<8x128xf32, #tpu.memory_space<vmem>>, vector<8x128xf32>
    tpu.vector_store %arg16[%c0_37, %c0_38], %47 {strides = array<i32>} : memref<8x128xf32, #tpu.memory_space<vmem>>, vector<8x128xf32>,
    return
  }
}

</mosaic_0001>

<bundles_post_ra>
// kernel: geometric_net_forward.1
= control target key start
LH: loop header
LB: loop body
LE: loop exit
PB: predicated region body
PF: predicated region fallthrough
CT: control target
= control target key end

     0   :  { %v105_v7 = vlaneseq  ;;  %s6821_s1 = inlined_call_operand.vmem [shape: bf16[128,128], index: 1, kind: input, shape index: {}]   ;;  %s6822_s7 = inlined_call_operand.vmem [shape: bf16[3,256,128], index: 7, kind: input, shape index: {}]   ;;  %s6823_s8 = inlined_call_operand.vmem [shape: f32[3,1,128], index: 8, kind: input, shape index: {}]   ;;  %s6824_s9 = inlined_call_operand.vmem [shape: f32[3,1,128], index: 9, kind: input, shape index: {}]   ;;  %s6825_s10 = inlined_call_operand.vmem [shape: f32[256,128], index: 10, kind: input, shape index: {}]   ;;  %s6826_s11 = inlined_call_operand.vmem [shape: f32[1,128], index: 11, kind: input, shape index: {}]   ;;  %s6827_s12 = inlined_call_operand.vmem [shape: f32[128,64], index: 12, kind: input, shape index: {}]   ;;  %s6828_s13 = inlined_call_operand.vmem [shape: f32[1,64], index: 13, kind: input, shape index: {}]   ;;  %s6829_s14 = inlined_call_operand.vmem [shape: f32[1,64], index: 14, kind: input, shape index: {}]   ;;  %s6830_s15 = inlined_call_operand.<no memory space> [shape: f32[1,1], index: 15, kind: input, shape index: {}]   ;;  %s6831_s16 = inlined_call_operand.vmem [shape: f32[8,128], index: 16, kind: output, shape index: {}]   ;;  %s6832_s2 = inlined_call_operand.vmem [shape: f32[8,128], index: 2, kind: input, shape index: {}]   ;;  %s6833_s3 = inlined_call_operand.vmem [shape: f32[128,8], index: 3, kind: input, shape index: {}]   ;;  %s6834_s4 = inlined_call_operand.vmem [shape: s32[128,1], index: 4, kind: input, shape index: {}]   ;;  %s6835_s0 = inlined_call_operand.vmem [shape: f32[128,128], index: 0, kind: input, shape index: {}]   ;;  %s6836_s5 = inlined_call_operand.vmem [shape: f32[128,1], index: 5, kind: input, shape index: {}]   ;;  %s6837_s6 = inlined_call_operand.vmem [shape: f32[1,128], index: 6, kind: input, shape index: {}]  }
   0x1   :  { %6869 = sst [smem:[#allocation91_spill]] %s6821_s1  ;;  %v21_v0 = vstv %s6830_s15  ;;  %v4907_v18 = vld [vmem:[%s6832_s2] sm:$0xff]  ;;  %v4921_v22 = vld [vmem:[%s6833_s3 + $0x8] sm:$0xff]  ;;  %v4926_v23 = vld [vmem:[%s6833_s3 + $0x10] sm:$0xff] }
   0x2   :  { %s6870_s25 = sld [smem:[#allocation91_spill]]  ;;  %22 = vst [vmem:[#allocation2] sm:$0x1] %v21_v0  ;;  %6887 = vst [vmem:[#allocation19_spill] sm:$0xff] %v4907_v18  ;;  %v4912_v19 = vld [vmem:[%s6833_s3] sm:$0xff]  ;;  %v4914_v20 = vshrl.u32 %v105_v7, 7 }
   0x3   :  { %6888 = vst [vmem:[#allocation20_spill] sm:$0xff] %v4912_v19  ;;  %v4916_v21 = vand.u32 127, %v105_v7  ;;  %6890 = vst [vmem:[#allocation22_spill] sm:$0xff] %v4921_v22  ;;  %v4931_v24 = vld [vmem:[%s6833_s3 + $0x18] sm:$0xff]  ;;  %v4936_v25 = vld [vmem:[%s6833_s3 + $0x20] sm:$0xff] }
   0x4   :  { %6891 = vst [vmem:[#allocation23_spill] sm:$0xff] %v4926_v23  ;;  %6892 = vst [vmem:[#allocation24_spill] sm:$0xff] %v4931_v24  ;;  %v4941_v26 = vld [vmem:[%s6833_s3 + $0x28] sm:$0xff]  ;;  %v4946_v27 = vld [vmem:[%s6833_s3 + $0x30] sm:$0xff]  ;;  %v4949_v28 = vadd.s32 8, %v4914_v20  ;;  %v4952_v29 = vadd.s32 16, %v4914_v20 }
   0x5   :  { %6889 = vst [vmem:[#allocation21_spill] sm:$0xff] %v4916_v21  ;;  %6893 = vst [vmem:[#allocation25_spill] sm:$0xff] %v4936_v25  ;;  %v4955_v30 = vadd.s32 24, %v4914_v20  ;;  %v4960_v31 = vld [vmem:[%s6833_s3 + $0x38] sm:$0xff]  ;;  %v4965_v32 = vld [vmem:[%s6833_s3 + $0x40] sm:$0xff]  ;;  %v4973_v34 = vadd.s32 32, %v4914_v20 }
   0x6   :  { %6894 = vst [vmem:[#allocation26_spill] sm:$0xff] %v4941_v26  ;;  %6895 = vst [vmem:[#allocation27_spill] sm:$0xff] %v4946_v27  ;;  %v4970_v33 = vld [vmem:[%s6833_s3 + $0x48] sm:$0xff]  ;;  %v4976_v35 = vadd.s32 40, %v4914_v20  ;;  %v4979_v36 = vadd.s32 48, %v4914_v20  ;;  %v4984_v37 = vld [vmem:[%s6833_s3 + $0x50] sm:$0xff] }
   0x7   :  { %6896 = vst [vmem:[#allocation28_spill] sm:$0xff] %v4949_v28  ;;  %6897 = vst [vmem:[#allocation29_spill] sm:$0xff] %v4952_v29  ;;  %v4989_v38 = vld [vmem:[%s6833_s3 + $0x58] sm:$0xff]  ;;  %v4994_v39 = vld [vmem:[%s6833_s3 + $0x60] sm:$0xff]  ;;  %v4997_v40 = vadd.s32 56, %v4914_v20  ;;  %v5000_v41 = vadd.s32 64, %v4914_v20 }
   0x8   :  { %v4827_v1 = vld [vmem:[%s6870_s25] sm:$0xf]  ;;  %v4832_v2 = vld [vmem:[%s6870_s25 + $0x4] sm:$0xf]  ;;  %v4837_v3 = vld [vmem:[%s6870_s25 + $0x8] sm:$0xf] }
   0x9   :  { %6871 = vst [vmem:[#allocation3_spill] sm:$0xff] %v4827_v1  ;;  %6872 = vst [vmem:[#allocation4_spill] sm:$0xff] %v4832_v2  ;;  %v4842_v4 = vld [vmem:[%s6870_s25 + $0xc] sm:$0xf]  ;;  %v4847_v5 = vld [vmem:[%s6870_s25 + $0x10] sm:$0xf] }
   0xa   :  { %6873 = vst [vmem:[#allocation5_spill] sm:$0xff] %v4837_v3  ;;  %6874 = vst [vmem:[#allocation6_spill] sm:$0xff] %v4842_v4  ;;  %v4852_v6 = vld [vmem:[%s6870_s25 + $0x14] sm:$0xf]  ;;  %v4857_v8 = vld [vmem:[%s6870_s25 + $0x18] sm:$0xf] }
   0xb   :  { %6875 = vst [vmem:[#allocation7_spill] sm:$0xff] %v4847_v5  ;;  %6876 = vst [vmem:[#allocation8_spill] sm:$0xff] %v4852_v6  ;;  %v4862_v9 = vld [vmem:[%s6870_s25 + $0x1c] sm:$0xf]  ;;  %v4867_v10 = vld [vmem:[%s6870_s25 + $0x20] sm:$0xf] }
   0xc   :  { %6877 = vst [vmem:[#allocation9_spill] sm:$0xff] %v4857_v8  ;;  %6878 = vst [vmem:[#allocation10_spill] sm:$0xff] %v4862_v9  ;;  %v4872_v11 = vld [vmem:[%s6870_s25 + $0x24] sm:$0xf]  ;;  %v4877_v12 = vld [vmem:[%s6870_s25 + $0x28] sm:$0xf] }
   0xd   :  { %6879 = vst [vmem:[#allocation11_spill] sm:$0xff] %v4867_v10  ;;  %6880 = vst [vmem:[#allocation12_spill] sm:$0xff] %v4872_v11  ;;  %v4882_v13 = vld [vmem:[%s6870_s25 + $0x2c] sm:$0xf]  ;;  %v4887_v14 = vld [vmem:[%s6870_s25 + $0x30] sm:$0xf] }
   0xe   :  { %6881 = vst [vmem:[#allocation13_spill] sm:$0xff] %v4877_v12  ;;  %6882 = vst [vmem:[#allocation14_spill] sm:$0xff] %v4882_v13  ;;  %v4892_v15 = vld [vmem:[%s6870_s25 + $0x34] sm:$0xf]  ;;  %v4897_v16 = vld [vmem:[%s6870_s25 + $0x38] sm:$0xf] }
   0xf   :  { %6883 = vst [vmem:[#allocation15_spill] sm:$0xff] %v4887_v14  ;;  %6884 = vst [vmem:[#allocation16_spill] sm:$0xff] %v4892_v15  ;;  %v4902_v17 = vld [vmem:[%s6870_s25 + $0x3c] sm:$0xf]  ;;  %v5003_v42 = vadd.s32 72, %v4914_v20  ;;  %v5008_v43 = vld [vmem:[%s6833_s3 + $0x68] sm:$0xff] }
  0x10   :  { %6885 = vst [vmem:[#allocation17_spill] sm:$0xff] %v4897_v16  ;;  %6886 = vst [vmem:[#allocation18_spill] sm:$0xff] %v4902_v17  ;;  %v5013_v44 = vld [vmem:[%s6833_s3 + $0x70] sm:$0xff]  ;;  %v5018_v45 = vld [vmem:[%s6833_s3 + $0x78] sm:$0xff]  ;;  %v5021_v46 = vadd.s32 80, %v4914_v20  ;;  %v5024_v47 = vadd.s32 88, %v4914_v20 }
  0x11   :  { %6898 = vst [vmem:[#allocation30_spill] sm:$0xff] %v4955_v30  ;;  %6899 = vst [vmem:[#allocation31_spill] sm:$0xff] %v4960_v31  ;;  %v5027_v48 = vadd.s32 96, %v4914_v20  ;;  %v5032_v49 = vld [vmem:[%s6834_s4] sm:$0xff]  ;;  %v5037_v50 = vld [vmem:[%s6834_s4 + $0x8] sm:$0xff]  ;;  %v5045_v52 = vadd.s32 104, %v4914_v20 }
  0x12   :  { %6900 = vst [vmem:[#allocation32_spill] sm:$0xff] %v4965_v32  ;;  %6901 = vst [vmem:[#allocation33_spill] sm:$0xff] %v4970_v33  ;;  %v5042_v51 = vld [vmem:[%s6834_s4 + $0x10] sm:$0xff]  ;;  %v5048_v53 = vadd.s32 112, %v4914_v20  ;;  %v5051_v54 = vadd.s32 120, %v4914_v20  ;;  %v5056_v55 = vld [vmem:[%s6834_s4 + $0x18] sm:$0xff] }
  0x13   :  { %6902 = vst [vmem:[#allocation34_spill] sm:$0xff] %v4973_v34  ;;  %6903 = vst [vmem:[#allocation35_spill] sm:$0xff] %v4976_v35  ;;  %v5061_v56 = vld [vmem:[%s6834_s4 + $0x20] sm:$0xff]  ;;  %v5066_v57 = vld [vmem:[%s6834_s4 + $0x28] sm:$0xff] }
  0x14   :  { %6904 = vst [vmem:[#allocation36_spill] sm:$0xff] %v4979_v36  ;;  %6905 = vst [vmem:[#allocation37_spill] sm:$0xff] %v4984_v37  ;;  %v5071_v58 = vld [vmem:[%s6834_s4 + $0x30] sm:$0xff]  ;;  %v5076_v59 = vld [vmem:[%s6834_s4 + $0x38] sm:$0xff] }
  0x15   :  { %6906 = vst [vmem:[#allocation38_spill] sm:$0xff] %v4989_v38  ;;  %6907 = vst [vmem:[#allocation39_spill] sm:$0xff] %v4994_v39  ;;  %v5081_v60 = vld [vmem:[%s6834_s4 + $0x40] sm:$0xff]  ;;  %v5086_v61 = vld [vmem:[%s6834_s4 + $0x48] sm:$0xff]  ;;  %v5223_v39 = vmov 0.0   ;;  %v5225_v38 = vmov 0.0  }
  0x16   :  { %6908 = vst [vmem:[#allocation40_spill] sm:$0xff] %v4997_v40  ;;  %6909 = vst [vmem:[#allocation41_spill] sm:$0xff] %v5000_v41  ;;  %v5091_v62 = vld [vmem:[%s6834_s4 + $0x50] sm:$0xff]  ;;  %v5096_v63 = vld [vmem:[%s6834_s4 + $0x58] sm:$0xff] }
  0x17   :  { %6910 = vst [vmem:[#allocation42_spill] sm:$0xff] %v5003_v42  ;;  %6911 = vst [vmem:[#allocation43_spill] sm:$0xff] %v5008_v43  ;;  %v5101_v0 = vld [vmem:[%s6834_s4 + $0x60] sm:$0xff]  ;;  %v5106_v7 = vld [vmem:[%s6834_s4 + $0x68] sm:$0xff] }
  0x18   :  { %6912 = vst [vmem:[#allocation44_spill] sm:$0xff] %v5013_v44  ;;  %6913 = vst [vmem:[#allocation45_spill] sm:$0xff] %v5018_v45  ;;  %v144_v42 = vld [vmem:[%s6836_s5 + $0x20] sm:$0xff]   ;;  %v145_v41 = vld [vmem:[%s6836_s5 + $0x28] sm:$0xff]  }
  0x19   :  { %6914 = vst [vmem:[#allocation46_spill] sm:$0xff] %v5021_v46  ;;  %6915 = vst [vmem:[#allocation47_spill] sm:$0xff] %v5024_v47  ;;  %v142_v47 = vld [vmem:[%s6836_s5 + $0x10] sm:$0xff]   ;;  %v143_v46 = vld [vmem:[%s6836_s5 + $0x18] sm:$0xff]  }
  0x1a   :  { %6916 = vst [vmem:[#allocation48_spill] sm:$0xff] %v5027_v48  ;;  %6917 = vst [vmem:[#allocation49_spill] sm:$0xff] %v5032_v49  ;;  %v136_v49 = vld [vmem:[%s6835_s0 + $0x60] sm:$0xff]   ;;  %v141_v48 = vld [vmem:[%s6836_s5 + $0x8] sm:$0xff]  }
  0x1b   :  { %6918 = vst [vmem:[#allocation50_spill] sm:$0xff] %v5037_v50  ;;  %6919 = vst [vmem:[#allocation51_spill] sm:$0xff] %v5042_v51  ;;  %v134_v50 = vld [vmem:[%s6835_s0 + $0x50] sm:$0xff]   ;;  %v137_v51 = vld [vmem:[%s6835_s0 + $0x68] sm:$0xff]  }
  0x1c   :  { %6920 = vst [vmem:[#allocation52_spill] sm:$0xff] %v5045_v52  ;;  %6921 = vst [vmem:[#allocation53_spill] sm:$0xff] %v5048_v53  ;;  %v139_v53 = vld [vmem:[%s6835_s0 + $0x78] sm:$0xff]   ;;  %v140_v52 = vld [vmem:[%s6836_s5] sm:$0xff]  }
  0x1d   :  { %6922 = vst [vmem:[#allocation54_spill] sm:$0xff] %v5051_v54  ;;  %6923 = vst [vmem:[#allocation55_spill] sm:$0xff] %v5056_v55  ;;  %v135_v55 = vld [vmem:[%s6835_s0 + $0x58] sm:$0xff]   ;;  %v138_v54 = vld [vmem:[%s6835_s0 + $0x70] sm:$0xff]  }
  0x1e   :  { %6924 = vst [vmem:[#allocation56_spill] sm:$0xff] %v5061_v56  ;;  %6925 = vst [vmem:[#allocation57_spill] sm:$0xff] %v5066_v57  ;;  %v132_v56 = vld [vmem:[%s6835_s0 + $0x40] sm:$0xff]   ;;  %v133_v57 = vld [vmem:[%s6835_s0 + $0x48] sm:$0xff]  }
  0x1f   :  { %6926 = vst [vmem:[#allocation58_spill] sm:$0xff] %v5071_v58  ;;  %6927 = vst [vmem:[#allocation59_spill] sm:$0xff] %v5076_v59  ;;  %v130_v58 = vld [vmem:[%s6835_s0 + $0x30] sm:$0xff]   ;;  %v131_v59 = vld [vmem:[%s6835_s0 + $0x38] sm:$0xff]  }
  0x20   :  { %6928 = vst [vmem:[#allocation60_spill] sm:$0xff] %v5081_v60  ;;  %6929 = vst [vmem:[#allocation61_spill] sm:$0xff] %v5086_v61  ;;  %v5111_v60 = vld [vmem:[%s6834_s4 + $0x70] sm:$0xff]  ;;  %v129_v61 = vld [vmem:[%s6835_s0 + $0x28] sm:$0xff]  }
  0x21   :  { %6930 = vst [vmem:[#allocation62_spill] sm:$0xff] %v5091_v62  ;;  %6931 = vst [vmem:[#allocation63_spill] sm:$0xff] %v5096_v63  ;;  %v5116_v62 = vld [vmem:[%s6834_s4 + $0x78] sm:$0xff]  ;;  %v5121_v63 = vld [vmem:[%s6835_s0] sm:$0xff]  }
  0x22   :  { %6932 = vst [vmem:[#allocation64_spill] sm:$0xff] %v5101_v0  ;;  %6933 = vst [vmem:[#allocation65_spill] sm:$0xff] %v5106_v7  ;;  %v5126_v0 = vld [vmem:[%s6835_s0 + $0x8] sm:$0xff]   ;;  %v5131_v7 = vld [vmem:[%s6835_s0 + $0x10] sm:$0xff]  }
  0x23   :  { %6934 = vst [vmem:[#allocation66_spill] sm:$0xff] %v5111_v60  ;;  %6935 = vst [vmem:[#allocation67_spill] sm:$0xff] %v5116_v62  ;;  %v127_v60 = vld [vmem:[%s6835_s0 + $0x18] sm:$0xff]   ;;  %v128_v62 = vld [vmem:[%s6835_s0 + $0x20] sm:$0xff]  }
  0x24   :  { %v146_v40 = vld [vmem:[%s6836_s5 + $0x30] sm:$0xff]   ;;  %v147_v36 = vld [vmem:[%s6836_s5 + $0x38] sm:$0xff]   ;;  %v148_v35 = vld [vmem:[%s6836_s5 + $0x40] sm:$0xff]  }
  0x25   :  { %v149_v34 = vld [vmem:[%s6836_s5 + $0x48] sm:$0xff]   ;;  %v150_v30 = vld [vmem:[%s6836_s5 + $0x50] sm:$0xff]   ;;  %v151_v29 = vld [vmem:[%s6836_s5 + $0x58] sm:$0xff]  }
  0x26   :  { %v152_v28 = vld [vmem:[%s6836_s5 + $0x60] sm:$0xff]   ;;  %v153_v21 = vld [vmem:[%s6836_s5 + $0x68] sm:$0xff]   ;;  %v154_v45 = vld [vmem:[%s6836_s5 + $0x70] sm:$0xff]  }
  0x27   :  { %v155_v44 = vld [vmem:[%s6836_s5 + $0x78] sm:$0xff]   ;;  %v156_v43 = vld [vmem:[%s6837_s6] sm:$0x1]   ;;  %s5296_s5 = smov 0  }
  0x28 LB: > { %6936 = vst [vmem:[#allocation68_spill] sm:$0xff] %v4574_v39  ;;  %6937 = vst [vmem:[#allocation69_spill] sm:$0xff] %v4578_v38  ;;  %v245_v39 = vpack.c.bf16 %v4642_v48, %v4646_v52  ;;  %v246_v38 = vpack.c.bf16 %v4634_v46, %v4638_v47  ;;  %v247_v37 = vpack.c.bf16 %v4626_v41, %v4630_v42  ;;  %v6941_v2 = vld [vmem:[#allocation4_spill] sm:$0xff]  ;;  %v6942_v1 = vld [vmem:[#allocation3_spill] sm:$0xff]  ;;  %s3039_s6 = sshll.u32 %s4714_s5, 7  ;;  %vm1035_vm0 = vcmask 64512   ;;  %s233_s25 = scalar_lea.vmem %s6823_s8, %s4714_s5  ;;  %s4714_s5 = sphi %s5296_s5, %s7079_s5   ;;  %v4710_v63 = vphi %v5121_v63, %v6306_v63   ;;  %v4706_v0 = vphi %v5126_v0, %v7078_v0   ;;  %v4702_v7 = vphi %v5131_v7, %v6317_v7   ;;  %v4698_v60 = vphi %v127_v60, %v6315_v60   ;;  %v4694_v62 = vphi %v128_v62, %v7077_v62   ;;  %v4690_v61 = vphi %v129_v61, %v6326_v61   ;;  %v4686_v58 = vphi %v130_v58, %v6339_v58   ;;  %v4682_v59 = vphi %v131_v59, %v6337_v59   ;;  %v4678_v56 = vphi %v132_v56, %v6350_v56   ;;  %v4674_v57 = vphi %v133_v57, %v6348_v57   ;;  %v4670_v50 = vphi %v134_v50, %v6360_v50   ;;  %v4666_v55 = vphi %v135_v55, %v6358_v55   ;;  %v4662_v49 = vphi %v136_v49, %v6371_v49   ;;  %v4658_v51 = vphi %v137_v51, %v6369_v51   ;;  %v4654_v54 = vphi %v138_v54, %v6378_v54   ;;  %v4650_v53 = vphi %v139_v53, %v6380_v53   ;;  %v4646_v52 = vphi %v140_v52, %v6198_v52   ;;  %v4642_v48 = vphi %v141_v48, %v6192_v48   ;;  %v4638_v47 = vphi %v142_v47, %v6210_v47   ;;  %v4634_v46 = vphi %v143_v46, %v6204_v46   ;;  %v4630_v42 = vphi %v144_v42, %v6222_v42   ;;  %v4626_v41 = vphi %v145_v41, %v6216_v41   ;;  %v4622_v40 = vphi %v146_v40, %v6234_v40   ;;  %v4618_v36 = vphi %v147_v36, %v6228_v36   ;;  %v4614_v35 = vphi %v148_v35, %v6246_v35   ;;  %v4610_v34 = vphi %v149_v34, %v6240_v34   ;;  %v4606_v30 = vphi %v150_v30, %v6258_v30   ;;  %v4602_v29 = vphi %v151_v29, %v6252_v29   ;;  %v4598_v28 = vphi %v152_v28, %v6270_v28   ;;  %v4594_v21 = vphi %v153_v21, %v6264_v21   ;;  %v4590_v45 = vphi %v154_v45, %v6277_v45   ;;  %v4586_v44 = vphi %v155_v44, %v6284_v44   ;;  %v4582_v43 = vphi %v156_v43, %v6287_v43   ;;  %v4578_v38 = vphi %v5225_v38, %v7076_v38   ;;  %v4574_v39 = vphi %v5223_v39, %v7075_v39  }
  0x29   : > { %6938 = vst [vmem:[#allocation70_spill] sm:$0xff] %v4582_v43  ;;  %6939 = vst [vmem:[#allocation71_spill] sm:$0xff] %v4586_v44  ;;  %v248_v33 = vpack.c.bf16 %v4618_v36, %v4622_v40  ;;  %v2942_v32 = vcombine.low %v6942_v1, %v6941_v2  ;;  %v249_v31 = vpack.c.bf16 %v4610_v34, %v4614_v35  ;;  %v6943_v4 = vld [vmem:[#allocation6_spill] sm:$0xff]  ;;  %v6944_v3 = vld [vmem:[#allocation5_spill] sm:$0xff]  ;;  %s5448_s3 = scalar_lea.vmem %s6822_s7, %s3039_s6  ;;  %vm4727_vm1 = vmmov 0   ;;  %s235_s17 = scalar_lea.vmem %s6824_s9, %s4714_s5 }
  0x2a   : > { %6940 = vst [vmem:[#allocation72_spill] sm:$0xff] %v4590_v45  ;;  %3340 = vmatprep.subr.bf16.mxu0 %v245_v39  ;;  %v5392_v27 = vpack.c.bf16 %v4698_v60, %v4702_v7  ;;  %v5399_v1 = vpack.c.bf16 %v4690_v61, %v4694_v62  ;;  %v5415_v60 = vpack.c.bf16 %v4666_v55, %v4670_v50  ;;  %v6945_v6 = vld [vmem:[#allocation8_spill] sm:$0xff]  ;;  %v6946_v5 = vld [vmem:[#allocation7_spill] sm:$0xff]  ;;  %v6947_v9 = vld [vmem:[#allocation10_spill] sm:$0xff]  ;;  %s6390_s18 = smov 0  }
  0x2b   : > { %3341 = vmatpush3.bf16.msra.mxu0 %v245_v39  ;;  %3356 = vmatprep.mubr.bf16.mxu0 %v2942_v32  ;;  %v5390_v39 = vpack.c.bf16 %v4706_v0, %v4710_v63  ;;  %v5429_v50 = vpack.c.bf16 %v4650_v53, %v4654_v54  ;;  %v6948_v8 = vld [vmem:[#allocation9_spill] sm:$0xff]  ;;  %v6949_v11 = vld [vmem:[#allocation12_spill] sm:$0xff]  ;;  %v6950_v10 = vld [vmem:[#allocation11_spill] sm:$0xff]  ;;  %v4724_v54 = vmov 0  }
  0x2c   : > { %3342 = vmatprep.subr.bf16.mxu0 %v246_v38  ;;  %3388 = vmatprep.mubr.bf16.mxu1 %v2942_v32  ;;  %v251_v32 = vpack.c.bf16 %v4594_v21, %v4598_v28  ;;  %v2945_v55 = vcombine.low %v6948_v8, %v6947_v9  ;;  %v6951_v13 = vld [vmem:[#allocation14_spill] sm:$0xff]  ;;  %v6952_v12 = vld [vmem:[#allocation13_spill] sm:$0xff]  ;;  %v6953_v15 = vld [vmem:[#allocation16_spill] sm:$0xff] }
  0x2d   : > { %3372 = vmatprep.subr.bf16.mxu1 %v5390_v39  ;;  %v6954_v14 = vld [vmem:[#allocation15_spill] sm:$0xff]  ;;  %v6955_v17 = vld [vmem:[#allocation18_spill] sm:$0xff]  ;;  %v6956_v16 = vld [vmem:[#allocation17_spill] sm:$0xff]  ;;  %4330 = vset.pattern.permute.xlu1 %v4724_v54 }
  0x2e   : > { %3373 = vmatpush3.bf16.msra.mxu1 %v5390_v39  ;;  %v2949_v53 = vcombine.low %v6956_v16, %v6955_v17  ;;  %4329 = vset.pattern.permute.xlu0 %v4724_v54  ;;  %v4331_v61 = vld [vmem:[%s5448_s3 + $0x40] sm:$0xff]   ;;  %v4333_v63 = vld [vmem:[%s5448_s3 + $0x48] sm:$0xff]   ;;  %v4335_v7 = vld [vmem:[%s5448_s3 + $0x50] sm:$0xff]  }
  0x2f   : > { %3343 = vmatpush3.bf16.msra.mxu0 %v246_v38  ;;  %v250_v38 = vpack.c.bf16 %v4602_v29, %v4606_v30  ;;  %3374 = vmatprep.subr.bf16.mxu1 %v5392_v27  ;;  %v4332_v62 = vld [vmem:[%s5448_s3] sm:$0xff]   ;;  %v4334_v0 = vld [vmem:[%s5448_s3 + $0x8] sm:$0xff]   ;;  %v6959_v22 = vld [vmem:[#allocation22_spill] sm:$0xff] }
  0x30   : > { %3344 = vmatprep.subr.bf16.mxu0 %v247_v37  ;;  %v6957_v18 = vld [vmem:[#allocation19_spill] sm:$0xff]  ;;  %v6958_v19 = vld [vmem:[#allocation20_spill] sm:$0xff]  ;;  %v6963_v25 = vld [vmem:[#allocation25_spill] sm:$0xff] }
  0x31   : > { %v6960_v23 = vld [vmem:[#allocation23_spill] sm:$0xff]  ;;  %v6961_v24 = vld [vmem:[#allocation24_spill] sm:$0xff]  ;;  %v6964_v26 = vld [vmem:[#allocation26_spill] sm:$0xff] }
  0x32   : > { %3375 = vmatpush3.bf16.msra.mxu1 %v5392_v27 }
  0x33   : > { %3345 = vmatpush3.bf16.msra.mxu0 %v247_v37  ;;  %3376 = vmatprep.subr.bf16.mxu1 %v5399_v1  ;;  %v252_v37 = vpack.c.bf16 %v4586_v44, %v4590_v45 }
  0x34   : > { %3346 = vmatprep.subr.bf16.mxu0 %v248_v33 }
  0x36   : > { %3377 = vmatpush3.bf16.msra.mxu1 %v5399_v1 }
  0x37   : > { %3347 = vmatpush3.bf16.msra.mxu0 %v248_v33  ;;  %v5405_v33 = vpack.c.bf16 %v4682_v59, %v4686_v58  ;;  %v2943_v58 = vcombine.low %v6944_v3, %v6943_v4  ;;  %v2944_v59 = vcombine.low %v6946_v5, %v6945_v6 }
  0x38   : > { %3348 = vmatprep.subr.bf16.mxu0 %v249_v31 }
  0x39   : > { %3378 = vmatprep.subr.bf16.mxu1 %v5405_v33 }
  0x3a   : > { %3379 = vmatpush3.bf16.msra.mxu1 %v5405_v33 }
  0x3b   : > { %3349 = vmatpush3.bf16.msra.mxu0 %v249_v31  ;;  %v5411_v31 = vpack.c.bf16 %v4674_v57, %v4678_v56  ;;  %v5423_v56 = vpack.c.bf16 %v4658_v51, %v4662_v49  ;;  %v2946_v57 = vcombine.low %v6950_v10, %v6949_v11  ;;  %v2947_v49 = vcombine.low %v6952_v12, %v6951_v13 }
  0x3c   : > { %3350 = vmatprep.subr.bf16.mxu0 %v250_v38  ;;  %v2948_v51 = vcombine.low %v6954_v14, %v6953_v15 }
  0x3d   : > { %3380 = vmatprep.subr.bf16.mxu1 %v5411_v31 }
  0x3e   : > { %3381 = vmatpush3.bf16.msra.mxu1 %v5411_v31 }
  0x3f   : > { %3351 = vmatpush3.bf16.msra.mxu0 %v250_v38  ;;  %3382 = vmatprep.subr.bf16.mxu1 %v5415_v60  ;;  %v4336_v38 = vld [vmem:[%s5448_s3 + $0x10] sm:$0xff]  }
  0x40   : > { %3352 = vmatprep.subr.bf16.mxu0 %v251_v32 }
  0x42   : > { %3383 = vmatpush3.bf16.msra.mxu1 %v5415_v60 }
  0x43   : > { %3353 = vmatpush3.bf16.msra.mxu0 %v251_v32  ;;  %3384 = vmatprep.subr.bf16.mxu1 %v5423_v56 }
  0x44   : > { %3354 = vmatprep.subr.bf16.mxu0 %v252_v37 }
  0x46   : > { %3385 = vmatpush3.bf16.msra.mxu1 %v5423_v56 }
  0x47   : > { %3355 = vmatpush3.bf16.msra.mxu0 %v252_v37  ;;  %3386 = vmatprep.subr.bf16.mxu1 %v5429_v50 }
  0x48   : > { %3072 = vmatprep.subr.bf16.mxu0 %v4331_v61 }
  0x4a   : > { %3357 = vmatmul.mubr.bf16.vlgmr.msra.gmra.mrb[0].mxu0 %v2943_v58  ;;  %3387 = vmatpush3.bf16.msra.mxu1 %v5429_v50 }
  0x4b   : > { %3360 = vmatprep.mubr.bf16.mxu0 %v2944_v59  ;;  %3997 = vmatprep.subr.bf16.mxu1 %v4331_v61  ;;  %v4339_v61 = vld [vmem:[%s5448_s3 + $0x60] sm:$0xff]  }
  0x4c   : > { %3073 = vmatpush3.bf16.msra.mxu0 %v4332_v62 }
  0x4d   : > { %3389 = vmatmul.mubr.bf16.vlgmr.msra.gmra.mrb[0].mxu1 %v2943_v58  ;;  %3074 = vmatprep.subr.bf16.mxu0 %v4333_v63 }
  0x4e   : > { %3392 = vmatprep.mubr.bf16.mxu1 %v2944_v59  ;;  %4005 = vmatpush3.bf16.msra.mxu1 %v4332_v62  ;;  %v4340_v62 = vld [vmem:[%s5448_s3 + $0x20] sm:$0xff]  }
  0x4f   : > { %3998 = vmatprep.subr.bf16.mxu1 %v4333_v63 }
  0x50   : > { %3075 = vmatpush3.bf16.msra.mxu0 %v4334_v0 }
  0x51   : > { %3076 = vmatprep.subr.bf16.mxu0 %v4335_v7 }
  0x52   : > { %3361 = vmatmul.mubr.bf16.gmra.mrb[4].mxu0 %v2945_v55  ;;  %4006 = vmatpush3.bf16.msra.mxu1 %v4334_v0  ;;  %v4341_v0 = vld [vmem:[%s5448_s3 + $0x68] sm:$0xff]  }
  0x53   : > { %3364 = vmatprep.mubr.bf16.mxu0 %v2946_v57  ;;  %3999 = vmatprep.subr.bf16.mxu1 %v4335_v7 }
  0x54   : > { %3077 = vmatpush3.bf16.msra.mxu0 %v4336_v38 }
  0x55   : > { %3393 = vmatmul.mubr.bf16.gmra.mrb[4].mxu1 %v2945_v55 }
  0x56   : > { %3396 = vmatprep.mubr.bf16.mxu1 %v2946_v57  ;;  %4007 = vmatpush3.bf16.msra.mxu1 %v4336_v38  ;;  %v4337_v57 = vld [vmem:[%s5448_s3 + $0x58] sm:$0xff]  }
  0x57   : > { %3078 = vmatprep.subr.bf16.mxu0 %v4337_v57  ;;  %4000 = vmatprep.subr.bf16.mxu1 %v4337_v57 }
  0x5a   : > { %3365 = vmatmul.mubr.bf16.gmra.mrb[8].mxu0 %v2947_v49 }
  0x5b   : > { %3368 = vmatprep.mubr.bf16.mxu0 %v2948_v51 }
  0x5d   : > { %3397 = vmatmul.mubr.bf16.gmra.mrb[8].mxu1 %v2947_v49 }
  0x5e   : > { %3400 = vmatprep.mubr.bf16.mxu1 %v2948_v51  ;;  %v4338_v51 = vld [vmem:[%s5448_s3 + $0x18] sm:$0xff]  }
  0x5f   : > { %3079 = vmatpush3.bf16.msra.mxu0 %v4338_v51  ;;  %4008 = vmatpush3.bf16.msra.mxu1 %v4338_v51 }
  0x60   : > { %3080 = vmatprep.subr.bf16.mxu0 %v4339_v61  ;;  %4001 = vmatprep.subr.bf16.mxu1 %v4339_v61  ;;  %v4344_v61 = vld [vmem:[%s5448_s3 + $0x30] sm:$0xff]  }
  0x62   : > { %3369 = vmatmul.mubr.bf16.gmra.mrb[12].mxu0 %v2949_v53 }
  0x63   : > { %3081 = vmatpush3.bf16.msra.mxu0 %v4340_v62  ;;  %4009 = vmatpush3.bf16.msra.mxu1 %v4340_v62 }
  0x64   : > { %3082 = vmatprep.subr.bf16.mxu0 %v4341_v0  ;;  %4002 = vmatprep.subr.bf16.mxu1 %v4341_v0 }
  0x65   : > { %3401 = vmatmul.mubr.bf16.gmra.mrb[12].mxu1 %v2949_v53 }
 0x11d   : > { %v3358_v32 = vpop.f32.mrb[0].mxu0 }
 0x11e   : > { %v400_v37 = vmax.f32 %v3358_v32, 1.0  ;;  %v335_v58 = vpop.f32.mrb[1].mxu0 }
 0x11f   : > { %v398_v59 = vmax.f32 %v335_v58, 1.0  ;;  %v3359_v55 = vpop.f32.mrb[2].mxu0  ;;  %v4342_v58 = vld [vmem:[%s5448_s3 + $0x28] sm:$0xff]  }
 0x120   : > { %523 = vperm.xlu1 %4330, %v400_v37   ;;  %v338_v49 = vpop.f32.mrb[3].mxu0  ;;  %v401_v53 = vmax.f32 %v3359_v55, 1.0  ;;  %v5462_v57 = vpop.f32.mrb[0].mxu1  ;;  %3083 = vmatpush3.bf16.msra.mxu0 %v4342_v58 }
 0x121   : > { %513 = vperm.xlu0 %4329, %v398_v59   ;;  %v399_v54 = vmax.f32 %v338_v49, 1.0  ;;  %v5464_v51 = vpop.f32.mrb[1].mxu1  ;;  %4010 = vmatpush3.bf16.msra.mxu1 %v4342_v58 }
 0x124   : > { %528 = vperm.xlu1 %4330, %v401_v53   ;;  %v4343_v53 = vld [vmem:[%s5448_s3 + $0x70] sm:$0xff]  }
 0x125   : > { %518 = vperm.xlu0 %4329, %v399_v54   ;;  %v3362_v63 = vpop.f32.mrb[4].mxu0  ;;  %v5467_v54 = vpop.f32.mrb[2].mxu1  ;;  %3084 = vmatprep.subr.bf16.mxu0 %v4343_v53 }
 0x126   : > { %v351_v7 = vpop.f32.mrb[5].mxu0  ;;  %v404_v59 = vmax.f32 %v3362_v63, 1.0  ;;  %v5470_v0 = vpop.f32.mrb[3].mxu1  ;;  %3085 = vmatpush3.bf16.msra.mxu0 %v4344_v61  ;;  %4003 = vmatprep.subr.bf16.mxu1 %v4343_v53 }
 0x127   : > { %v402_v38 = vmax.f32 %v351_v7, 1.0  ;;  %v3363_v32 = vpop.f32.mrb[6].mxu0  ;;  %4011 = vmatpush3.bf16.msra.mxu1 %v4344_v61 }
 0x128   : > { %v354_v37 = vpop.f32.mrb[7].mxu0  ;;  %v405_v49 = vmax.f32 %v3363_v32, 1.0  ;;  %v4345_v32 = vld [vmem:[%s5448_s3 + $0x78] sm:$0xff]  }
 0x129   : > { %v403_v55 = vmax.f32 %v354_v37, 1.0  ;;  %533 = vperm.xlu0 %4329, %v402_v38   ;;  %3086 = vmatprep.subr.bf16.mxu0 %v4345_v32 }
 0x12a   : > { %4004 = vmatprep.subr.bf16.mxu1 %v4345_v32 }
 0x12b   : > { %538 = vperm.xlu1 %4330, %v403_v55   ;;  %v4346_v55 = vld [vmem:[%s5448_s3 + $0x38] sm:$0xff]  }
 0x12c   : > { %3087 = vmatpush3.bf16.msra.mxu0 %v4346_v55  ;;  %4012 = vmatpush3.bf16.msra.mxu1 %v4346_v55 }
 0x12d   : > { %543 = vperm.xlu0 %4329, %v404_v59   ;;  %v3366_v62 = vpop.f32.mrb[8].mxu0  ;;  %v5474_v59 = vpop.f32.mrb[4].mxu1 }
 0x12e   : > { %v367_v63 = vpop.f32.mrb[9].mxu0  ;;  %v408_v58 = vmax.f32 %v3366_v62, 1.0  ;;  %v5476_v4 = vpop.f32.mrb[5].mxu1 }
 0x12f   : > { %v406_v7 = vmax.f32 %v367_v63, 1.0  ;;  %548 = vperm.xlu1 %4330, %v405_v49   ;;  %v3367_v38 = vpop.f32.mrb[10].mxu0  ;;  %v5478_v53 = vpop.f32.mrb[6].mxu1 }
 0x130   : > { %v370_v37 = vpop.f32.mrb[11].mxu0  ;;  %v409_v3 = vmax.f32 %v3367_v38, 1.0  ;;  %v5480_v61 = vpop.f32.mrb[7].mxu1 }
 0x131   : > { %v407_v2 = vmax.f32 %v370_v37, 1.0  ;;  %553 = vperm.xlu0 %4329, %v406_v7   ;;  %v5482_v32 = vpop.f32.mrb[8].mxu1 }
 0x132   : > { %v5484_v38 = vpop.f32.mrb[9].mxu1 }
 0x133   : > { %558 = vperm.xlu1 %4330, %v407_v2   ;;  %v5486_v55 = vpop.f32.mrb[10].mxu1 }
 0x135   : > { %563 = vperm.xlu0 %4329, %v408_v58   ;;  %v3370_v49 = vpop.f32.mrb[12].mxu0  ;;  %v5488_v58 = vpop.f32.mrb[11].mxu1 }
 0x136   : > { %v383_v63 = vpop.f32.mrb[13].mxu0  ;;  %v412_v5 = vmax.f32 %v3370_v49, 1.0 }
 0x137   : > { %v410_v62 = vmax.f32 %v383_v63, 1.0  ;;  %568 = vperm.xlu1 %4330, %v409_v3   ;;  %v3371_v7 = vpop.f32.mrb[14].mxu0 }
 0x138   : > { %v386_v37 = vpop.f32.mrb[15].mxu0  ;;  %v413_v2 = vmax.f32 %v3371_v7, 1.0  ;;  %v5491_v3 = vpop.f32.mrb[12].mxu1 }
 0x139   : > { %v411_v6 = vmax.f32 %v386_v37, 1.0  ;;  %573 = vperm.xlu0 %4329, %v410_v62   ;;  %v5494_v49 = vpop.f32.mrb[13].mxu1  ;;  %v6840_v62 = vmov 0.0|0.0  }
 0x13a   : > { %v5496_v63 = vpop.f32.mrb[14].mxu1  ;;  %3813 = vmatprep.subr.bf16.mxu0 %v6840_v62 }
 0x13b   : > { %578 = vperm.xlu1 %4330, %v411_v6   ;;  %v5499_v6 = vpop.f32.mrb[15].mxu1 }
 0x13d   : > { %583 = vperm.xlu0 %4329, %v412_v5   ;;  %v6842_v5 = vsub.s32 0, %v4914_v20 }
 0x13f   : > { %588 = vperm.xlu1 %4330, %v413_v2   ;;  %v1016_v7 = vrot.slane %v4582_v43, %v6842_v5 }
 0x141   : > { %848 = vperm.xlu0 %4329, %v4646_v52   ;;  %v5516_v37 = vmul.f32 %v1016_v7, %v6957_v18 }
 0x143   : > { %853 = vperm.xlu1 %4330, %v4642_v48   ;;  %3404 = vmatprep.subr.mxu1 %v5516_v37 }
 0x145   : > { %858 = vperm.xlu0 %4329, %v4638_v47  }
 0x147   : > { %863 = vperm.xlu1 %4330, %v4634_v46  }
 0x149   : > { %868 = vperm.xlu0 %4329, %v4630_v42  }
 0x14b   : > { %873 = vperm.xlu1 %4330, %v4626_v41  }
 0x14d   : > { %878 = vperm.xlu0 %4329, %v4622_v40  }
 0x14f   : > { %883 = vperm.xlu1 %4330, %v4618_v36  }
 0x151   : > { %888 = vperm.xlu0 %4329, %v4614_v35  }
 0x153   : > { %893 = vperm.xlu1 %4330, %v4610_v34  }
 0x155   : > { %898 = vperm.xlu0 %4329, %v4606_v30  }
 0x157   : > { %903 = vperm.xlu1 %4330, %v4602_v29  }
 0x159   : > { %908 = vperm.xlu0 %4329, %v4598_v28  }
 0x15b   : > { %913 = vperm.xlu1 %4330, %v4594_v21  }
 0x15d   : > { %918 = vperm.xlu0 %4329, %v4590_v45  }
 0x15f   : > { %923 = vperm.xlu1 %4330, %v4586_v44  }
 0x19f   : > { %v524_v2 = vpop.permute.xlu1 %523 }
 0x1a0   : > { %v514_v62 = vpop.permute.xlu0 %513  ;;  %4347 = vrcp.f32 %v524_v2 }
 0x1a1   : > { %4349 = vrcp.f32 %v514_v62 }
 0x1a3   : > { %v529_v5 = vpop.permute.xlu1 %528 }
 0x1a4   : > { %4351 = vrcp.f32 %v529_v5  ;;  %v519_v8 = vpop.permute.xlu0 %518 }
 0x1a5   : > { %4353 = vrcp.f32 %v519_v8 }
 0x1a8   : > { %v534_v7 = vpop.permute.xlu0 %533 }
 0x1a9   : > { %4355 = vrcp.f32 %v534_v7 }
 0x1aa   : > { %v539_v9 = vpop.permute.xlu1 %538  ;;  %v4348_v10 = vpop.eup %4347 }
 0x1ab   : > { %4357 = vrcp.f32 %v539_v9  ;;  %v4350_v12 = vpop.eup %4349  ;;  %v596_v16 = vmul.f32 %v4348_v10, %v5462_v57 }
 0x1ac   : > { %v544_v11 = vpop.permute.xlu0 %543  ;;  %v592_v62 = vmul.f32 %v4350_v12, %v5464_v51 }
 0x1ad   : > { %4359 = vrcp.f32 %v544_v11 }
 0x1ae   : > { %v4352_v13 = vpop.eup %4351  ;;  %v549_v14 = vpop.permute.xlu1 %548 }
 0x1af   : > { %v4354_v15 = vpop.eup %4353  ;;  %v598_v2 = vmul.f32 %v4352_v13, %v5467_v54  ;;  %4361 = vrcp.f32 %v549_v14 }
 0x1b0   : > { %v594_v8 = vmul.f32 %v4354_v15, %v5470_v0  ;;  %v554_v5 = vpop.permute.xlu0 %553 }
 0x1b1   : > { %v624_v7 = vpack.c.bf16 %v598_v2, %v596_v16  ;;  %4363 = vrcp.f32 %v554_v5 }
 0x1b2   : > { %v623_v9 = vpack.c.bf16 %v594_v8, %v592_v62  ;;  %v559_v17 = vpop.permute.xlu1 %558 }
 0x1b3   : > { %v4356_v18 = vpop.eup %4355  ;;  %4365 = vrcp.f32 %v559_v17 }
 0x1b4   : > { %765 = vmatprep.mubr.bf16.mxu0 %v623_v9  ;;  %v564_v11 = vpop.permute.xlu0 %563  ;;  %v600_v10 = vmul.f32 %v4356_v18, %v5476_v4 }
 0x1b5   : > { %v4358_v43 = vpop.eup %4357  ;;  %4367 = vrcp.f32 %v564_v11  ;;  %766 = vmatmul.mubr.bf16.vlgmr.msra.gmra.mrb[16].mxu0 %v5390_v39 }
 0x1b6   : > { %v602_v13 = vmul.f32 %v4358_v43, %v5480_v61  ;;  %773 = vmatprep.mubr.bf16.mxu0 %v624_v7  ;;  %v569_v12 = vpop.permute.xlu1 %568 }
 0x1b7   : > { %v4360_v14 = vpop.eup %4359  ;;  %4369 = vrcp.f32 %v569_v12 }
 0x1b8   : > { %v625_v15 = vpack.c.bf16 %v602_v13, %v600_v10  ;;  %v574_v16 = vpop.permute.xlu0 %573  ;;  %v604_v17 = vmul.f32 %v4360_v14, %v5474_v59 }
 0x1b9   : > { %v4362_v57 = vpop.eup %4361  ;;  %4371 = vrcp.f32 %v574_v16 }
 0x1ba   : > { %v606_v51 = vmul.f32 %v4362_v57, %v5478_v53  ;;  %v579_v54 = vpop.permute.xlu1 %578 }
 0x1bb   : > { %v4364_v0 = vpop.eup %4363  ;;  %4373 = vrcp.f32 %v579_v54 }
 0x1bc   : > { %v626_v39 = vpack.c.bf16 %v606_v51, %v604_v17  ;;  %v584_v2 = vpop.permute.xlu0 %583  ;;  %v608_v18 = vmul.f32 %v4364_v0, %v5484_v38 }
 0x1bd   : > { %v4366_v4 = vpop.eup %4365  ;;  %4375 = vrcp.f32 %v584_v2  ;;  %774 = vmatmul.mubr.bf16.gmra.mrb[20].mxu0 %v5392_v27 }
 0x1be   : > { %v610_v43 = vmul.f32 %v4366_v4, %v5488_v58  ;;  %781 = vmatprep.mubr.bf16.mxu0 %v625_v15  ;;  %v589_v61 = vpop.permute.xlu1 %588 }
 0x1bf   : > { %v4368_v62 = vpop.eup %4367  ;;  %4377 = vrcp.f32 %v589_v61 }
 0x1c0   : > { %v627_v59 = vpack.c.bf16 %v610_v43, %v608_v18  ;;  %v5535_v8 = vpop.permute.xlu0 %848  ;;  %v612_v5 = vmul.f32 %v4368_v62, %v5482_v32  ;;  %v6966_v62 = vld [vmem:[#allocation31_spill] sm:$0xff] }
 0x1c1   : > { %v4370_v53 = vpop.eup %4369  ;;  %v5543_v27 = vmul.f32 %v5535_v8, %v6958_v19 }
 0x1c2   : > { %v614_v7 = vmul.f32 %v4370_v53, %v5486_v55  ;;  %v5539_v9 = vpop.permute.xlu1 %853 }
 0x1c3   : > { %v4372_v11 = vpop.eup %4371  ;;  %v5547_v38 = vmul.f32 %v5539_v9, %v6959_v22  ;;  %v5740_v22 = vld [vmem:[%s235_s17] ss:$0 sm:$0xff] }
 0x1c4   : > { %v628_v58 = vpack.c.bf16 %v614_v7, %v612_v5  ;;  %v5549_v10 = vpop.permute.xlu0 %858  ;;  %v616_v55 = vmul.f32 %v4372_v11, %v5494_v49  ;;  %v6967_v7 = vld [vmem:[#allocation32_spill] sm:$0xff] }
 0x1c5   : > { %v4374_v13 = vpop.eup %4373  ;;  %v3814_v32 = vpack.c.bf16 %v5547_v38, %v5543_v27  ;;  %782 = vmatmul.mubr.bf16.gmra.mrb[24].mxu0 %v5399_v1  ;;  %v5560_v16 = vmul.f32 %v5549_v10, %v6960_v23  ;;  %v6962_v1 = vmov 0.0|0.0  }
 0x1c6   : > { %v618_v12 = vmul.f32 %v4374_v13, %v5499_v6  ;;  %789 = vmatprep.mubr.bf16.mxu0 %v626_v39  ;;  %v5556_v14 = vpop.permute.xlu1 %863  ;;  %v6968_v13 = vld [vmem:[#allocation33_spill] sm:$0xff] }
 0x1c7   : > { %v4376_v15 = vpop.eup %4375  ;;  %v5564_v57 = vmul.f32 %v5556_v14, %v6961_v24  ;;  %3815 = vmatpush3.bf16.msra.mxu0 %v3814_v32 }
 0x1c8   : > { %v629_v17 = vpack.c.bf16 %v618_v12, %v616_v55  ;;  %v5566_v51 = vpop.permute.xlu0 %868  ;;  %3816 = vmatprep.subr.bf16.mxu0 %v6962_v1  ;;  %v620_v54 = vmul.f32 %v4376_v15, %v5491_v3 }
 0x1c9   : > { %v4378_v49 = vpop.eup %4377  ;;  %v3817_v6 = vpack.c.bf16 %v5564_v57, %v5560_v16  ;;  %v5577_v2 = vmul.f32 %v5566_v51, %v6963_v25 }
 0x1ca   : > { %v622_v0 = vmul.f32 %v4378_v49, %v5496_v63  ;;  %813 = vmatprep.mubr.bf16.mxu1 %v629_v17  ;;  %v5573_v39 = vpop.permute.xlu1 %873  ;;  %v6969_v17 = vld [vmem:[#allocation37_spill] sm:$0xff] }
 0x1cb   : > { %v5581_v4 = vmul.f32 %v5573_v39, %v6964_v26  ;;  %814 = vmatmul.mubr.bf16.vlgmr.msra.gmra.mrb[16].mxu1 %v5423_v56  ;;  %3818 = vmatpush3.bf16.msra.mxu0 %v3817_v6  ;;  %v6965_v56 = vld [vmem:[#allocation27_spill] sm:$0xff] }
 0x1cc   : > { %v630_v18 = vpack.c.bf16 %v622_v0, %v620_v54  ;;  %v5584_v43 = vpop.permute.xlu0 %878  ;;  %3819 = vmatprep.subr.bf16.mxu0 %v6962_v1  ;;  %3405 = vmatpush3.msra.mxu1 %v5516_v37 }
 0x1cd   : > { %v3820_v3 = vpack.c.bf16 %v5581_v4, %v5577_v2  ;;  %790 = vmatmul.mubr.bf16.gmra.mrb[28].mxu0 %v5405_v33  ;;  %3797 = vmatprep.subr.bf16.mxu1 %v6962_v1  ;;  %v5596_v61 = vmul.f32 %v5584_v43, %v6965_v56 }
 0x1ce   : > { %797 = vmatprep.mubr.bf16.mxu0 %v627_v59  ;;  %821 = vmatprep.mubr.bf16.mxu1 %v630_v18  ;;  %v5592_v63 = vpop.permute.xlu1 %883 }
 0x1cf   : > { %v5600_v53 = vmul.f32 %v5592_v63, %v6966_v62  ;;  %3821 = vmatpush3.bf16.msra.mxu0 %v3820_v3  ;;  %v6972_v3 = vld [vmem:[#allocation43_spill] sm:$0xff] }
 0x1d0   : > { %v5602_v5 = vpop.permute.xlu0 %888  ;;  %3822 = vmatprep.subr.bf16.mxu0 %v6962_v1 }
 0x1d1   : > { %v3823_v33 = vpack.c.bf16 %v5600_v53, %v5596_v61  ;;  %v5611_v11 = vmul.f32 %v5602_v5, %v6967_v7 }
 0x1d2   : > { %v5607_v59 = vpop.permute.xlu1 %893 }
 0x1d3   : > { %v5615_v32 = vmul.f32 %v5607_v59, %v6968_v13  ;;  %822 = vmatmul.mubr.bf16.gmra.mrb[20].mxu1 %v5429_v50  ;;  %3824 = vmatpush3.bf16.msra.mxu0 %v3823_v33  ;;  %v6970_v50 = vld [vmem:[#allocation38_spill] sm:$0xff]  ;;  %v6844_v33 = vmov 1.0|1.0  }
 0x1d4   : > { %v5618_v55 = vpop.permute.xlu0 %898  ;;  %3406 = vmatprep.mubr.msk.f32.mxu1 %vm1035_vm0, %v5543_v27  ;;  %3825 = vmatprep.subr.bf16.mxu0 %v6962_v1 }
 0x1d5   : > { %v3826_v12 = vpack.c.bf16 %v5615_v32, %v5611_v11  ;;  %798 = vmatmul.mubr.bf16.gmra.mrb[32].mxu0 %v5411_v31  ;;  %v5630_v49 = vmul.f32 %v5618_v55, %v6969_v17  ;;  %v6973_v17 = vld [vmem:[#allocation44_spill] sm:$0xff] }
 0x1d6   : > { %805 = vmatprep.mubr.bf16.mxu0 %v628_v58  ;;  %v5626_v15 = vpop.permute.xlu1 %903  ;;  %v6971_v58 = vld [vmem:[#allocation39_spill] sm:$0xff] }
 0x1d7   : > { %v5634_v6 = vmul.f32 %v5626_v15, %v6970_v50  ;;  %3827 = vmatpush3.bf16.msra.mxu0 %v3826_v12  ;;  %v6847_v12 = vmov 0.0  }
 0x1d8   : > { %v5636_v54 = vpop.permute.xlu0 %908  ;;  %3828 = vmatprep.subr.bf16.mxu0 %v6962_v1 }
 0x1d9   : > { %v3829_v0 = vpack.c.bf16 %v5634_v6, %v5630_v49  ;;  %v5645_v18 = vmul.f32 %v5636_v54, %v6971_v58 }
 0x1da   : > { %v5641_v31 = vpop.permute.xlu1 %913 }
 0x1db   : > { %v5649_v56 = vmul.f32 %v5641_v31, %v6972_v3  ;;  %3407 = vmatmul.mubr.msk.f32.vlgmr.msra.gmra.mrb[24].mxu1 %vm1035_vm0, %v5547_v38  ;;  %3830 = vmatpush3.bf16.msra.mxu0 %v3829_v0  ;;  %v6974_v0 = vld [vmem:[#allocation45_spill] sm:$0xff]  ;;  %v6846_v3 = vmov 1.0  }
 0x1dc   : > { %v5653_v62 = vpop.permute.xlu0 %918  ;;  %3409 = vmatprep.mubr.msk.f32.mxu1 %vm1035_vm0, %v5560_v16  ;;  %3798 = vmatpush3.bf16.msra.mxu1 %v6844_v33 }
 0x1dd   : > { %v3832_v7 = vpack.c.bf16 %v5649_v56, %v5645_v18  ;;  %806 = vmatmul.mubr.bf16.gmra.mrb[36].mxu0 %v5415_v60  ;;  %3831 = vmatprep.subr.bf16.mxu0 %v6962_v1  ;;  %v5669_v50 = vmul.f32 %v5653_v62, %v6973_v17  ;;  %v5732_v17 = vld [vmem:[%s233_s25] ss:$0 sm:$0xff] }
 0x1de   : > { %v5662_v13 = vpop.permute.xlu1 %923  ;;  %3799 = vmatprep.subr.bf16.mxu1 %v6962_v1  ;;  %3523 = vmatprep.mubr.msk.f32.mxu0 %vm4727_vm1, %v6847_v12 }
 0x1df   : > { %v5673_v58 = vmul.f32 %v5662_v13, %v6974_v0  ;;  %3410 = vmatmul.mubr.msk.f32.gmra.mrb[26].mxu1 %vm1035_vm0, %v5564_v57  ;;  %3833 = vmatpush3.bf16.msra.mxu0 %v3832_v7 }
 0x1e0   : > { %3412 = vmatprep.mubr.msk.f32.mxu1 %vm1035_vm0, %v5577_v2  ;;  %3800 = vmatpush3.bf16.msra.mxu1 %v6844_v33 }
 0x1e1   : > { %v3835_v60 = vpack.c.bf16 %v5673_v58, %v5669_v50  ;;  %3834 = vmatprep.subr.bf16.mxu0 %v6962_v1  ;;  %3801 = vmatprep.subr.bf16.mxu1 %v6962_v1 }
 0x1e3   : > { %3413 = vmatmul.mubr.msk.f32.gmra.mrb[28].mxu1 %vm1035_vm0, %v5581_v4  ;;  %3836 = vmatpush3.bf16.msra.mxu0 %v3835_v60 }
 0x1e4   : > { %3415 = vmatprep.mubr.msk.f32.mxu1 %vm1035_vm0, %v5596_v61  ;;  %3802 = vmatpush3.bf16.msra.mxu1 %v6844_v33 }
 0x1e5   : > { %3803 = vmatprep.subr.bf16.mxu1 %v6962_v1  ;;  %3526 = vmatprep.subr.mxu0 %v6847_v12 }
 0x1e6   : > { %3524 = vmatmul.mubr.f32.vlgmr.msra.gmra.mrb[40].mxu0 %v6846_v3 }
 0x1e7   : > { %3416 = vmatmul.mubr.msk.f32.gmra.mrb[30].mxu1 %vm1035_vm0, %v5600_v53  ;;  %3527 = vmatpush3.msra.mxu0 %v5516_v37 }
 0x1e8   : > { %3418 = vmatprep.mubr.msk.f32.mxu1 %vm1035_vm0, %v5611_v11  ;;  %3804 = vmatpush3.bf16.msra.mxu1 %v6844_v33 }
 0x1e9   : > { %3805 = vmatprep.subr.bf16.mxu1 %v6962_v1  ;;  %3528 = vmatprep.mubr.msk.f32.mxu0 %vm4727_vm1, %v6847_v12 }
 0x1ea   : > { %3853 = vmatprep.subr.bf16.mxu0 %v6962_v1 }
 0x1eb   : > { %3419 = vmatmul.mubr.msk.f32.gmra.mrb[32].mxu1 %vm1035_vm0, %v5615_v32 }
 0x1ec   : > { %3421 = vmatprep.mubr.msk.f32.mxu1 %vm1035_vm0, %v5630_v49  ;;  %3806 = vmatpush3.bf16.msra.mxu1 %v6844_v33 }
 0x1ed   : > { %3807 = vmatprep.subr.bf16.mxu1 %v6962_v1 }
 0x1ef   : > { %3422 = vmatmul.mubr.msk.f32.gmra.mrb[34].mxu1 %vm1035_vm0, %v5634_v6 }
 0x1f0   : > { %3424 = vmatprep.mubr.msk.f32.mxu1 %vm1035_vm0, %v5645_v18  ;;  %3808 = vmatpush3.bf16.msra.mxu1 %v6844_v33 }
 0x1f1   : > { %3809 = vmatprep.subr.bf16.mxu1 %v6962_v1 }
 0x1f3   : > { %3425 = vmatmul.mubr.msk.f32.gmra.mrb[36].mxu1 %vm1035_vm0, %v5649_v56 }
 0x1f4   : > { %3427 = vmatprep.mubr.msk.f32.mxu1 %vm1035_vm0, %v5669_v50  ;;  %3810 = vmatpush3.bf16.msra.mxu1 %v6844_v33 }
 0x1f5   : > { %3811 = vmatprep.subr.bf16.mxu1 %v6962_v1 }
 0x1f7   : > { %3428 = vmatmul.mubr.msk.f32.gmra.mrb[38].mxu1 %vm1035_vm0, %v5673_v58 }
 0x1f8   : > { %3812 = vmatpush3.bf16.msra.mxu1 %v6844_v33  ;;  %3462 = vmatprep.mubr.msk.f32.mxu1 %vm4727_vm1, %v6847_v12 }
 0x1fb   : > { %3463 = vmatmul.mubr.f32.vlgmr.msra.gmra.mrb[40].mxu1 %v5516_v37 }
 0x1fc   : > { %3467 = vmatprep.mubr.msk.f32.mxu1 %vm1035_vm0, %v5543_v27 }
 0x288   : > { %v3088_v7 = vpop.f32.mrb[16].mxu0 }
 0x289   : > { %v3089_v0 = vpop.f32.mrb[17].mxu0 }
 0x28a   : > { %v3090_v60 = vadd.f32 %v3089_v0, %v3088_v7  ;;  %v3091_v27 = vpop.f32.mrb[18].mxu0 }
 0x28b   : > { %v3092_v33 = vpop.f32.mrb[19].mxu0 }
 0x28c   : > { %v768_v3 = vadd.f32 %v3090_v60, %v5732_v17  ;;  %v3093_v19 = vadd.f32 %v3092_v33, %v3091_v27 }
 0x28e   : > { %v830_v37 = vmax.f32 %v768_v3, 0.0  ;;  %v771_v12 = vadd.f32 %v3093_v19, %v5732_v17 }
 0x290   : > { %v831_v23 = vmax.f32 %v771_v12, 0.0  ;;  %v3094_v24 = vpop.f32.mrb[20].mxu0  ;;  %v5743_v25 = vmul.f32 %v5535_v8, %v830_v37 }
 0x291   : > { %v3095_v7 = vpop.f32.mrb[21].mxu0 }
 0x292   : > { %6975 = vst [vmem:[#allocation73_spill] sm:$0xff] %v5743_v25  ;;  %v3096_v0 = vadd.f32 %v3095_v7, %v3094_v24  ;;  %v3097_v26 = vpop.f32.mrb[22].mxu0  ;;  %v948_v33 = vmul.f32 %v5740_v22, %v5743_v25  ;;  %v5748_v60 = vmul.f32 %v5539_v9, %v831_v23 }
 0x293   : > { %v3098_v27 = vpop.f32.mrb[23].mxu0 }
 0x294   : > { %6976 = vst [vmem:[#allocation74_spill] sm:$0xff] %v5748_v60  ;;  %v776_v3 = vadd.f32 %v3096_v0, %v5732_v17  ;;  %v3099_v19 = vadd.f32 %v3098_v27, %v3097_v26  ;;  %964 = vadd.xlane.f32.xlu0 %v948_v33  ;;  %v949_v12 = vmul.f32 %v5740_v22, %v5748_v60 }
 0x296   : > { %v832_v44 = vmax.f32 %v776_v3, 0.0  ;;  %v779_v8 = vadd.f32 %v3099_v19, %v5732_v17  ;;  %966 = vadd.xlane.f32.xlu1 %v949_v12 }
 0x298   : > { %v833_v24 = vmax.f32 %v779_v8, 0.0  ;;  %v3100_v37 = vpop.f32.mrb[24].mxu0  ;;  %v5755_v7 = vmul.f32 %v5549_v10, %v832_v44 }
 0x299   : > { %v3101_v25 = vpop.f32.mrb[25].mxu0 }
 0x29a   : > { %6977 = vst [vmem:[#allocation75_spill] sm:$0xff] %v5755_v7  ;;  %v3102_v23 = vadd.f32 %v3101_v25, %v3100_v37  ;;  %v3103_v9 = vpop.f32.mrb[26].mxu0  ;;  %v950_v0 = vmul.f32 %v5740_v22, %v5755_v7  ;;  %v5760_v26 = vmul.f32 %v5556_v14, %v833_v24 }
 0x29b   : > { %v3104_v33 = vpop.f32.mrb[27].mxu0 }
 0x29c   : > { %6978 = vst [vmem:[#allocation76_spill] sm:$0xff] %v5760_v26  ;;  %v784_v27 = vadd.f32 %v3102_v23, %v5732_v17  ;;  %v3105_v3 = vadd.f32 %v3104_v33, %v3103_v9  ;;  %968 = vadd.xlane.f32.xlu0 %v950_v0  ;;  %v951_v44 = vmul.f32 %v5740_v22, %v5760_v26 }
 0x29e   : > { %v834_v19 = vmax.f32 %v784_v27, 0.0  ;;  %v787_v12 = vadd.f32 %v3105_v3, %v5732_v17  ;;  %v3124_v8 = vpop.f32.mrb[16].mxu1 }
 0x29f   : > { %v3125_v25 = vpop.f32.mrb[17].mxu1 }
 0x2a0   : > { %v835_v10 = vmax.f32 %v787_v12, 0.0  ;;  %v3126_v37 = vadd.f32 %v3125_v25, %v3124_v8  ;;  %v3106_v60 = vpop.f32.mrb[28].mxu0  ;;  %v3127_v7 = vpop.f32.mrb[18].mxu1  ;;  %970 = vadd.xlane.f32.xlu0 %v951_v44  ;;  %v5767_v14 = vmul.f32 %v5566_v51, %v834_v19 }
 0x2a1   : > { %v3107_v24 = vpop.f32.mrb[29].mxu0  ;;  %v3128_v23 = vpop.f32.mrb[19].mxu1 }
 0x2a2   : > { %6979 = vst [vmem:[#allocation77_spill] sm:$0xff] %v5767_v14  ;;  %v816_v9 = vadd.f32 %v3126_v37, %v5732_v17  ;;  %v3108_v0 = vadd.f32 %v3107_v24, %v3106_v60  ;;  %v3129_v33 = vadd.f32 %v3128_v23, %v3127_v7  ;;  %v3109_v27 = vpop.f32.mrb[30].mxu0  ;;  %v952_v3 = vmul.f32 %v5740_v22, %v5767_v14 }
 0x2a3   : > { %v3110_v26 = vpop.f32.mrb[31].mxu0  ;;  %v5773_v12 = vmul.f32 %v5573_v39, %v835_v10 }
 0x2a4   : > { %v792_v8 = vadd.f32 %v3108_v0, %v5732_v17  ;;  %v3111_v44 = vadd.f32 %v3110_v26, %v3109_v27  ;;  %972 = vadd.xlane.f32.xlu1 %v952_v3  ;;  %v842_v19 = vmax.f32 %v816_v9, 0.0 }
 0x2a5   : > { %6980 = vst [vmem:[#allocation78_spill] sm:$0xff] %v5773_v12  ;;  %v953_v51 = vmul.f32 %v5740_v22, %v5773_v12 }
 0x2a6   : > { %v836_v25 = vmax.f32 %v792_v8, 0.0  ;;  %v795_v60 = vadd.f32 %v3111_v44, %v5732_v17  ;;  %v3130_v7 = vpop.f32.mrb[20].mxu1  ;;  %v5785_v8 = vmul.f32 %v5636_v54, %v842_v19 }
 0x2a7   : > { %974 = vadd.xlane.f32.xlu0 %v953_v51  ;;  %v3131_v37 = vpop.f32.mrb[21].mxu1 }
 0x2a8   : > { %v837_v24 = vmax.f32 %v795_v60, 0.0  ;;  %v3132_v23 = vadd.f32 %v3131_v37, %v3130_v7  ;;  %v3112_v14 = vpop.f32.mrb[32].mxu0  ;;  %v3133_v45 = vpop.f32.mrb[22].mxu1  ;;  %v5780_v39 = vmul.f32 %v5584_v43, %v836_v25  ;;  %6982 = vst [vmem:[#allocation80_spill] sm:$0xff] %v5785_v8  ;;  %v960_v54 = vmul.f32 %v5740_v22, %v5785_v8 }
 0x2a9   : > { %v3113_v10 = vpop.f32.mrb[33].mxu0  ;;  %v3134_v26 = vpop.f32.mrb[23].mxu1 }
 0x2aa   : > { %6981 = vst [vmem:[#allocation79_spill] sm:$0xff] %v5780_v39  ;;  %v3114_v0 = vadd.f32 %v3113_v10, %v3112_v14  ;;  %v3135_v27 = vadd.f32 %v3134_v26, %v3133_v45  ;;  %v3115_v3 = vpop.f32.mrb[34].mxu0  ;;  %v954_v9 = vmul.f32 %v5740_v22, %v5780_v39  ;;  %v5788_v51 = vmul.f32 %v5592_v63, %v837_v24 }
 0x2ab   : > { %v3116_v44 = vpop.f32.mrb[35].mxu0 }
 0x2ac   : > { %6983 = vst [vmem:[#allocation81_spill] sm:$0xff] %v5788_v51  ;;  %v800_v60 = vadd.f32 %v3114_v0, %v5732_v17  ;;  %v3117_v7 = vadd.f32 %v3116_v44, %v3115_v3  ;;  %976 = vadd.xlane.f32.xlu1 %v954_v9  ;;  %v955_v43 = vmul.f32 %v5740_v22, %v5788_v51 }
 0x2ad   : > { %v824_v0 = vadd.f32 %v3132_v23, %v5732_v17 }
 0x2ae   : > { %v838_v14 = vmax.f32 %v800_v60, 0.0  ;;  %v803_v45 = vadd.f32 %v3117_v7, %v5732_v17  ;;  %v5794_v25 = vpop.f32.mrb[24].mxu1  ;;  %978 = vadd.xlane.f32.xlu0 %v955_v43  ;;  %v819_v43 = vadd.f32 %v3129_v33, %v5732_v17 }
 0x2af   : > { %v5798_v19 = vpop.f32.mrb[25].mxu1 }
 0x2b0   : > { %v839_v63 = vmax.f32 %v803_v45, 0.0  ;;  %v3118_v24 = vpop.f32.mrb[36].mxu0  ;;  %988 = vadd.xlane.f32.xlu1 %v960_v54  ;;  %v5803_v10 = vmul.f32 %v5602_v5, %v838_v14  ;;  %v843_v33 = vmax.f32 %v819_v43, 0.0 }
 0x2b1   : > { %v3119_v26 = vpop.f32.mrb[37].mxu0 }
 0x2b2   : > { %6984 = vst [vmem:[#allocation82_spill] sm:$0xff] %v5803_v10  ;;  %v3120_v3 = vadd.f32 %v3119_v26, %v3118_v24  ;;  %v3121_v9 = vpop.f32.mrb[38].mxu0  ;;  %v5806_v44 = vpop.f32.mrb[26].mxu1  ;;  %v956_v60 = vmul.f32 %v5740_v22, %v5803_v10  ;;  %v5811_v7 = vmul.f32 %v5607_v59, %v839_v63  ;;  %v844_v26 = vmax.f32 %v824_v0, 0.0 }
 0x2b3   : > { %v3122_v45 = vpop.f32.mrb[39].mxu0  ;;  %v5814_v54 = vpop.f32.mrb[27].mxu1 }
 0x2b4   : > { %6985 = vst [vmem:[#allocation83_spill] sm:$0xff] %v5811_v7  ;;  %v808_v5 = vadd.f32 %v3120_v3, %v5732_v17  ;;  %v3123_v14 = vadd.f32 %v3122_v45, %v3121_v9  ;;  %980 = vadd.xlane.f32.xlu1 %v956_v60  ;;  %v957_v24 = vmul.f32 %v5740_v22, %v5811_v7  ;;  %v7024_v45 = vld [vmem:[#allocation52_spill] sm:$0xff] }
 0x2b5   : > { %v827_v3 = vadd.f32 %v3135_v27, %v5732_v17  ;;  %v5840_v43 = vmul.f32 %v5653_v62, %v844_v26 }
 0x2b6   : > { %v840_v37 = vmax.f32 %v808_v5, 0.0  ;;  %v811_v59 = vadd.f32 %v3123_v14, %v5732_v17  ;;  %982 = vadd.xlane.f32.xlu0 %v957_v24  ;;  %v5822_v63 = vpop.f32.mrb[28].mxu1 }
 0x2b7   : > { %v5824_v8 = vpop.f32.mrb[29].mxu1  ;;  %6988 = vst [vmem:[#allocation86_spill] sm:$0xff] %v5840_v43  ;;  %v845_v17 = vmax.f32 %v827_v3, 0.0 }
 0x2b8   : > { %v841_v9 = vmax.f32 %v811_v59, 0.0  ;;  %v5830_v60 = vmul.f32 %v5618_v55, %v840_v37  ;;  %v5849_v37 = vmul.f32 %v5641_v31, %v843_v33 }
 0x2b9   : > { %v5862_v3 = vmul.f32 %v5662_v13, %v845_v17 }
 0x2ba   : > { %6986 = vst [vmem:[#allocation84_spill] sm:$0xff] %v5830_v60  ;;  %v5832_v23 = vpop.f32.mrb[30].mxu1  ;;  %v958_v0 = vmul.f32 %v5740_v22, %v5830_v60  ;;  %v5837_v5 = vmul.f32 %v5626_v15, %v841_v9  ;;  %6989 = vst [vmem:[#allocation87_spill] sm:$0xff] %v5849_v37  ;;  %v962_v15 = vmul.f32 %v5740_v22, %v5840_v43  ;;  %v6998_v43 = vld [vmem:[#allocation28_spill] sm:$0xff] }
 0x2bb   : > { %v5842_v14 = vpop.f32.mrb[31].mxu1  ;;  %v961_v59 = vmul.f32 %v5740_v22, %v5849_v37  ;;  %6990 = vst [vmem:[#allocation88_spill] sm:$0xff] %v5862_v3 }
 0x2bc   : > { %6987 = vst [vmem:[#allocation85_spill] sm:$0xff] %v5837_v5  ;;  %984 = vadd.xlane.f32.xlu1 %v958_v0  ;;  %v959_v55 = vmul.f32 %v5740_v22, %v5837_v5  ;;  %v963_v0 = vmul.f32 %v5740_v22, %v5862_v3  ;;  %v6991_v22 = vmov 1.0|1.0   ;;  %v6999_v5 = vld [vmem:[#allocation29_spill] sm:$0xff] }
 0x2be   : > { %986 = vadd.xlane.f32.xlu0 %v959_v55  ;;  %v5851_v24 = vpop.f32.mrb[32].mxu1 }
 0x2bf   : > { %v5855_v62 = vpop.f32.mrb[33].mxu1 }
 0x2c0   : > { %992 = vadd.xlane.f32.xlu1 %v962_v15 }
 0x2c2   : > { %990 = vadd.xlane.f32.xlu0 %v961_v59  ;;  %v5864_v31 = vpop.f32.mrb[34].mxu1 }
 0x2c3   : > { %v5866_v33 = vpop.f32.mrb[35].mxu1 }
 0x2c6   : > { %994 = vadd.xlane.f32.xlu0 %v963_v0  ;;  %v5872_v55 = vpop.f32.mrb[36].mxu1 }
 0x2c7   : > { %v5874_v15 = vpop.f32.mrb[37].mxu1 }
 0x2ca   : > { %v5878_v17 = vpop.f32.mrb[38].mxu1 }
 0x2cb   : > { %v5880_v59 = vpop.f32.mrb[39].mxu1 }
 0x2ce   : > { %v1295_v27 = vpop.f32.mrb[40].mxu1 }
 0x2cf   : > { %3465 = vmatprep.subr.mxu1 %v1295_v27  ;;  %v3464_v9 = vpop.f32.mrb[41].mxu1 }
 0x2d0   : > { %3466 = vmatpush3.msra.mxu1 %v1295_v27 }
 0x2d1   : > { %3468 = vmatmul.mubr.msk.f32.vlgmr.msra.gmra.mrb[42].mxu1 %vm1035_vm0, %v5547_v38  ;;  %3837 = vmatprep.subr.bf16.mxu1 %v6991_v22 }
 0x2d2   : > { %3470 = vmatprep.mubr.msk.f32.mxu1 %vm1035_vm0, %v5560_v16  ;;  %3838 = vmatpush3.bf16.msra.mxu1 %v6991_v22 }
 0x2d3   : > { %3839 = vmatprep.subr.bf16.mxu1 %v6991_v22 }
 0x2d5   : > { %3471 = vmatmul.mubr.msk.f32.gmra.mrb[44].mxu1 %vm1035_vm0, %v5564_v57 }
 0x2d6   : > { %3473 = vmatprep.mubr.msk.f32.mxu1 %vm1035_vm0, %v5577_v2  ;;  %3840 = vmatpush3.bf16.msra.mxu1 %v6991_v22  ;;  %v1510_v2 = vpop.f32.mrb[40].mxu0 }
 0x2d7   : > { %3841 = vmatprep.subr.bf16.mxu1 %v6991_v22  ;;  %3529 = vmatmul.mubr.msk.f32.vlgmr.msra.gmra.mrb[42].mxu0 %vm1035_vm0, %v1510_v2 }
 0x2d9   : > { %3474 = vmatmul.mubr.msk.f32.gmra.mrb[46].mxu1 %vm1035_vm0, %v5581_v4  ;;  %v3525_v4 = vpop.f32.mrb[41].mxu0 }
 0x2da   : > { %3476 = vmatprep.mubr.msk.f32.mxu1 %vm1035_vm0, %v5596_v61  ;;  %3842 = vmatpush3.bf16.msra.mxu1 %v6991_v22  ;;  %v6992_v61 = vmov 0.0   ;;  %v6995_v4 = vld [vmem:[#allocation21_spill] sm:$0xff] }
 0x2db   : > { %3843 = vmatprep.subr.bf16.mxu1 %v6991_v22  ;;  %3619 = vmatprep.mubr.msk.f32.mxu0 %vm4727_vm1, %v6992_v61  ;;  %vm1651_vm2 = vcmp.lt.s32.totalorder %v6995_v4, %v4914_v20  ;;  %vm1652_vm7 = vcmp.lt.s32.totalorder %v6995_v4, %v6998_v43  ;;  %vm1653_vm12 = vcmp.lt.s32.totalorder %v6995_v4, %v6999_v5 }
 0x2dd   : > { %3477 = vmatmul.mubr.msk.f32.gmra.mrb[48].mxu1 %vm1035_vm0, %v5600_v53 }
 0x2de   : > { %3479 = vmatprep.mubr.msk.f32.mxu1 %vm1035_vm0, %v5611_v11  ;;  %3844 = vmatpush3.bf16.msra.mxu1 %v6991_v22 }
 0x2df   : > { %3845 = vmatprep.subr.bf16.mxu1 %v6991_v22 }
 0x2e1   : > { %3480 = vmatmul.mubr.msk.f32.gmra.mrb[50].mxu1 %vm1035_vm0, %v5615_v32 }
 0x2e2   : > { %3482 = vmatprep.mubr.msk.f32.mxu1 %vm1035_vm0, %v5630_v49  ;;  %3846 = vmatpush3.bf16.msra.mxu1 %v6991_v22 }
 0x2e3   : > { %3847 = vmatprep.subr.bf16.mxu1 %v6991_v22 }
 0x2e5   : > { %3483 = vmatmul.mubr.msk.f32.gmra.mrb[52].mxu1 %vm1035_vm0, %v5634_v6 }
 0x2e6   : > { %3485 = vmatprep.mubr.msk.f32.mxu1 %vm1035_vm0, %v5645_v18  ;;  %3848 = vmatpush3.bf16.msra.mxu1 %v6991_v22 }
 0x2e7   : > { %3849 = vmatprep.subr.bf16.mxu1 %v6991_v22 }
 0x2e9   : > { %3486 = vmatmul.mubr.msk.f32.gmra.mrb[54].mxu1 %vm1035_vm0, %v5649_v56 }
 0x2ea   : > { %3488 = vmatprep.mubr.msk.f32.mxu1 %vm1035_vm0, %v5669_v50  ;;  %3850 = vmatpush3.bf16.msra.mxu1 %v6991_v22 }
 0x2eb   : > { %3851 = vmatprep.subr.bf16.mxu1 %v6991_v22 }
 0x2ed   : > { %3489 = vmatmul.mubr.msk.f32.gmra.mrb[56].mxu1 %vm1035_vm0, %v5673_v58 }
 0x2ee   : > { %3852 = vmatpush3.bf16.msra.mxu1 %v6991_v22 }
 0x2ef   : > { %3885 = vmatprep.subr.bf16.mxu1 %v6962_v1 }
 0x321   : > { %v5931_v38 = vpop.xlane.xlu0 %964 }
 0x322   : > { %1587 = vxpose.xlu1.b32.start [1/16] %v5931_v38, 128  ;;  %4379 = vtanh.f32 %v5931_v38 }
 0x323   : > { %v5934_v16 = vpop.xlane.xlu1 %966 }
 0x324   : > { %4381 = vtanh.f32 %v5934_v16 }
 0x326   : > { %1588 = vxpose.xlu1.b32.cont [2/16] %v5934_v16, 128 }
 0x329   : > { %v5937_v57 = vpop.xlane.xlu0 %968 }
 0x32a   : > { %1589 = vxpose.xlu1.b32.cont [3/16] %v5937_v57, 128  ;;  %4383 = vtanh.f32 %v5937_v57 }
 0x32d   : > { %v5943_v53 = vpop.xlane.xlu0 %970 }
 0x32e   : > { %1590 = vxpose.xlu1.b32.cont [4/16] %v5943_v53, 128  ;;  %4385 = vtanh.f32 %v5943_v53 }
 0x331   : > { %v5946_v11 = vpop.xlane.xlu1 %972 }
 0x332   : > { %1591 = vxpose.xlu1.b32.cont [5/16] %v5946_v11, 128  ;;  %4387 = vtanh.f32 %v5946_v11 }
 0x334   : > { %v5949_v32 = vpop.xlane.xlu0 %974 }
 0x335   : > { %4389 = vtanh.f32 %v5949_v32 }
 0x336   : > { %1592 = vxpose.xlu1.b32.cont [6/16] %v5949_v32, 128 }
 0x339   : > { %v5952_v49 = vpop.xlane.xlu1 %976 }
 0x33a   : > { %6993 = vst [vmem:[#allocation89_spill] sm:$0xff] %v5952_v49  ;;  %1593 = vxpose.xlu1.b32.cont [7/16] %v5952_v49, 128 }
 0x33b   : > { %v5955_v6 = vpop.xlane.xlu0 %978 }
 0x33c   : > { %6994 = vst [vmem:[#allocation90_spill] sm:$0xff] %v5955_v6 }
 0x33d   : > { %v5957_v18 = vpop.xlane.xlu1 %988 }
 0x33e   : > { %1594 = vxpose.xlu1.b32.cont [8/16] %v5955_v6, 128 }
 0x341   : > { %v5960_v56 = vpop.xlane.xlu1 %980 }
 0x342   : > { %1595 = vxpose.xlu1.b32.cont [9/16] %v5960_v56, 128 }
 0x343   : > { %v5963_v50 = vpop.xlane.xlu0 %982 }
 0x346   : > { %1596 = vxpose.xlu1.b32.cont [10/16] %v5963_v50, 128 }
 0x349   : > { %v5966_v58 = vpop.xlane.xlu1 %984 }
 0x34a   : > { %1597 = vxpose.xlu1.b32.cont [11/16] %v5966_v58, 128 }
 0x34b   : > { %v5969_v27 = vpop.xlane.xlu0 %986 }
 0x34d   : > { %v5976_v0 = vpop.xlane.xlu1 %992 }
 0x34e   : > { %1598 = vxpose.xlu1.b32.cont [12/16] %v5969_v27, 128 }
 0x34f   : > { %v5973_v9 = vpop.xlane.xlu0 %990 }
 0x352   : > { %1599 = vxpose.xlu1.b32.cont [13/16] %v5957_v18, 128 }
 0x353   : > { %v5979_v2 = vpop.xlane.xlu0 %994 }
 0x356   : > { %1600 = vxpose.xlu1.b32.cont [14/16] %v5973_v9, 128 }
 0x35a   : > { %1601 = vxpose.xlu1.b32.cont [15/16] %v5976_v0, 128 }
 0x35e   : > { %1602 = vxpose.xlu1.b32.end [16/16] %v5979_v2, 128 }
 0x3a2   : > { %v1603_v26 = vpop.trf.xlu1 }
 0x3a3   : > { %vm1619_vm3 = vcmp.gt.f32.partialorder %v1603_v26, %v5931_v38  ;;  %vm1635_vm4 = vcmp.eq.f32.partialorder %v1603_v26, %v5931_v38 }
 0x3a4   : > { %vm1667_vm5 = vmand %vm1635_vm4, %vm1651_vm2  ;;  %v5986_v13 = vpop.f32.mrb[42].mxu1 }
 0x3a5   : > { %vm5988_vm6 = vmor %vm1619_vm3, %vm1667_vm5  ;;  %v5992_v3 = vpop.f32.mrb[43].mxu1 }
 0x3a6   : > { %v1604_v37 = vpop.trf.xlu1  ;;  %3563 = vmatprep.mubr.msk.f32.mxu1 %vm5988_vm6, %v5798_v19 }
 0x3a7   : > { %vm1620_vm8 = vcmp.gt.f32.partialorder %v1604_v37, %v5934_v16  ;;  %vm1636_vm9 = vcmp.eq.f32.partialorder %v1604_v37, %v5934_v16  ;;  %v7000_v37 = vpack.c.bf16 %v5794_v25, %v5798_v19 }
 0x3a8   : > { %vm1668_vm10 = vmand %vm1636_vm9, %vm1652_vm7  ;;  %v6001_v26 = vpop.f32.mrb[44].mxu1 }
 0x3a9   : > { %vm1684_vm11 = vmor %vm1620_vm8, %vm1668_vm10  ;;  %v6003_v60 = vpop.f32.mrb[45].mxu1 }
 0x3aa   : > { %vm3855_vm13 = vmpackc.low %vm1684_vm11, %vm5988_vm6  ;;  %v1605_v43 = vpop.trf.xlu1  ;;  %3564 = vmatmul.mubr.msk.f32.vlgmr.msra.gmra.mrb[58].mxu1 %vm1684_vm11, %v5794_v25 }
 0x3ab   : > { %vm1621_vm14 = vcmp.gt.f32.partialorder %v1605_v43, %v5937_v57  ;;  %vm1637_vm15 = vcmp.eq.f32.partialorder %v1605_v43, %v5937_v57  ;;  %3856 = vmatpush3.bf16.msk.msra.mxu0 %vm3855_vm13, %v7000_v37  ;;  %3886 = vmatpush3.bf16.msra.mxu1 %v6991_v22  ;;  %v7003_v43 = vld [vmem:[#allocation30_spill] sm:$0xff] }
 0x3ac   : > { %vm1669_vm0 = vmand %vm1637_vm15, %vm1653_vm12  ;;  %v6016_v10 = vpop.f32.mrb[46].mxu1  ;;  %3857 = vmatprep.subr.bf16.mxu0 %v6962_v1  ;;  %3887 = vmatprep.subr.bf16.mxu1 %v6962_v1  ;;  %vm1654_vm3 = vcmp.lt.s32.totalorder %v6995_v4, %v7003_v43  ;;  %v7004_v43 = vld [vmem:[#allocation34_spill] sm:$0xff] }
 0x3ad   : > { %vm6020_vm2 = vmor %vm1621_vm14, %vm1669_vm0  ;;  %v6024_v5 = vpop.f32.mrb[47].mxu1  ;;  %vm1655_vm8 = vcmp.lt.s32.totalorder %v6995_v4, %v7004_v43 }
 0x3ae   : > { %v1606_v25 = vpop.trf.xlu1  ;;  %3566 = vmatprep.mubr.msk.f32.mxu1 %vm6020_vm2, %v5814_v54 }
 0x3af   : > { %vm1622_vm4 = vcmp.gt.f32.partialorder %v1606_v25, %v5943_v53  ;;  %vm1638_vm5 = vcmp.eq.f32.partialorder %v1606_v25, %v5943_v53  ;;  %3888 = vmatpush3.bf16.msra.mxu1 %v6991_v22  ;;  %v7005_v25 = vpack.c.bf16 %v5806_v44, %v5814_v54 }
 0x3b0   : > { %vm1670_vm6 = vmand %vm1638_vm5, %vm1654_vm3  ;;  %v6034_v19 = vpop.f32.mrb[48].mxu1  ;;  %3889 = vmatprep.subr.bf16.mxu1 %v6962_v1 }
 0x3b1   : > { %vm1686_vm7 = vmor %vm1622_vm4, %vm1670_vm6  ;;  %v6037_v37 = vpop.f32.mrb[49].mxu1 }
 0x3b2   : > { %vm3859_vm9 = vmpackc.low %vm1686_vm7, %vm6020_vm2  ;;  %v1607_v7 = vpop.trf.xlu1  ;;  %3567 = vmatmul.mubr.msk.f32.gmra.mrb[60].mxu1 %vm1686_vm7, %v5806_v44 }
 0x3b3   : > { %vm1623_vm10 = vcmp.gt.f32.partialorder %v1607_v7, %v5946_v11  ;;  %vm1639_vm11 = vcmp.eq.f32.partialorder %v1607_v7, %v5946_v11  ;;  %3860 = vmatpush3.bf16.msk.msra.mxu0 %vm3859_vm9, %v7005_v25  ;;  %3890 = vmatpush3.bf16.msra.mxu1 %v6991_v22  ;;  %v7008_v7 = vld [vmem:[#allocation35_spill] sm:$0xff] }
 0x3b4   : > { %vm1671_vm12 = vmand %vm1639_vm11, %vm1655_vm8  ;;  %v6050_v39 = vpop.f32.mrb[50].mxu1  ;;  %3861 = vmatprep.subr.bf16.mxu0 %v6962_v1  ;;  %3891 = vmatprep.subr.bf16.mxu1 %v6962_v1  ;;  %vm1656_vm14 = vcmp.lt.s32.totalorder %v6995_v4, %v7008_v7  ;;  %v7009_v7 = vld [vmem:[#allocation36_spill] sm:$0xff] }
 0x3b5   : > { %vm6054_vm13 = vmor %vm1623_vm10, %vm1671_vm12  ;;  %v6058_v43 = vpop.f32.mrb[51].mxu1  ;;  %vm1657_vm4 = vcmp.lt.s32.totalorder %v6995_v4, %v7009_v7 }
 0x3b6   : > { %v1608_v44 = vpop.trf.xlu1  ;;  %3569 = vmatprep.mubr.msk.f32.mxu1 %vm6054_vm13, %v5824_v8 }
 0x3b7   : > { %vm1624_vm15 = vcmp.gt.f32.partialorder %v1608_v44, %v5949_v32  ;;  %vm1640_vm0 = vcmp.eq.f32.partialorder %v1608_v44, %v5949_v32  ;;  %3892 = vmatpush3.bf16.msra.mxu1 %v6991_v22  ;;  %v7010_v44 = vpack.c.bf16 %v5822_v63, %v5824_v8  ;;  %v7040_v32 = vld [vmem:[#allocation90_spill] sm:$0xff] }
 0x3b8   : > { %vm1672_vm2 = vmand %vm1640_vm0, %vm1656_vm14  ;;  %v6068_v54 = vpop.f32.mrb[52].mxu1  ;;  %3893 = vmatprep.subr.bf16.mxu1 %v6962_v1 }
 0x3b9   : > { %vm1688_vm3 = vmor %vm1624_vm15, %vm1672_vm2  ;;  %v6071_v25 = vpop.f32.mrb[53].mxu1 }
 0x3ba   : > { %vm3863_vm5 = vmpackc.low %vm1688_vm3, %vm6054_vm13  ;;  %v1609_v51 = vpop.trf.xlu1  ;;  %3570 = vmatmul.mubr.msk.f32.gmra.mrb[62].mxu1 %vm1688_vm3, %v5822_v63 }
 0x3bb   : > { %vm1625_vm6 = vcmp.gt.f32.partialorder %v1609_v51, %v5952_v49  ;;  %vm1641_vm7 = vcmp.eq.f32.partialorder %v1609_v51, %v5952_v49  ;;  %3864 = vmatpush3.bf16.msk.msra.mxu0 %vm3863_vm5, %v7010_v44  ;;  %3894 = vmatpush3.bf16.msra.mxu1 %v6991_v22  ;;  %v7013_v51 = vld [vmem:[#allocation40_spill] sm:$0xff] }
 0x3bc   : > { %vm1673_vm8 = vmand %vm1641_vm7, %vm1657_vm4  ;;  %v6084_v12 = vpop.f32.mrb[54].mxu1  ;;  %3865 = vmatprep.subr.bf16.mxu0 %v6962_v1  ;;  %3895 = vmatprep.subr.bf16.mxu1 %v6962_v1  ;;  %vm1658_vm10 = vcmp.lt.s32.totalorder %v6995_v4, %v7013_v51  ;;  %v7014_v51 = vld [vmem:[#allocation41_spill] sm:$0xff] }
 0x3bd   : > { %vm6088_vm9 = vmor %vm1625_vm6, %vm1673_vm8  ;;  %v6092_v7 = vpop.f32.mrb[55].mxu1  ;;  %vm1659_vm15 = vcmp.lt.s32.totalorder %v6995_v4, %v7014_v51  ;;  %v7018_v51 = vld [vmem:[#allocation42_spill] sm:$0xff] }
 0x3be   : > { %v1610_v8 = vpop.trf.xlu1  ;;  %3572 = vmatprep.mubr.msk.f32.mxu1 %vm6088_vm9, %v5842_v14  ;;  %vm1660_vm6 = vcmp.lt.s32.totalorder %v6995_v4, %v7018_v51 }
 0x3bf   : > { %vm1626_vm11 = vcmp.gt.f32.partialorder %v1610_v8, %v5955_v6  ;;  %vm1642_vm12 = vcmp.eq.f32.partialorder %v1610_v8, %v5955_v6  ;;  %3896 = vmatpush3.bf16.msra.mxu1 %v6991_v22  ;;  %v7015_v8 = vpack.c.bf16 %v5832_v23, %v5842_v14 }
 0x3c0   : > { %vm1674_vm13 = vmand %vm1642_vm12, %vm1658_vm10  ;;  %v6102_v63 = vpop.f32.mrb[56].mxu1  ;;  %3897 = vmatprep.subr.bf16.mxu1 %v6962_v1 }
 0x3c1   : > { %vm1690_vm14 = vmor %vm1626_vm11, %vm1674_vm13  ;;  %v6105_v44 = vpop.f32.mrb[57].mxu1 }
 0x3c2   : > { %vm3867_vm0 = vmpackc.low %vm1690_vm14, %vm6088_vm9  ;;  %v1611_v49 = vpop.trf.xlu1  ;;  %3573 = vmatmul.mubr.msk.f32.gmra.mrb[64].mxu1 %vm1690_vm14, %v5832_v23  ;;  %v7019_v23 = vld [vmem:[#allocation46_spill] sm:$0xff] }
 0x3c3   : > { %vm1627_vm2 = vcmp.gt.f32.partialorder %v1611_v49, %v5960_v56  ;;  %vm1643_vm3 = vcmp.eq.f32.partialorder %v1611_v49, %v5960_v56  ;;  %3868 = vmatpush3.bf16.msk.msra.mxu0 %vm3867_vm0, %v7015_v8  ;;  %3898 = vmatpush3.bf16.msra.mxu1 %v6991_v22  ;;  %vm1661_vm11 = vcmp.lt.s32.totalorder %v6995_v4, %v7019_v23  ;;  %v7022_v8 = vld [vmem:[#allocation48_spill] sm:$0xff]  ;;  %v7025_v23 = vld [vmem:[#allocation53_spill] sm:$0xff] }
 0x3c4   : > { %vm1675_vm4 = vmand %vm1643_vm3, %vm1659_vm15  ;;  %3869 = vmatprep.subr.bf16.mxu0 %v6962_v1  ;;  %3899 = vmatprep.subr.bf16.mxu1 %v6962_v1  ;;  %v7020_v49 = vpack.c.bf16 %v5851_v24, %v5855_v62 }
 0x3c5   : > { %vm6120_vm5 = vmor %vm1627_vm2, %vm1675_vm4 }
 0x3c6   : > { %v1612_v6 = vpop.trf.xlu1  ;;  %3575 = vmatprep.mubr.msk.f32.mxu1 %vm6120_vm5, %v5855_v62  ;;  %v7023_v62 = vpack.c.bf16 %v5864_v31, %v5866_v33 }
 0x3c7   : > { %vm1628_vm7 = vcmp.gt.f32.partialorder %v1612_v6, %v5963_v50  ;;  %vm1644_vm8 = vcmp.eq.f32.partialorder %v1612_v6, %v5963_v50  ;;  %3900 = vmatpush3.bf16.msra.mxu1 %v6991_v22  ;;  %v7021_v22 = vld [vmem:[#allocation47_spill] sm:$0xff] }
 0x3c8   : > { %vm1676_vm9 = vmand %vm1644_vm8, %vm1660_vm6  ;;  %vm1662_vm2 = vcmp.lt.s32.totalorder %v6995_v4, %v7021_v22  ;;  %v6186_v22 = vpop.f32.mrb[42].mxu0 }
 0x3c9   : > { %vm1692_vm10 = vmor %vm1628_vm7, %vm1676_vm9  ;;  %vm1663_vm7 = vcmp.lt.s32.totalorder %v6995_v4, %v7022_v8 }
 0x3ca   : > { %vm3871_vm12 = vmpackc.low %vm1692_vm10, %vm6120_vm5  ;;  %v1613_v14 = vpop.trf.xlu1  ;;  %3576 = vmatmul.mubr.msk.f32.gmra.mrb[66].mxu1 %vm1692_vm10, %v5851_v24 }
 0x3cb   : > { %vm1629_vm13 = vcmp.gt.f32.partialorder %v1613_v14, %v5966_v58  ;;  %vm1645_vm14 = vcmp.eq.f32.partialorder %v1613_v14, %v5966_v58  ;;  %3872 = vmatpush3.bf16.msk.msra.mxu0 %vm3871_vm12, %v7020_v49  ;;  %v7027_v14 = vld [vmem:[#allocation54_spill] sm:$0xff] }
 0x3cc   : > { %vm1677_vm15 = vmand %vm1645_vm14, %vm1661_vm11  ;;  %3873 = vmatprep.subr.bf16.mxu0 %v6962_v1 }
 0x3cd   : > { %vm1693_vm0 = vmor %vm1629_vm13, %vm1677_vm15  ;;  %vm1664_vm13 = vcmp.lt.s32.totalorder %v6995_v4, %v7024_v45 }
 0x3ce   : > { %v1614_v6 = vpop.trf.xlu1  ;;  %3578 = vmatprep.mubr.msk.f32.mxu1 %vm1693_vm0, %v5866_v33  ;;  %v7026_v33 = vpack.c.bf16 %v5872_v55, %v5874_v15 }
 0x3cf   : > { %vm1630_vm3 = vcmp.gt.f32.partialorder %v1614_v6, %v5969_v27  ;;  %vm1646_vm4 = vcmp.eq.f32.partialorder %v1614_v6, %v5969_v27  ;;  %v3530_v6 = vpop.f32.mrb[43].mxu0 }
 0x3d0   : > { %vm1678_vm5 = vmand %vm1646_vm4, %vm1662_vm2  ;;  %v1953_v6 = vmul.f32 4.0, %v6016_v10 }
 0x3d1   : > { %vm1694_vm6 = vmor %vm1630_vm3, %vm1678_vm5  ;;  %vm1665_vm3 = vcmp.lt.s32.totalorder %v6995_v4, %v7025_v23 }
 0x3d2   : > { %vm3875_vm8 = vmpackc.low %vm1694_vm6, %vm1693_vm0  ;;  %v1615_v24 = vpop.trf.xlu1  ;;  %3579 = vmatmul.mubr.msk.f32.gmra.mrb[68].mxu1 %vm1694_vm6, %v5864_v31 }
 0x3d3   : > { %vm1631_vm9 = vcmp.gt.f32.partialorder %v1615_v24, %v5957_v18  ;;  %vm1647_vm10 = vcmp.eq.f32.partialorder %v1615_v24, %v5957_v18  ;;  %3876 = vmatpush3.bf16.msk.msra.mxu0 %vm3875_vm8, %v7023_v62  ;;  %v1949_v24 = vmul.f32 4.0, %v5986_v13 }
 0x3d4   : > { %vm1679_vm11 = vmand %vm1647_vm10, %vm1663_vm7  ;;  %3877 = vmatprep.subr.bf16.mxu0 %v6962_v1 }
 0x3d5   : > { %vm1695_vm12 = vmor %vm1631_vm9, %vm1679_vm11  ;;  %vm1666_vm9 = vcmp.lt.s32.totalorder %v6995_v4, %v7027_v14 }
 0x3d6   : > { %v1616_v51 = vpop.trf.xlu1  ;;  %3581 = vmatprep.mubr.msk.f32.mxu1 %vm1695_vm12, %v5874_v15  ;;  %v7029_v15 = vmov 1.0  }
 0x3d7   : > { %vm1632_vm14 = vcmp.gt.f32.partialorder %v1616_v51, %v5973_v9  ;;  %vm1648_vm15 = vcmp.eq.f32.partialorder %v1616_v51, %v5973_v9 }
 0x3d8   : > { %vm1680_vm0 = vmand %vm1648_vm15, %vm1664_vm13 }
 0x3d9   : > { %vm1696_vm2 = vmor %vm1632_vm14, %vm1680_vm0 }
 0x3da   : > { %vm3879_vm4 = vmpackc.low %vm1696_vm2, %vm1695_vm12  ;;  %v1617_v31 = vpop.trf.xlu1  ;;  %3582 = vmatmul.mubr.msk.f32.gmra.mrb[70].mxu1 %vm1696_vm2, %v5872_v55  ;;  %v7028_v55 = vpack.c.bf16 %v5878_v17, %v5880_v59 }
 0x3db   : > { %vm1633_vm5 = vcmp.gt.f32.partialorder %v1617_v31, %v5976_v0  ;;  %vm1649_vm6 = vcmp.eq.f32.partialorder %v1617_v31, %v5976_v0  ;;  %3880 = vmatpush3.bf16.msk.msra.mxu0 %vm3879_vm4, %v7026_v33  ;;  %v1951_v33 = vmul.f32 4.0, %v6001_v26 }
 0x3dc   : > { %vm1681_vm7 = vmand %vm1649_vm6, %vm1665_vm3  ;;  %3881 = vmatprep.subr.bf16.mxu0 %v6962_v1 }
 0x3dd   : > { %vm1697_vm8 = vmor %vm1633_vm5, %vm1681_vm7 }
 0x3de   : > { %v1618_v49 = vpop.trf.xlu1  ;;  %3584 = vmatprep.mubr.msk.f32.mxu1 %vm1697_vm8, %v5880_v59 }
 0x3df   : > { %vm1634_vm10 = vcmp.gt.f32.partialorder %v1618_v49, %v5979_v2  ;;  %vm1650_vm11 = vcmp.eq.f32.partialorder %v1618_v49, %v5979_v2 }
 0x3e0   : > { %vm1682_vm12 = vmand %vm1650_vm11, %vm1666_vm9 }
 0x3e1   : > { %vm1698_vm13 = vmor %vm1634_vm10, %vm1682_vm12 }
 0x3e2   : > { %vm3883_vm14 = vmpackc.low %vm1698_vm13, %vm1697_vm8  ;;  %3585 = vmatmul.mubr.msk.f32.gmra.mrb[72].mxu1 %vm1698_vm13, %v5878_v17  ;;  %v1948_v17 = vmul.f32 4.0, %v5992_v3  ;;  %v1950_v3 = vmul.f32 4.0, %v6003_v60  ;;  %v1952_v60 = vmul.f32 4.0, %v6024_v5  ;;  %v1954_v5 = vmul.f32 4.0, %v6037_v37 }
 0x3e3   : > { %3884 = vmatpush3.bf16.msk.msra.mxu0 %vm3883_vm14, %v7028_v55  ;;  %3654 = vmatprep.mubr.msk.f32.mxu1 %vm4727_vm1, %v6992_v61  ;;  %v1956_v37 = vmul.f32 4.0, %v6058_v43  ;;  %v1958_v43 = vmul.f32 4.0, %v6071_v25  ;;  %v1960_v25 = vmul.f32 4.0, %v6092_v7  ;;  %v1962_v7 = vmul.f32 4.0, %v6105_v44 }
 0x3e4   : > { %3901 = vmatprep.subr.bf16.mxu0 %v6962_v1 }
 0x3e6   : > { %3620 = vmatmul.mubr.f32.vlgmr.msra.gmra.mrb[44].mxu0 %v7029_v15 }
 0x3e7   : > { %3689 = vmatprep.mubr.msk.f32.mxu0 %vm4727_vm1, %v6992_v61 }
 0x47d   : > { %v3565_v8 = vpop.f32.mrb[58].mxu1 }
 0x47e   : > { %v1933_v62 = vmul.f32 5.0, %v3565_v8  ;;  %v1781_v45 = vpop.f32.mrb[59].mxu1 }
 0x47f   : > { %v1932_v59 = vmul.f32 5.0, %v1781_v45 }
 0x480   : > { %vm1965_vm15 = vcmp.lt.f32.partialorder %v1933_v62, %v1949_v24 }
 0x481   : > { %v1981_v51 = vsel %vm1965_vm15, 1.0, %v6992_v61  ;;  %vm1964_vm0 = vcmp.lt.f32.partialorder %v1932_v59, %v1948_v17  ;;  %v1955_v59 = vmul.f32 4.0, %v6034_v19 }
 0x482   : > { %v6192_v48 = vmul.f32 %v4642_v48, %v1981_v51   ;;  %v1980_v23 = vsel %vm1964_vm0, 1.0, %v6992_v61 }
 0x483   : > { %v6198_v52 = vmul.f32 %v4646_v52, %v1980_v23  }
 0x484   : > { %2040 = vperm.xlu0 %4329, %v6192_v48  }
 0x485   : > { %v3568_v31 = vpop.f32.mrb[60].mxu1 }
 0x486   : > { %v1935_v13 = vmul.f32 5.0, %v3568_v31  ;;  %v1791_v14 = vpop.f32.mrb[61].mxu1 }
 0x487   : > { %v1934_v49 = vmul.f32 5.0, %v1791_v14  ;;  %v1957_v14 = vmul.f32 4.0, %v6050_v39 }
 0x488   : > { %vm1967_vm1 = vcmp.lt.f32.partialorder %v1935_v13, %v1951_v33  ;;  %2035 = vperm.xlu0 %4329, %v6198_v52  }
 0x489   : > { %v1983_v55 = vsel %vm1967_vm1, 1.0, %v6992_v61  ;;  %vm1966_vm2 = vcmp.lt.f32.partialorder %v1934_v49, %v1950_v3 }
 0x48a   : > { %v6204_v46 = vmul.f32 %v4634_v46, %v1983_v55   ;;  %v1982_v15 = vsel %vm1966_vm2, 1.0, %v6992_v61 }
 0x48b   : > { %v6210_v47 = vmul.f32 %v4638_v47, %v1982_v15  }
 0x48c   : > { %2050 = vperm.xlu0 %4329, %v6204_v46  }
 0x48d   : > { %v3571_v26 = vpop.f32.mrb[62].mxu1 }
 0x48e   : > { %v1937_v8 = vmul.f32 5.0, %v3571_v26  ;;  %v1801_v24 = vpop.f32.mrb[63].mxu1 }
 0x48f   : > { %v1936_v62 = vmul.f32 5.0, %v1801_v24 }
 0x490   : > { %vm1969_vm3 = vcmp.lt.f32.partialorder %v1937_v8, %v1953_v6  ;;  %2045 = vperm.xlu0 %4329, %v6210_v47   ;;  %v1959_v6 = vmul.f32 4.0, %v6068_v54 }
 0x491   : > { %v1985_v45 = vsel %vm1969_vm3, 1.0, %v6992_v61  ;;  %vm1968_vm4 = vcmp.lt.f32.partialorder %v1936_v62, %v1952_v60 }
 0x492   : > { %v6216_v41 = vmul.f32 %v4626_v41, %v1985_v45   ;;  %v1984_v17 = vsel %vm1968_vm4, 1.0, %v6992_v61 }
 0x493   : > { %v6222_v42 = vmul.f32 %v4630_v42, %v1984_v17   ;;  %v1961_v17 = vmul.f32 4.0, %v6084_v12 }
 0x494   : > { %2060 = vperm.xlu0 %4329, %v6216_v41  }
 0x495   : > { %v3574_v10 = vpop.f32.mrb[64].mxu1 }
 0x496   : > { %v1939_v51 = vmul.f32 5.0, %v3574_v10  ;;  %v1811_v23 = vpop.f32.mrb[65].mxu1 }
 0x497   : > { %v1938_v31 = vmul.f32 5.0, %v1811_v23 }
 0x498   : > { %vm1971_vm5 = vcmp.lt.f32.partialorder %v1939_v51, %v1955_v59  ;;  %2055 = vperm.xlu0 %4329, %v6222_v42  }
 0x499   : > { %v1987_v33 = vsel %vm1971_vm5, 1.0, %v6992_v61  ;;  %vm1970_vm6 = vcmp.lt.f32.partialorder %v1938_v31, %v1954_v5  ;;  %v1963_v31 = vmul.f32 4.0, %v6102_v63  ;;  %v7030_v63 = vld [vmem:[#allocation72_spill] sm:$0xff] }
 0x49a   : > { %v6228_v36 = vmul.f32 %v4618_v36, %v1987_v33   ;;  %v1986_v13 = vsel %vm1970_vm6, 1.0, %v6992_v61 }
 0x49b   : > { %v6234_v40 = vmul.f32 %v4622_v40, %v1986_v13  }
 0x49c   : > { %2070 = vperm.xlu0 %4329, %v6228_v36  }
 0x49d   : > { %v3577_v19 = vpop.f32.mrb[66].mxu1 }
 0x49e   : > { %v1941_v3 = vmul.f32 5.0, %v3577_v19  ;;  %v1821_v49 = vpop.f32.mrb[67].mxu1 }
 0x49f   : > { %v1940_v55 = vmul.f32 5.0, %v1821_v49 }
 0x4a0   : > { %vm1973_vm7 = vcmp.lt.f32.partialorder %v1941_v3, %v1957_v14  ;;  %2065 = vperm.xlu0 %4329, %v6234_v40   ;;  %v3033_v14 = vadd.f32 -1.0, %v6186_v22 }
 0x4a1   : > { %v1989_v15 = vsel %vm1973_vm7, 1.0, %v6992_v61  ;;  %vm1972_vm8 = vcmp.lt.f32.partialorder %v1940_v55, %v1956_v37 }
 0x4a2   : > { %v6240_v34 = vmul.f32 %v4610_v34, %v1989_v15   ;;  %v1988_v26 = vsel %vm1972_vm8, 1.0, %v6992_v61  ;;  %v2013_v15 = vmul.f32 4.0, %v6186_v22 }
 0x4a3   : > { %v6246_v35 = vmul.f32 %v4614_v35, %v1988_v26  }
 0x4a4   : > { %2080 = vperm.xlu0 %4329, %v6240_v34  }
 0x4a5   : > { %v3580_v39 = vpop.f32.mrb[68].mxu1 }
 0x4a6   : > { %v1943_v8 = vmul.f32 5.0, %v3580_v39  ;;  %v1831_v24 = vpop.f32.mrb[69].mxu1 }
 0x4a7   : > { %v1942_v60 = vmul.f32 5.0, %v1831_v24  ;;  %v7033_v24 = vsub.s32 0, %v4914_v20 }
 0x4a8   : > { %vm1975_vm9 = vcmp.lt.f32.partialorder %v1943_v8, %v1959_v6  ;;  %2075 = vperm.xlu0 %4329, %v6246_v35   ;;  %v7031_v6 = vld [vmem:[#allocation71_spill] sm:$0xff]  ;;  %v7032_v8 = vld [vmem:[#allocation70_spill] sm:$0xff] }
 0x4a9   : > { %v1991_v62 = vsel %vm1975_vm9, 1.0, %v6992_v61  ;;  %vm1974_vm10 = vcmp.lt.f32.partialorder %v1942_v60, %v1958_v43  ;;  %v7034_v60 = vld [vmem:[#allocation19_spill] sm:$0xff] }
 0x4aa   : > { %v6252_v29 = vmul.f32 %v4602_v29, %v1991_v62   ;;  %v1990_v45 = vsel %vm1974_vm10, 1.0, %v6992_v61 }
 0x4ab   : > { %v6258_v30 = vmul.f32 %v4606_v30, %v1990_v45  }
 0x4ac   : > { %2090 = vperm.xlu0 %4329, %v6252_v29  }
 0x4ad   : > { %v3583_v54 = vpop.f32.mrb[70].mxu1 }
 0x4ae   : > { %v1945_v10 = vmul.f32 5.0, %v3583_v54  ;;  %v1841_v59 = vpop.f32.mrb[71].mxu1 }
 0x4af   : > { %v1944_v51 = vmul.f32 5.0, %v1841_v59 }
 0x4b0   : > { %vm1977_vm11 = vcmp.lt.f32.partialorder %v1945_v10, %v1961_v17  ;;  %2085 = vperm.xlu0 %4329, %v6258_v30   ;;  %v7035_v10 = vld [vmem:[#allocation74_spill] sm:$0xff] }
 0x4b1   : > { %v1993_v23 = vsel %vm1977_vm11, 1.0, %v6992_v61  ;;  %vm1976_vm12 = vcmp.lt.f32.partialorder %v1944_v51, %v1960_v25  ;;  %v7036_v25 = vld [vmem:[#allocation73_spill] sm:$0xff] }
 0x4b2   : > { %v6264_v21 = vmul.f32 %v4594_v21, %v1993_v23   ;;  %v1992_v5 = vsel %vm1976_vm12, 1.0, %v6992_v61 }
 0x4b3   : > { %v6270_v28 = vmul.f32 %v4598_v28, %v1992_v5  }
 0x4b4   : > { %2100 = vperm.xlu0 %4329, %v6264_v21  }
 0x4b5   : > { %v3586_v12 = vpop.f32.mrb[72].mxu1 }
 0x4b6   : > { %v1947_v33 = vmul.f32 5.0, %v3586_v12  ;;  %v1851_v13 = vpop.f32.mrb[73].mxu1  ;;  %v7037_v12 = vld [vmem:[#allocation76_spill] sm:$0xff] }
 0x4b7   : > { %v1946_v19 = vmul.f32 5.0, %v1851_v13 }
 0x4b8   : > { %vm1979_vm13 = vcmp.lt.f32.partialorder %v1947_v33, %v1963_v31  ;;  %2095 = vperm.xlu0 %4329, %v6270_v28   ;;  %v7038_v33 = vld [vmem:[#allocation75_spill] sm:$0xff] }
 0x4b9   : > { %vm1978_vm14 = vcmp.lt.f32.partialorder %v1946_v19, %v1962_v7  ;;  %v1926_v3 = vpop.f32.mrb[44].mxu0  ;;  %v1995_v26 = vsel %vm1979_vm13, 1.0, %v6992_v61  ;;  %v7039_v7 = vld [vmem:[#allocation89_spill] sm:$0xff] }
 0x4ba   : > { %v1994_v49 = vsel %vm1978_vm14, 1.0, %v6992_v61  ;;  %v1931_v37 = vsub.f32 %v3033_v14, %v1926_v3  ;;  %v3621_v55 = vpop.f32.mrb[45].mxu0  ;;  %4391 = vtanh.f32 %v7039_v7 }
 0x4bb   : > { %v6277_v45 = vmul.f32 %v7030_v63, %v1994_v49   ;;  %4393 = vtanh.f32 %v7040_v32  ;;  %v7047_v32 = vld [vmem:[#allocation85_spill] sm:$0xff] }
 0x4bc   : > { %v2012_v44 = vmul.f32 5.0, %v1931_v37  ;;  %v7041_v37 = vld [vmem:[#allocation78_spill] sm:$0xff]  ;;  %4395 = vtanh.f32 %v5960_v56 }
 0x4bd   : > { %2105 = vperm.xlu0 %4329, %v6277_v45   ;;  %4397 = vtanh.f32 %v5963_v50 }
 0x4be   : > { %vm2014_vm15 = vcmp.lt.f32.partialorder %v2012_v44, %v2013_v15  ;;  %v6284_v44 = vmul.f32 %v7031_v6, %v1995_v26   ;;  %v7042_v15 = vld [vmem:[#allocation77_spill] sm:$0xff]  ;;  %4399 = vtanh.f32 %v5966_v58 }
 0x4bf   : > { %v2015_v39 = vsel %vm2014_vm15, 1.0, %v6992_v61  ;;  %v4380_v61 = vpop.eup %4379  ;;  %4401 = vtanh.f32 %v5969_v27 }
 0x4c0   : > { %v6287_v43 = vmul.f32 %v7032_v8, %v2015_v39   ;;  %v4382_v54 = vpop.eup %4381  ;;  %v2017_v51 = vmul.f32 %v4380_v61, %v7036_v25  ;;  %4403 = vtanh.f32 %v5957_v18 }
 0x4c1   : > { %2110 = vperm.xlu0 %4329, %v6284_v44   ;;  %v2018_v59 = vmul.f32 %v4382_v54, %v7035_v10  ;;  %v4384_v38 = vpop.eup %4383  ;;  %4405 = vtanh.f32 %v5973_v9 }
 0x4c2   : > { %v2133_v22 = vrot.slane %v6287_v43, %v7033_v24  ;;  %v4386_v57 = vpop.eup %4385  ;;  %v2019_v13 = vmul.f32 %v4384_v38, %v7038_v33  ;;  %4407 = vtanh.f32 %v5976_v0 }
 0x4c3   : > { %v2020_v31 = vmul.f32 %v4386_v57, %v7037_v12  ;;  %v4388_v19 = vpop.eup %4387  ;;  %4409 = vtanh.f32 %v5979_v2 }
 0x4c4   : > { %v6294_v62 = vmul.f32 %v2133_v22, %v7034_v60  ;;  %v4390_v3 = vpop.eup %4389  ;;  %v2021_v26 = vmul.f32 %v4388_v19, %v7042_v15 }
 0x4c5   : > { %v2022_v55 = vmul.f32 %v4390_v3, %v7041_v37  ;;  %v4392_v8 = vpop.eup %4391 }
 0x4c6   : > { %3655 = vmatmul.mubr.f32.vlgmr.msra.gmra.mrb[74].mxu1 %v6294_v62  ;;  %v4394_v22 = vpop.eup %4393 }
 0x4c7   : > { %v4396_v50 = vpop.eup %4395 }
 0x503   : > { %v2041_v17 = vpop.permute.xlu0 %2040 }
 0x504   : > { %v6304_v5 = vmul.f32 %v2041_v17, %v2018_v59   ;;  %v7043_v17 = vld [vmem:[#allocation81_spill] sm:$0xff]  ;;  %v7044_v59 = vld [vmem:[#allocation79_spill] sm:$0xff] }
 0x505   : > { %v2024_v10 = vmul.f32 %v4394_v22, %v7043_v17  ;;  %v2023_v25 = vmul.f32 %v4392_v8, %v7044_v59  ;;  %v7050_v8 = vld [vmem:[#allocation80_spill] sm:$0xff] }
 0x507   : > { %v2036_v23 = vpop.permute.xlu0 %2035 }
 0x508   : > { %v6306_v63 = vmul.f32 %v2036_v23, %v2017_v51   ;;  %v4398_v23 = vpop.eup %4397 }
 0x509   : > { %v4400_v27 = vpop.eup %4399 }
 0x50a   : > { %v3902_v16 = vpack.c.bf16 %v6304_v5, %v6306_v63 }
 0x50b   : > { %v2051_v53 = vpop.permute.xlu0 %2050 }
 0x50c   : > { %3903 = vmatpush3.bf16.msra.mxu0 %v3902_v16  ;;  %v6315_v60 = vmul.f32 %v2051_v53, %v2020_v31   ;;  %v7045_v16 = vld [vmem:[#allocation83_spill] sm:$0xff]  ;;  %v7046_v53 = vld [vmem:[#allocation82_spill] sm:$0xff] }
 0x50d   : > { %3904 = vmatprep.subr.bf16.mxu0 %v6962_v1  ;;  %v2026_v57 = vmul.f32 %v4398_v23, %v7045_v16  ;;  %v2025_v12 = vmul.f32 %v4396_v50, %v7046_v53  ;;  %v7052_v23 = vld [vmem:[#allocation88_spill] sm:$0xff] }
 0x50f   : > { %v2046_v11 = vpop.permute.xlu0 %2045 }
 0x510   : > { %v6317_v7 = vmul.f32 %v2046_v11, %v2019_v13   ;;  %v4402_v13 = vpop.eup %4401 }
 0x511   : > { %v2028_v19 = vmul.f32 %v4402_v13, %v7047_v32  ;;  %v4404_v9 = vpop.eup %4403 }
 0x512   : > { %v3905_v14 = vpack.c.bf16 %v6315_v60, %v6317_v7  ;;  %v4406_v37 = vpop.eup %4405 }
 0x513   : > { %v2061_v49 = vpop.permute.xlu0 %2060  ;;  %v4408_v2 = vpop.eup %4407 }
 0x514   : > { %3906 = vmatpush3.bf16.msra.mxu0 %v3905_v14  ;;  %v6326_v61 = vmul.f32 %v2061_v49, %v2022_v55   ;;  %v7048_v14 = vld [vmem:[#allocation84_spill] sm:$0xff] }
 0x515   : > { %3907 = vmatprep.subr.bf16.mxu0 %v6962_v1  ;;  %v2027_v3 = vmul.f32 %v4400_v27, %v7048_v14  ;;  %v7053_v14 = vld [vmem:[#allocation69_spill] sm:$0xff] }
 0x517   : > { %v2056_v39 = vpop.permute.xlu0 %2055 }
 0x518   : > { %v6328_v6 = vmul.f32 %v2056_v39, %v2021_v26   ;;  %v7049_v26 = vld [vmem:[#allocation87_spill] sm:$0xff] }
 0x519   : > { %v2030_v39 = vmul.f32 %v4406_v37, %v7049_v26 }
 0x51a   : > { %v3908_v24 = vpack.c.bf16 %v6326_v61, %v6328_v6 }
 0x51b   : > { %v2071_v54 = vpop.permute.xlu0 %2070 }
 0x51c   : > { %3909 = vmatpush3.bf16.msra.mxu0 %v3908_v24  ;;  %v6337_v59 = vmul.f32 %v2071_v54, %v2024_v10   ;;  %v2029_v24 = vmul.f32 %v4404_v9, %v7050_v8  ;;  %v4410_v54 = vpop.eup %4409  ;;  %v7051_v10 = vld [vmem:[#allocation86_spill] sm:$0xff] }
 0x51d   : > { %3910 = vmatprep.subr.bf16.mxu0 %v6962_v1 }
 0x51f   : > { %v2066_v56 = vpop.permute.xlu0 %2065 }
 0x520   : > { %v6339_v58 = vmul.f32 %v2066_v56, %v2023_v25   ;;  %v2031_v25 = vmul.f32 %v4408_v2, %v7051_v10 }
 0x522   : > { %v3911_v51 = vpack.c.bf16 %v6337_v59, %v6339_v58 }
 0x523   : > { %v2081_v38 = vpop.permute.xlu0 %2080 }
 0x524   : > { %3912 = vmatpush3.bf16.msra.mxu0 %v3911_v51  ;;  %v6348_v57 = vmul.f32 %v2081_v38, %v2026_v57   ;;  %v2032_v38 = vmul.f32 %v4410_v54, %v7052_v23 }
 0x525   : > { %3913 = vmatprep.subr.bf16.mxu0 %v6962_v1 }
 0x527   : > { %v2076_v31 = vpop.permute.xlu0 %2075 }
 0x528   : > { %v6350_v56 = vmul.f32 %v2076_v31, %v2025_v12  }
 0x52a   : > { %v3914_v33 = vpack.c.bf16 %v6348_v57, %v6350_v56 }
 0x52b   : > { %v2091_v11 = vpop.permute.xlu0 %2090 }
 0x52c   : > { %3915 = vmatpush3.bf16.msra.mxu0 %v3914_v33  ;;  %v6358_v55 = vmul.f32 %v2091_v11, %v2028_v19  }
 0x52d   : > { %3916 = vmatprep.subr.bf16.mxu0 %v6962_v1 }
 0x52f   : > { %v2086_v18 = vpop.permute.xlu0 %2085 }
 0x530   : > { %v6360_v50 = vmul.f32 %v2086_v18, %v2027_v3  }
 0x532   : > { %v3917_v49 = vpack.c.bf16 %v6358_v55, %v6360_v50 }
 0x533   : > { %v2101_v15 = vpop.permute.xlu0 %2100 }
 0x534   : > { %3918 = vmatpush3.bf16.msra.mxu0 %v3917_v49  ;;  %v6369_v51 = vmul.f32 %v2101_v15, %v2030_v39  }
 0x535   : > { %3919 = vmatprep.subr.bf16.mxu0 %v6962_v1 }
 0x537   : > { %v2096_v22 = vpop.permute.xlu0 %2095 }
 0x538   : > { %v6371_v49 = vmul.f32 %v2096_v22, %v2029_v24  }
 0x53a   : > { %v3920_v0 = vpack.c.bf16 %v6369_v51, %v6371_v49 }
 0x53c   : > { %3921 = vmatpush3.bf16.msra.mxu0 %v3920_v0  ;;  %v2106_v17 = vpop.permute.xlu0 %2105 }
 0x53d   : > { %3922 = vmatprep.subr.bf16.mxu0 %v6962_v1  ;;  %v6378_v54 = vmul.f32 %v2106_v17, %v2031_v25  }
 0x540   : > { %v2111_v16 = vpop.permute.xlu0 %2110 }
 0x541   : > { %v6380_v53 = vmul.f32 %v2111_v16, %v2032_v38  }
 0x543   : > { %v3923_v12 = vpack.c.bf16 %v6380_v53, %v6378_v54 }
 0x545   : > { %3924 = vmatpush3.bf16.msra.mxu0 %v3923_v12 }
 0x548   : > { %3690 = vmatmul.mubr.f32.vlgmr.msra.gmra.mrb[46].mxu0 %v6294_v62 }
 0x599   : > { %v2202_v31 = vpop.f32.mrb[74].mxu1 }
 0x59a   : > { %v2276_v27 = vmax.f32 %v2202_v31, 1.0  ;;  %v3656_v33 = vpop.f32.mrb[75].mxu1 }
 0x59c   : > { %2279 = vperm.xlu0 %4329, %v2276_v27  }
 0x61b   : > { %v2272_v1 = vpop.f32.mrb[46].mxu0  ;;  %v2280_v13 = vpop.permute.xlu0 %2279 }
 0x61c   : > { %4411 = vrcp.f32 %v2280_v13  ;;  %v3691_v11 = vpop.f32.mrb[47].mxu0 }
 0x626   : > { %v4412_v32 = vpop.eup %4411 }
 0x627   : > { %v6385_v19 = vmul.f32 %v4412_v32, %v2272_v1 }
 0x628 LB: >> { %v4730_v62 = vmov 0   ;;  %v6401_v3 = vstv %s4722_s18  ;;  %v7054_v18 = vld [vmem:[#allocation51_spill] sm:$0xff]  ;;  %v7055_v9 = vld [vmem:[#allocation49_spill] sm:$0xff]  ;;  %v7057_v15 = vld [vmem:[#allocation50_spill] sm:$0xff]  ;;  %vm2457_vm6 = vcmask 7168   ;;  %s2289_s18 = sadd.s32 1, %s4722_s18   ;;  %s4722_s18 = sphi %s6390_s18, %s2289_s18   ;;  %v4718_v14 = vphi %v7053_v14, %v7071_v14  }
 0x629   : >> { %4414 = vset.pattern.permute.xlu1 %v4730_v62  ;;  %4413 = vset.pattern.permute.xlu0 %v4730_v62  ;;  %vm2294_vm0 = vcmp.eq.s32.totalorder %v7054_v18, %v6401_v3  ;;  %vm2292_vm1 = vcmp.eq.s32.totalorder %v7055_v9, %v6401_v3  ;;  %v7056_v37 = vld [vmem:[#allocation55_spill] sm:$0xff]  ;;  %vm2293_vm3 = vcmp.eq.s32.totalorder %v7057_v15, %v6401_v3  ;;  %v7058_v17 = vld [vmem:[#allocation57_spill] sm:$0xff]  ;;  %v7059_v23 = vld [vmem:[#allocation56_spill] sm:$0xff]  ;;  %p2286_p0 = scmp.ge.s32.totalorder %s2289_s18, 8  }
 0x62a   : >> { %vm2295_vm2 = vcmp.eq.s32.totalorder %v7056_v37, %v6401_v3  ;;  %v2310_v26 = vsel %vm2294_vm0, %v6210_v47, 0.0  ;;  %v2308_v39 = vsel %vm2292_vm1, %v6198_v52, 0.0  ;;  %v2309_v24 = vsel %vm2293_vm3, %v6192_v48, 0.0  ;;  %v7060_v38 = vld [vmem:[#allocation59_spill] sm:$0xff]  ;;  %v7061_v37 = vld [vmem:[#allocation58_spill] sm:$0xff]  ;;  %v7062_v15 = vld [vmem:[#allocation61_spill] sm:$0xff] }
 0x62b   : >> { %v2311_v8 = vsel %vm2295_vm2, %v6204_v46, 0.0  ;;  %vm2326_vm4 = vcmp.gt.f32.partialorder %v2310_v26, 0.0  ;;  %vm2324_vm5 = vcmp.gt.f32.partialorder %v2308_v39, 0.0  ;;  %vm2325_vm8 = vcmp.gt.f32.partialorder %v2309_v24, 0.0  ;;  %s162_s19 = sadd.s32 (%p2286_p0), 1, %s4714_s5  }
 0x62c   : >> { %v2342_v22 = vsel %vm2326_vm4, 1, %v4730_v62  ;;  %v2340_v0 = vsel %vm2324_vm5, 1, %v4730_v62  ;;  %vm2327_vm7 = vcmp.gt.f32.partialorder %v2311_v8, 0.0  ;;  %vm2297_vm9 = vcmp.eq.s32.totalorder %v7058_v17, %v6401_v3  ;;  %p6518_p1 = scmp.ge.s32.totalorder (%p2286_p0), %s162_s19, 3   ;;  %s7079_s5 = smov (%p2286_p0), %s162_s19 }
 0x62d   : >> { %2363 = vperm.xlu1 %4414, %v2342_v22   ;;  %2357 = vperm.xlu0 %4413, %v2340_v0   ;;  %v2343_v2 = vsel %vm2327_vm7, 1, %v4730_v62  ;;  %v2341_v10 = vsel %vm2325_vm8, 1, %v4730_v62  ;;  %v2313_v25 = vsel %vm2297_vm9, %v6216_v41, 0.0  ;;  %vm2296_vm10 = vcmp.eq.s32.totalorder %v7059_v23, %v6401_v3 }
 0x62e   : >> { %vm2299_vm11 = vcmp.eq.s32.totalorder %v7060_v38, %v6401_v3  ;;  %v2459_v16 = vsel %vm2457_vm6, %v2309_v24, -inf  ;;  %vm2329_vm12 = vcmp.gt.f32.partialorder %v2313_v25, 0.0  ;;  %v2464_v12 = vsel %vm2457_vm6, %v2313_v25, -inf  ;;  %v7064_v24 = vld [vmem:[#allocation63_spill] sm:$0xff] }
 0x62f   : >> { %v2312_v31 = vsel %vm2296_vm10, %v6222_v42, 0.0  ;;  %v2460_v27 = vsel %vm2457_vm6, %v2310_v26, -inf  ;;  %v2458_v33 = vsel %vm2457_vm6, %v2308_v39, -inf  ;;  %v2315_v1 = vsel %vm2299_vm11, %v6228_v36, 0.0 }
 0x630   : >> { %vm2328_vm13 = vcmp.gt.f32.partialorder %v2312_v31, 0.0  ;;  %v2461_v13 = vsel %vm2457_vm6, %v2311_v8, -inf  ;;  %v2345_v11 = vsel %vm2329_vm12, 1, %v4730_v62  ;;  %v2462_v32 = vsel %vm2457_vm6, %v2312_v31, -inf  ;;  %v7063_v8 = vld [vmem:[#allocation60_spill] sm:$0xff] }
 0x631   : >> { %2366 = vperm.xlu1 %4414, %v2343_v2   ;;  %2360 = vperm.xlu0 %4413, %v2341_v10   ;;  %vm2331_vm14 = vcmp.gt.f32.partialorder %v2315_v1, 0.0  ;;  %v2465_v18 = vmax.f32 %v2459_v16, %v2464_v12  ;;  %v2344_v9 = vsel %vm2328_vm13, 1, %v4730_v62  ;;  %vm2298_vm15 = vcmp.eq.s32.totalorder %v7061_v37, %v6401_v3  ;;  %v7065_v16 = vld [vmem:[#allocation62_spill] sm:$0xff]  ;;  %v7066_v12 = vld [vmem:[#allocation65_spill] sm:$0xff] }
 0x632   : >> { %vm2301_vm0 = vcmp.eq.s32.totalorder %v7062_v15, %v6401_v3  ;;  %v2314_v26 = vsel %vm2298_vm15, %v6234_v40, 0.0  ;;  %vm2300_vm1 = vcmp.eq.s32.totalorder %v7063_v8, %v6401_v3  ;;  %vm2303_vm2 = vcmp.eq.s32.totalorder %v7064_v24, %v6401_v3 }
 0x633   : >> { %v2317_v39 = vsel %vm2301_vm0, %v6240_v34, 0.0  ;;  %v2463_v22 = vmax.f32 %v2458_v33, %v2462_v32  ;;  %v2347_v0 = vsel %vm2331_vm14, 1, %v4730_v62  ;;  %v2468_v2 = vsel %vm2457_vm6, %v2315_v1, -inf }
 0x634   : >> { %vm2330_vm3 = vcmp.gt.f32.partialorder %v2314_v26, 0.0  ;;  %v2466_v10 = vsel %vm2457_vm6, %v2314_v26, -inf  ;;  %vm2333_vm4 = vcmp.gt.f32.partialorder %v2317_v39, 0.0  ;;  %v2472_v25 = vsel %vm2457_vm6, %v2317_v39, -inf  ;;  %v7067_v26 = vld [vmem:[#allocation64_spill] sm:$0xff] }
 0x635   : >> { %2372 = vperm.xlu1 %4414, %v2345_v11   ;;  %2369 = vperm.xlu0 %4413, %v2344_v9   ;;  %v2346_v17 = vsel %vm2330_vm3, 1, %v4730_v62  ;;  %v2316_v23 = vsel %vm2300_vm1, %v6246_v35, 0.0  ;;  %v2319_v38 = vsel %vm2303_vm2, %v6252_v29, 0.0  ;;  %vm2302_vm5 = vcmp.eq.s32.totalorder %v7065_v16, %v6401_v3 }
 0x636   : >> { %vm2305_vm7 = vcmp.eq.s32.totalorder %v7066_v12, %v6401_v3  ;;  %v2469_v31 = vmax.f32 %v2461_v13, %v2468_v2  ;;  %vm2332_vm8 = vcmp.gt.f32.partialorder %v2316_v23, 0.0  ;;  %v2470_v33 = vsel %vm2457_vm6, %v2316_v23, -inf  ;;  %v7068_v13 = vld [vmem:[#allocation67_spill] sm:$0xff] }
 0x637   : >> { %v2467_v1 = vmax.f32 %v2460_v27, %v2466_v10  ;;  %v2349_v11 = vsel %vm2333_vm4, 1, %v4730_v62  ;;  %v2473_v32 = vmax.f32 %v2465_v18, %v2472_v25  ;;  %v2476_v9 = vsel %vm2457_vm6, %v2319_v38, -inf }
 0x638   : >> { %v2318_v37 = vsel %vm2302_vm5, %v6258_v30, 0.0  ;;  %v2321_v15 = vsel %vm2305_vm7, %v6264_v21, 0.0  ;;  %vm2304_vm9 = vcmp.eq.s32.totalorder %v7067_v26, %v6401_v3  ;;  %vm2307_vm10 = vcmp.eq.s32.totalorder %v7068_v13, %v6401_v3 }
 0x639   : >> { %2378 = vperm.xlu1 %4414, %v2347_v0   ;;  %2375 = vperm.xlu0 %4413, %v2346_v17   ;;  %v2348_v39 = vsel %vm2332_vm8, 1, %v4730_v62  ;;  %v2471_v27 = vmax.f32 %v2463_v22, %v2470_v33  ;;  %v2474_v8 = vsel %vm2457_vm6, %v2318_v37, -inf  ;;  %v2480_v18 = vsel %vm2457_vm6, %v2321_v15, -inf  ;;  %v7069_v17 = vld [vmem:[#allocation66_spill] sm:$0xff] }
 0x63a   : >> { %vm2335_vm11 = vcmp.gt.f32.partialorder %v2319_v38, 0.0  ;;  %v2477_v24 = vmax.f32 %v2469_v31, %v2476_v9  ;;  %vm2334_vm12 = vcmp.gt.f32.partialorder %v2318_v37, 0.0  ;;  %v2320_v0 = vsel %vm2304_vm9, %v6270_v28, 0.0 }
 0x63b   : >> { %v2323_v2 = vsel %vm2307_vm10, %v6284_v44, 0.0  ;;  %vm2306_vm13 = vcmp.eq.s32.totalorder %v7069_v17, %v6401_v3  ;;  %v2475_v10 = vmax.f32 %v2467_v1, %v2474_v8  ;;  %v2481_v25 = vmax.f32 %v2473_v32, %v2480_v18 }
 0x63c   : >> { %v2478_v22 = vsel %vm2457_vm6, %v2320_v0, -inf  ;;  %v2484_v23 = vsel %vm2457_vm6, %v2323_v2, -inf  ;;  %v2351_v16 = vsel %vm2335_vm11, 1, %v4730_v62  ;;  %v2350_v38 = vsel %vm2334_vm12, 1, %v4730_v62 }
 0x63d   : >> { %2384 = vperm.xlu1 %4414, %v2349_v11   ;;  %2381 = vperm.xlu0 %4413, %v2348_v39   ;;  %v2479_v12 = vmax.f32 %v2471_v27, %v2478_v22  ;;  %vm2337_vm14 = vcmp.gt.f32.partialorder %v2321_v15, 0.0  ;;  %vm2336_vm15 = vcmp.gt.f32.partialorder %v2320_v0, 0.0  ;;  %v2485_v31 = vmax.f32 %v2477_v24, %v2484_v23 }
 0x63e   : >> { %v2322_v33 = vsel %vm2306_vm13, %v6277_v45, 0.0  ;;  %v2353_v32 = vsel %vm2337_vm14, 1, %v4730_v62  ;;  %v2352_v37 = vsel %vm2336_vm15, 1, %v4730_v62  ;;  %vm2339_vm0 = vcmp.gt.f32.partialorder %v2323_v2, 0.0 }
 0x63f   : >> { %v2482_v9 = vsel %vm2457_vm6, %v2322_v33, -inf  ;;  %v2486_v1 = vmax.f32 %v2479_v12, %v2481_v25  ;;  %vm2338_vm1 = vcmp.gt.f32.partialorder %v2322_v33, 0.0  ;;  %v2355_v13 = vsel %vm2339_vm0, 1, %v4730_v62 }
 0x640   : >> { %v2483_v11 = vmax.f32 %v2475_v10, %v2482_v9  ;;  %v2354_v39 = vsel %vm2338_vm1, 1, %v4730_v62 }
 0x641   : >> { %2390 = vperm.xlu1 %4414, %v2351_v16   ;;  %2387 = vperm.xlu0 %4413, %v2350_v38  }
 0x642   : >> { %v2487_v26 = vmax.f32 %v2483_v11, %v2485_v31 }
 0x644   : >> { %v2488_v15 = vmax.f32 %v2486_v1, %v2487_v26 }
 0x645   : >> { %2396 = vperm.xlu1 %4414, %v2353_v32   ;;  %2393 = vperm.xlu0 %4413, %v2352_v37  }
 0x646   : >> { %v2489_v27 = vrot.slane %v2488_v15, 4 }
 0x648   : >> { %v2490_v8 = vmax.f32 %v2488_v15, %v2489_v27 }
 0x649   : >> { %2402 = vperm.xlu1 %4414, %v2355_v13   ;;  %2399 = vperm.xlu0 %4413, %v2354_v39  }
 0x64a   : >> { %v2491_v18 = vrot.slane %v2490_v8, 2 }
 0x64c   : >> { %v2492_v24 = vmax.f32 %v2490_v8, %v2491_v18 }
 0x64e   : >> { %v2493_v0 = vrot.slane %v2492_v24, 1 }
 0x650   : >> { %v2494_v17 = vmax.f32 %v2492_v24, %v2493_v0 }
 0x652   : >> { %vm2495_vm6 = vcmp.gt.f32.partialorder %v2494_v17, 0.0 }
 0x653   : >> { %v2496_v2 = vsel %vm2495_vm6, 1, %v4730_v62 }
 0x654   : >> { %2498 = vperm.xlu0 %4413, %v2496_v2  }
 0x6ac   : >> { %v2364_v10 = vpop.permute.xlu1 %2363  ;;  %v2358_v25 = vpop.permute.xlu0 %2357 }
 0x6ad   : >> { %vm2406_vm2 = vcmp.eq.s32.totalorder %v2364_v10, 1  ;;  %vm2404_vm5 = vcmp.eq.s32.totalorder %v2358_v25, 1 }
 0x6ae   : >> { %v2422_v1 = vsel %vm2406_vm2, %v6317_v7, -3.4028235e+38  ;;  %v2420_v26 = vsel %vm2404_vm5, %v6306_v63, -3.4028235e+38  ;;  %vm2502_vm2 = vcmp.eq.s32.totalorder %v4914_v20, %v6401_v3  ;;  %v7072_v3 = vld [vmem:[#allocation68_spill] sm:$0xff] (%p2286_p0) }
 0x6b0   : >> { %v2367_v22 = vpop.permute.xlu1 %2366  ;;  %v2361_v23 = vpop.permute.xlu0 %2360 }
 0x6b1   : >> { %vm2407_vm7 = vcmp.eq.s32.totalorder %v2367_v22, 1  ;;  %vm2405_vm8 = vcmp.eq.s32.totalorder %v2361_v23, 1 }
 0x6b2   : >> { %v2423_v15 = vsel %vm2407_vm7, %v6315_v60, -3.4028235e+38  ;;  %v2421_v13 = vsel %vm2405_vm8, %v6304_v5, -3.4028235e+38 }
 0x6b4   : >> { %v2373_v16 = vpop.permute.xlu1 %2372  ;;  %v2370_v38 = vpop.permute.xlu0 %2369 }
 0x6b5   : >> { %vm2409_vm3 = vcmp.eq.s32.totalorder %v2373_v16, 1  ;;  %vm2408_vm4 = vcmp.eq.s32.totalorder %v2370_v38, 1 }
 0x6b6   : >> { %v2425_v32 = vsel %vm2409_vm3, %v6326_v61, -3.4028235e+38  ;;  %v2424_v37 = vsel %vm2408_vm4, %v6328_v6, -3.4028235e+38 }
 0x6b7   : >> { %v2437_v8 = vmax.f32 %v2421_v13, %v2425_v32  ;;  %v2436_v18 = vmax.f32 %v2420_v26, %v2424_v37 }
 0x6b8   : >> { %v2379_v12 = vpop.permute.xlu1 %2378  ;;  %v2376_v31 = vpop.permute.xlu0 %2375 }
 0x6b9   : >> { %vm2411_vm9 = vcmp.eq.s32.totalorder %v2379_v12, 1  ;;  %vm2410_vm10 = vcmp.eq.s32.totalorder %v2376_v31, 1 }
 0x6ba   : >> { %v2427_v39 = vsel %vm2411_vm9, %v6337_v59, -3.4028235e+38  ;;  %v2426_v27 = vsel %vm2410_vm10, %v6339_v58, -3.4028235e+38 }
 0x6bb   : >> { %v2439_v22 = vmax.f32 %v2423_v15, %v2427_v39  ;;  %v2438_v23 = vmax.f32 %v2422_v1, %v2426_v27 }
 0x6bc   : >> { %v2385_v33 = vpop.permute.xlu1 %2384  ;;  %v2382_v9 = vpop.permute.xlu0 %2381 }
 0x6bd   : >> { %vm2413_vm11 = vcmp.eq.s32.totalorder %v2385_v33, 1  ;;  %vm2412_vm12 = vcmp.eq.s32.totalorder %v2382_v9, 1 }
 0x6be   : >> { %v2429_v24 = vsel %vm2413_vm11, %v6348_v57, -3.4028235e+38  ;;  %v2428_v0 = vsel %vm2412_vm12, %v6350_v56, -3.4028235e+38 }
 0x6bf   : >> { %v2441_v12 = vmax.f32 %v2437_v8, %v2429_v24  ;;  %v2440_v31 = vmax.f32 %v2436_v18, %v2428_v0 }
 0x6c0   : >> { %v2391_v62 = vpop.permute.xlu1 %2390  ;;  %v2388_v11 = vpop.permute.xlu0 %2387 }
 0x6c1   : >> { %vm2415_vm13 = vcmp.eq.s32.totalorder %v2391_v62, 1  ;;  %vm2414_vm14 = vcmp.eq.s32.totalorder %v2388_v11, 1 }
 0x6c2   : >> { %v2431_v10 = vsel %vm2415_vm13, %v6358_v55, -3.4028235e+38  ;;  %v2430_v25 = vsel %vm2414_vm14, %v6360_v50, -3.4028235e+38 }
 0x6c3   : >> { %v2443_v33 = vmax.f32 %v2439_v22, %v2431_v10  ;;  %v2442_v9 = vmax.f32 %v2438_v23, %v2430_v25  ;;  %v4731_v22 = vmov 0.0  }
 0x6c4   : >> { %v2397_v17 = vpop.permute.xlu1 %2396  ;;  %v2394_v2 = vpop.permute.xlu0 %2393  ;;  %v2503_v23 = vsel %vm2502_vm2, 1.0, %v4731_v22 }
 0x6c5   : >> { %vm2417_vm15 = vcmp.eq.s32.totalorder %v2397_v17, 1  ;;  %vm2416_vm0 = vcmp.eq.s32.totalorder %v2394_v2, 1 }
 0x6c6   : >> { %v2433_v16 = vsel %vm2417_vm15, %v6369_v51, -3.4028235e+38  ;;  %v2432_v38 = vsel %vm2416_vm0, %v6371_v49, -3.4028235e+38 }
 0x6c7   : >> { %v2445_v32 = vmax.f32 %v2441_v12, %v2433_v16  ;;  %v2444_v37 = vmax.f32 %v2440_v31, %v2432_v38 }
 0x6c8   : >> { %v2403_v62 = vpop.permute.xlu1 %2402  ;;  %v2400_v11 = vpop.permute.xlu0 %2399 }
 0x6c9   : >> { %vm2419_vm1 = vcmp.eq.s32.totalorder %v2403_v62, 1  ;;  %vm2418_vm6 = vcmp.eq.s32.totalorder %v2400_v11, 1  ;;  %v2448_v39 = vmax.f32 %v2444_v37, %v2445_v32  ;;  %v7077_v62 = vmov (%p2286_p0), %v6328_v6 }
 0x6ca   : >> { %v2435_v26 = vsel %vm2419_vm1, %v6380_v53, -3.4028235e+38  ;;  %v2434_v13 = vsel %vm2418_vm6, %v6378_v54, -3.4028235e+38 }
 0x6cb   : >> { %v2447_v15 = vmax.f32 %v2443_v33, %v2435_v26  ;;  %v2446_v1 = vmax.f32 %v2442_v9, %v2434_v13 }
 0x6cd   : >> { %v2449_v27 = vmax.f32 %v2446_v1, %v2447_v15 }
 0x6cf   : >> { %v2450_v17 = vmax.f32 %v2448_v39, %v2449_v27  ;;  %v6513_v39 = vadd.f32 (%p2286_p0), %v7072_v3, %v6385_v19  }
 0x6d1   : >> { %v2451_v2 = vrot.slane %v2450_v17, 4  ;;  %v7073_v31 = vmov (%p2286_p0), %v6513_v39 }
 0x6d2   : > { %v7075_v39 = vmov (%p2286_p0), %v7073_v31 }
 0x6d3   : >> { %v2452_v8 = vmax.f32 %v2450_v17, %v2451_v2  ;;  %v2499_v10 = vpop.permute.xlu0 %2498 }
 0x6d4   : >> { %vm2500_vm3 = vcmp.eq.s32.totalorder %v2499_v10, 1 }
 0x6d5   : >> { %v2453_v18 = vrot.slane %v2452_v8, 2 }
 0x6d7   : >> { %v2454_v24 = vmax.f32 %v2452_v8, %v2453_v18 }
 0x6d9   : >> { %v2455_v0 = vrot.slane %v2454_v24, 1 }
 0x6db   : >> { %v2456_v25 = vmax.f32 %v2454_v24, %v2455_v0  ;;  %v7078_v0 = vmov (%p2286_p0), %v6304_v5 }
 0x6dd   : >> { %v2501_v16 = vsel %vm2500_vm3, %v2456_v25, 0.0  ;;  %2288 = sbr.rel (!%p2286_p0) target bundleno = 1576 (0x628), region = 101 }
 0x6de   : >> { %v2504_v38 = vmul.f32 %v2503_v23, %v2501_v16 }
 0x6e0   : >> { %v6503_v38 = vadd.f32 %v4718_v14, %v2504_v38  }
 0x6e2   : >> { %v7070_v12 = vmov %v6503_v38 }
 0x6e3   : >> { %v7071_v14 = vmov %v7070_v12  ;;  %v7076_v38 = vmov (%p2286_p0), %v7070_v12 }
 0x6e4   :  { %161 = sbr.rel (!%p6518_p1) target bundleno = 40 (0x28), region = 112  ;;  %v2523_v6 = vld [vmem:[%s6825_s10 + $0x80] sm:$0xff] (%p6518_p1)  ;;  %v2524_v19 = vld [vmem:[%s6825_s10 + $0x88] sm:$0xff] (%p6518_p1)  ;;  %v4732_v14 = vmov (%p6518_p1), 0.0|0.0   ;;  %v2525_v21 = vld [vmem:[%s6825_s10 + $0x90] sm:$0xff] (%p6518_p1)  ;;  %vm4733_vm4 = vmmov (%p6518_p1), 0  }
 0x6e5   :  { %v2507_v5 = vld [vmem:[%s6825_s10] sm:$0xff] (%p6518_p1)  ;;  %3925 = vmatprep.subr.bf16.mxu0 (%p6518_p1), %v4732_v14  ;;  %3949 = vmatprep.subr.bf16.mxu1 (%p6518_p1), %v4732_v14  ;;  %v3926_v63 = vpack.c.bf16 (%p6518_p1), %v2524_v19, %v2523_v6  ;;  %v2508_v20 = vld [vmem:[%s6825_s10 + $0x8] sm:$0xff] (%p6518_p1)  ;;  %v2526_v28 = vld [vmem:[%s6825_s10 + $0x98] sm:$0xff] (%p6518_p1)  ;;  %v4734_v35 = vmov (%p6518_p1), 0.0   ;;  %vm2790_vm5 = vcmask (%p6518_p1), 523264  }
 0x6e6   :  { %v3950_v29 = vpack.c.bf16 (%p6518_p1), %v2508_v20, %v2507_v5  ;;  %v2509_v30 = vld [vmem:[%s6825_s10 + $0x10] sm:$0xff] (%p6518_p1)  ;;  %v2510_v34 = vld [vmem:[%s6825_s10 + $0x18] sm:$0xff] (%p6518_p1)  ;;  %3724 = vmatprep.mubr.msk.f32.mxu0 (%p6518_p1), %vm4733_vm4, %v4734_v35  ;;  %3759 = vmatprep.mubr.msk.f32.mxu1 (%p6518_p1), %vm4733_vm4, %v4734_v35  ;;  %v3929_v36 = vpack.c.bf16 (%p6518_p1), %v2526_v28, %v2525_v21  ;;  %v2527_v41 = vld [vmem:[%s6825_s10 + $0xa0] sm:$0xff] (%p6518_p1) }
 0x6e7   :  { %3927 = vmatpush3.bf16.msra.mxu0 (%p6518_p1), %v3926_v63  ;;  %v3953_v40 = vpack.c.bf16 (%p6518_p1), %v2510_v34, %v2509_v30  ;;  %v2528_v42 = vld [vmem:[%s6825_s10 + $0xa8] sm:$0xff] (%p6518_p1)  ;;  %v2511_v46 = vld [vmem:[%s6825_s10 + $0x20] sm:$0xff] (%p6518_p1)  ;;  %v2529_v58 = vld [vmem:[%s6825_s10 + $0xb0] sm:$0xff] (%p6518_p1) }
 0x6e8   :  { %3951 = vmatpush3.bf16.msra.mxu1 (%p6518_p1), %v3950_v29  ;;  %3928 = vmatprep.subr.bf16.mxu0 (%p6518_p1), %v4732_v14  ;;  %v2512_v47 = vld [vmem:[%s6825_s10 + $0x28] sm:$0xff] (%p6518_p1)  ;;  %v3932_v48 = vpack.c.bf16 (%p6518_p1), %v2528_v42, %v2527_v41  ;;  %v2530_v4 = vld [vmem:[%s6825_s10 + $0xb8] sm:$0xff] (%p6518_p1)  ;;  %v2513_v43 = vld [vmem:[%s6825_s10 + $0x30] sm:$0xff] (%p6518_p1) }
 0x6e9   :  { %3952 = vmatprep.subr.bf16.mxu1 (%p6518_p1), %v4732_v14  ;;  %v3956_v52 = vpack.c.bf16 (%p6518_p1), %v2512_v47, %v2511_v46  ;;  %v2514_v45 = vld [vmem:[%s6825_s10 + $0x38] sm:$0xff] (%p6518_p1)  ;;  %v3935_v44 = vpack.c.bf16 (%p6518_p1), %v2530_v4, %v2529_v58  ;;  %v2531_v61 = vld [vmem:[%s6825_s10 + $0xc0] sm:$0xff] (%p6518_p1)  ;;  %v2532_v7 = vld [vmem:[%s6825_s10 + $0xc8] sm:$0xff] (%p6518_p1) }
 0x6ea   :  { %v3959_v60 = vpack.c.bf16 (%p6518_p1), %v2514_v45, %v2513_v43  ;;  %v2515_v55 = vld [vmem:[%s6825_s10 + $0x40] sm:$0xff] (%p6518_p1)  ;;  %v2516_v59 = vld [vmem:[%s6825_s10 + $0x48] sm:$0xff] (%p6518_p1)  ;;  %v3938_v56 = vpack.c.bf16 (%p6518_p1), %v2532_v7, %v2531_v61  ;;  %v2533_v51 = vld [vmem:[%s6825_s10 + $0xd0] sm:$0xff] (%p6518_p1)  ;;  %v4735_v61 = vmov (%p6518_p1), 0  }
 0x6eb   :  { %3930 = vmatpush3.bf16.msra.mxu0 %v3929_v36  ;;  %v3962_v50 = vpack.c.bf16 %v2516_v59, %v2515_v55  ;;  %v2534_v57 = vld [vmem:[%s6825_s10 + $0xd8] sm:$0xff]  ;;  %v2517_v53 = vld [vmem:[%s6825_s10 + $0x50] sm:$0xff]  ;;  %v2535_v9 = vld [vmem:[%s6825_s10 + $0xe0] sm:$0xff]  ;;  %4415 = vset.pattern.permute.xlu0 %v4735_v61 }
 0x6ec   :  { %3954 = vmatpush3.bf16.msra.mxu1 %v3953_v40  ;;  %3931 = vmatprep.subr.bf16.mxu0 %v4732_v14  ;;  %v2518_v49 = vld [vmem:[%s6825_s10 + $0x58] sm:$0xff]  ;;  %v3941_v54 = vpack.c.bf16 %v2534_v57, %v2533_v51  ;;  %v2536_v62 = vld [vmem:[%s6825_s10 + $0xe8] sm:$0xff]  ;;  %v2519_v11 = vld [vmem:[%s6825_s10 + $0x60] sm:$0xff] }
 0x6ed   :  { %3955 = vmatprep.subr.bf16.mxu1 %v4732_v14  ;;  %v3965_v33 = vpack.c.bf16 %v2518_v49, %v2517_v53  ;;  %v2520_v32 = vld [vmem:[%s6825_s10 + $0x68] sm:$0xff]  ;;  %v3944_v37 = vpack.c.bf16 %v2536_v62, %v2535_v9  ;;  %v2537_v13 = vld [vmem:[%s6825_s10 + $0xf0] sm:$0xff]  ;;  %v2538_v15 = vld [vmem:[%s6825_s10 + $0xf8] sm:$0xff] }
 0x6ee   :  { %v3968_v26 = vpack.c.bf16 %v2520_v32, %v2519_v11  ;;  %v2521_v1 = vld [vmem:[%s6825_s10 + $0x70] sm:$0xff]  ;;  %v2522_v39 = vld [vmem:[%s6825_s10 + $0x78] sm:$0xff]  ;;  %v3947_v27 = vpack.c.bf16 %v2538_v15, %v2537_v13  ;;  %v2688_v2 = vld [vmem:[%s6827_s12] sm:$0xff] }
 0x6ef   :  { %3933 = vmatpush3.bf16.msra.mxu0 %v3932_v48  ;;  %v3971_v17 = vpack.c.bf16 %v2522_v39, %v2521_v1  ;;  %v2689_v8 = vld [vmem:[%s6827_s12 + $0x8] sm:$0xff]  ;;  %v2690_v24 = vld [vmem:[%s6827_s12 + $0x10] sm:$0xff]  ;;  %v2691_v0 = vld [vmem:[%s6827_s12 + $0x18] sm:$0xff] }
 0x6f0   :  { %3957 = vmatpush3.bf16.msra.mxu1 %v3956_v52  ;;  %3934 = vmatprep.subr.bf16.mxu0 %v4732_v14  ;;  %v3974_v18 = vpack.c.bf16 %v2689_v8, %v2688_v2  ;;  %v3977_v10 = vpack.c.bf16 %v2691_v0, %v2690_v24  ;;  %v2692_v25 = vld [vmem:[%s6827_s12 + $0x20] sm:$0xff]  ;;  %v2693_v22 = vld [vmem:[%s6827_s12 + $0x28] sm:$0xff]  ;;  %v2694_v16 = vld [vmem:[%s6827_s12 + $0x30] sm:$0xff] }
 0x6f1   :  { %3958 = vmatprep.subr.bf16.mxu1 %v4732_v14  ;;  %v3980_v23 = vpack.c.bf16 %v2693_v22, %v2692_v25  ;;  %v2695_v38 = vld [vmem:[%s6827_s12 + $0x38] sm:$0xff]  ;;  %v2696_v3 = vld [vmem:[%s6827_s12 + $0x40] sm:$0xff]  ;;  %v2698_v19 = vld [vmem:[%s6827_s12 + $0x50] sm:$0xff] }
 0x6f2   :  { %v2699_v5 = vld [vmem:[%s6827_s12 + $0x58] sm:$0xff]  ;;  %v2700_v20 = vld [vmem:[%s6827_s12 + $0x60] sm:$0xff]  ;;  %v2701_v21 = vld [vmem:[%s6827_s12 + $0x68] sm:$0xff] }
 0x6f3   :  { %3936 = vmatpush3.bf16.msra.mxu0 %v3935_v44  ;;  %v3989_v63 = vpack.c.bf16 %v2699_v5, %v2698_v19  ;;  %v3992_v28 = vpack.c.bf16 %v2701_v21, %v2700_v20  ;;  %v2702_v29 = vld [vmem:[%s6827_s12 + $0x70] sm:$0xff]  ;;  %v2703_v30 = vld [vmem:[%s6827_s12 + $0x78] sm:$0xff]  ;;  %v3034_v40 = vld [vmem:[%s6826_s11] ss:$0 sm:$0xff] }
 0x6f4   :  { %3960 = vmatpush3.bf16.msra.mxu1 %v3959_v60  ;;  %3937 = vmatprep.subr.bf16.mxu0 %v4732_v14  ;;  %v3995_v34 = vpack.c.bf16 %v2703_v30, %v2702_v29  ;;  %v3035_v48 = vld [vmem:[%s6828_s13] ss:$0 sm:$0xff]  ;;  %v3037_v7 = vld [vmem:[#allocation2] ss:$0 sm:$0xff] }
 0x6f5   :  { %3961 = vmatprep.subr.bf16.mxu1 %v4732_v14  ;;  %v3036_v43 = vld [vmem:[%s6829_s14] ss:$0 sm:$0xff] }
 0x6f7   :  { %3939 = vmatpush3.bf16.msra.mxu0 %v3938_v56 }
 0x6f8   :  { %3963 = vmatpush3.bf16.msra.mxu1 %v3962_v50  ;;  %3940 = vmatprep.subr.bf16.mxu0 %v4732_v14 }
 0x6f9   :  { %3964 = vmatprep.subr.bf16.mxu1 %v4732_v14 }
 0x6fb   :  { %3942 = vmatpush3.bf16.msra.mxu0 %v3941_v54 }
 0x6fc   :  { %3966 = vmatpush3.bf16.msra.mxu1 %v3965_v33  ;;  %3943 = vmatprep.subr.bf16.mxu0 %v4732_v14 }
 0x6fd   :  { %3967 = vmatprep.subr.bf16.mxu1 %v4732_v14 }
 0x6ff   :  { %3945 = vmatpush3.bf16.msra.mxu0 %v3944_v37 }
 0x700   :  { %3969 = vmatpush3.bf16.msra.mxu1 %v3968_v26  ;;  %3946 = vmatprep.subr.bf16.mxu0 %v4732_v14 }
 0x701   :  { %3970 = vmatprep.subr.bf16.mxu1 %v4732_v14 }
 0x703   :  { %3948 = vmatpush3.bf16.msra.mxu0 %v3947_v27 }
 0x704   :  { %3972 = vmatpush3.bf16.msra.mxu1 %v3971_v17  ;;  %3973 = vmatprep.subr.bf16.mxu0 %v4732_v14 }
 0x706   :  { %3725 = vmatmul.mubr.f32.vlgmr.msra.gmra.mrb[0].mxu0 %v7073_v31  ;;  %v2697_v31 = vld [vmem:[%s6827_s12 + $0x48] sm:$0xff] }
 0x707   :  { %3760 = vmatmul.mubr.f32.vlgmr.msra.gmra.mrb[0].mxu1 %v7070_v12  ;;  %3975 = vmatpush3.bf16.msra.mxu0 %v3974_v18  ;;  %v3983_v12 = vpack.c.bf16 %v2695_v38, %v2694_v16  ;;  %v3986_v6 = vpack.c.bf16 %v2697_v31, %v2696_v3 }
 0x708   :  { %3976 = vmatprep.subr.bf16.mxu0 %v4732_v14  ;;  %3794 = vmatprep.mubr.msk.f32.mxu0 %vm4733_vm4, %v4734_v35 }
 0x70b   :  { %3978 = vmatpush3.bf16.msra.mxu0 %v3977_v10 }
 0x70c   :  { %3979 = vmatprep.subr.bf16.mxu0 %v4732_v14 }
 0x70f   :  { %3981 = vmatpush3.bf16.msra.mxu0 %v3980_v23 }
 0x710   :  { %3982 = vmatprep.subr.bf16.mxu0 %v4732_v14 }
 0x713   :  { %3984 = vmatpush3.bf16.msra.mxu0 %v3983_v12 }
 0x714   :  { %3985 = vmatprep.subr.bf16.mxu0 %v4732_v14 }
 0x717   :  { %3987 = vmatpush3.bf16.msra.mxu0 %v3986_v6 }
 0x718   :  { %3988 = vmatprep.subr.bf16.mxu0 %v4732_v14 }
 0x71b   :  { %3990 = vmatpush3.bf16.msra.mxu0 %v3989_v63 }
 0x71c   :  { %3991 = vmatprep.subr.bf16.mxu0 %v4732_v14 }
 0x71f   :  { %3993 = vmatpush3.bf16.msra.mxu0 %v3992_v28 }
 0x720   :  { %3994 = vmatprep.subr.bf16.mxu0 %v4732_v14 }
 0x723   :  { %3996 = vmatpush3.bf16.msra.mxu0 %v3995_v34 }
 0x7d9   :  { %v2605_v35 = vpop.f32.mrb[0].mxu0 }
 0x7da   :  { %v2675_v36 = vpop.f32.mrb[0].mxu1  ;;  %v3726_v41 = vpop.f32.mrb[1].mxu0 }
 0x7db   :  { %v2676_v42 = vadd.f32 %v2675_v36, %v2605_v35  ;;  %v3761_v46 = vpop.f32.mrb[1].mxu1 }
 0x7dd   :  { %v2686_v14 = vadd.f32 %v3034_v40, %v2676_v42 }
 0x7df   :  { %v2687_v47 = vmax.f32 %v2686_v14, 0.0 }
 0x7e1   :  { %3795 = vmatmul.mubr.f32.vlgmr.msra.gmra.mrb[2].mxu0 %v2687_v47 }
 0x8b4   :  { %v2777_v52 = vpop.f32.mrb[2].mxu0 }
 0x8b5   :  { %v2778_v58 = vadd.f32 %v3035_v48, %v2777_v52  ;;  %v3796_v4 = vpop.f32.mrb[3].mxu0 }
 0x8b7   :  { %v2781_v45 = vmax.f32 %v2778_v58, 0.0 }
 0x8b9   :  { %v2789_v44 = vmul.f32 %v3036_v43, %v2781_v45 }
 0x8bb   :  { %v2791_v60 = vsel %vm2790_vm5, %v2789_v44, 0.0 }
 0x8bc   :  { %2792 = vadd.xlane.f32.xlu0 %v2791_v60 }
 0x949   :  { %v2793_v55 = vpop.xlane.xlu0 %2792 }
 0x94a   :  { %v2801_v59 = vadd.f32 %v3037_v7, %v2793_v55 }
 0x94c   :  { %v3038_v56 = vmul.f32 -1.442695, %v2801_v59 }
 0x94e   :  { %4416 = vpow2.f32 %v3038_v56 }
 0x958   :  { %v4417_v50 = vpop.eup %4416 }
 0x959   :  { %v2805_v51 = vadd.f32 1.0, %v4417_v50 }
 0x95b   :  { %4418 = vrcp.f32 %v2805_v51 }
 0x965   :  { %v4419_v57 = vpop.eup %4418 }
 0x966   :  { %2810 = vperm.xlu0 %4415, %v4419_v57  }
 0x9e5   :  { %v2811_v53 = vpop.permute.xlu0 %2810 }
 0x9e6   :  { %2813 = vst [vmem:[%s6831_s16] sm:$0xff] %v2811_v53 }

</bundles_post_ra>
